<compile_context>
chip_gen: v5e
topology: v5e:2x2
jax: 0.10.0
libtpu: 0.0.40
codegen_flags: <defaults>
</compile_context>

<pallas_src>
import functools
import math

import jax
import jax.numpy as jnp
from jax import lax
from jax.experimental import pallas as pl
from jax.experimental.pallas import tpu as pltpu

# Toy-scale stand-in for the real config (hidden % heads == 0, tied embeddings,
# LayerNorm eps = rms_norm_eps), keeping the module's exact structure.
CFG = dict(
    hidden_size=128,
    vocab_size=512,              # multiple of 128 → lane-dense lm_head stores
    num_hidden_layers=2,
    num_attention_heads=4,
    intermediate_size=256,
    max_position_embeddings=64,
    rms_norm_eps=1e-5,
    tie_word_embeddings=True,
)


def _layernorm(x, g, b, eps):
    mean = jnp.mean(x, axis=-1, keepdims=True)
    var = jnp.mean((x - mean) ** 2, axis=-1, keepdims=True)
    return (x - mean) * lax.rsqrt(var + eps) * g + b


# --------------------------- fused forward kernel ---------------------------
def smollm_fused_kernel(
    x_ref,                        # (T, C)   f32 — one sequence (tok+pos embeds)
    ln1_g_ref, ln1_b_ref,         # (L, 1, C) f32
    wqkv_ref, bqkv_ref,           # (L, C, 3C) bf16 / (L, 1, 3C) f32 (q-scale folded)
    wp_ref, bp_ref,               # (L, C, C) bf16 / (L, 1, C) f32
    n1_g_ref, n1_b_ref,           # (L, 1, C) f32
    w1_ref, b1_ref,               # (L, C, I) bf16 / (L, 1, I) f32
    w2_ref, b2_ref,               # (L, I, C) bf16 / (L, 1, C) f32
    embt_ref, lmb_ref,            # (C, V) bf16 (tied lm_head, pre-transposed) / (1, V) f32
    out_ref,                      # (T, V)  f32 logits for this sequence
    qkv_buf,                      # (T, 3C) f32 VMEM scratch — head-slicing staging
    y_buf,                        # (T, C)  f32 VMEM scratch — head-merge staging
    *, num_layers, num_heads, eps,
):
    f32, bf16 = jnp.float32, jnp.bfloat16
    x = x_ref[...]                                    # (T, C) f32
    T, C = x.shape
    H = num_heads
    D = C // H

    # Causal additive bias built in-kernel (iota + compare; no (T,T) HBM input).
    rows = lax.broadcasted_iota(jnp.int32, (T, T), 0)
    cols = lax.broadcasted_iota(jnp.int32, (T, T), 1)
    causal_bias = jnp.where(cols <= rows, 0.0, -1e30).astype(f32)   # (T, T)

    # Layer loop fully unrolled (static trip count) → cross-layer LLO visibility
    # and static per-layer ref indices.
    for l in range(num_layers):
        # ---- ln_1 + fused qkv projection: ONE lane-dense (T,C)x(C,3C) MXU pass
        h = _layernorm(x, ln1_g_ref[l], ln1_b_ref[l], eps)
        qkv_buf[...] = jnp.dot(h.astype(bf16), wqkv_ref[l],
                               preferred_element_type=f32) + bqkv_ref[l]

        def head_view(base):      # (H, T, D) bf16 view of the qkv staging buffer
            return jnp.stack(
                [qkv_buf[:, pl.ds(base + hh * D, D)] for hh in range(H)]
            ).astype(bf16)

        q = head_view(0)          # 1/sqrt(D) already folded into wqkv/bqkv
        k = head_view(C)
        v = head_view(2 * C)

        # ---- per-sequence causal attention; scores are (H,T,T), f32 softmax
        s = jnp.einsum("htd,hsd->hts", q, k,
                       preferred_element_type=f32) + causal_bias[None]
        s = s - jnp.max(s, axis=-1, keepdims=True)
        p = jnp.exp(s)
        p = p * pl.reciprocal(jnp.sum(p, axis=-1, keepdims=True), approx=True)
        ctx = jnp.einsum("hts,hsd->htd", p.astype(bf16), v,
                         preferred_element_type=f32)              # (H, T, D)

        # ---- merge heads back to (T,C) lanes, then ONE (T,C)x(C,C) output proj
        for hh in range(H):
            y_buf[:, pl.ds(hh * D, D)] = ctx[hh]
        attn_out = jnp.dot(y_buf[...].astype(bf16), wp_ref[l],
                           preferred_element_type=f32) + bp_ref[l]
        x = x + attn_out

        # ---- norm1 + SiLU MLP (residual added to the NORMALIZED tensor — this
        #      matches the PyTorch TransformerLayer: x = norm1(x); x = x + ff)
        xn = _layernorm(x, n1_g_ref[l], n1_b_ref[l], eps)
        hmid = jnp.dot(xn.astype(bf16), w1_ref[l],
                       preferred_element_type=f32) + b1_ref[l]
        hmid = hmid * jax.nn.sigmoid(hmid)                        # SiLU, f32
        ff = jnp.dot(hmid.astype(bf16), w2_ref[l],
                     preferred_element_type=f32) + b2_ref[l]
        x = xn + ff

    # ---- tied lm_head: pre-transposed (C,V) weight → lane-dense (T,V) output
    out_ref[...] = jnp.dot(x.astype(bf16), embt_ref[...],
                           preferred_element_type=f32) + lmb_ref[...]


# ------------------------------- parameters ---------------------------------
def init_params(key, cfg):
    C, V, I = cfg["hidden_size"], cfg["vocab_size"], cfg["intermediate_size"]
    P, L = cfg["max_position_embeddings"], cfg["num_hidden_layers"]

    def nrm(k, shape, scale=0.02):
        return (scale * jax.random.normal(k, shape)).astype(jnp.float32)

    keys = jax.random.split(key, 2 + 8 * L)
    params = {
        "tok_emb": nrm(keys[0], (V, C)),
        "pos_emb": nrm(keys[1], (P, C)),
        "lm_head_b": jnp.zeros((V,), jnp.float32),
        "layers": [],
    }
    ki = 2
    for _ in range(L):
        params["layers"].append({
            "ln1_g": jnp.ones((C,), jnp.float32),
            "ln1_b": jnp.zeros((C,), jnp.float32),
            "wqkv": nrm(keys[ki + 0], (C, 3 * C)),
            "bqkv": nrm(keys[ki + 1], (3 * C,)),
            "wproj": nrm(keys[ki + 2], (C, C)),
            "bproj": nrm(keys[ki + 3], (C,)),
            "n1_g": jnp.ones((C,), jnp.float32),
            "n1_b": jnp.zeros((C,), jnp.float32),
            "w1": nrm(keys[ki + 4], (C, I)),
            "b1": nrm(keys[ki + 5], (I,)),
            "w2": nrm(keys[ki + 6], (I, C)),
            "b2": nrm(keys[ki + 7], (C,)),
        })
        ki += 8
    return params


def pack_params(params, cfg):
    """Stack per-layer weights on a leading layer axis, keep the qkv weight
    fused as (L, C, 3C), fold the 1/sqrt(D) attention scale into its q columns,
    keep all biases lane-dense, cast matmul weights to bf16, and pre-transpose
    the tied embedding to (C, V) for the lm_head (one-time, plain-JAX prep)."""
    C = cfg["hidden_size"]; H = cfg["num_attention_heads"]; D = C // H
    L = cfg["num_hidden_layers"]; I = cfg["intermediate_size"]
    bf16 = jnp.bfloat16
    scale = 1.0 / math.sqrt(D)

    def stack(name):
        return jnp.stack([lp[name] for lp in params["layers"]])

    # Fold the attention score scale into the q columns (f32, before bf16 cast).
    qkv_scale = jnp.concatenate(
        [jnp.full((C,), scale, jnp.float32), jnp.ones((2 * C,), jnp.float32)])
    wqkv = stack("wqkv") * qkv_scale                  # (L, C, 3C)
    bqkv = stack("bqkv") * qkv_scale                  # (L, 3C)

    return {
        "ln1_g": stack("ln1_g").reshape(L, 1, C),
        "ln1_b": stack("ln1_b").reshape(L, 1, C),
        "wqkv": wqkv.astype(bf16),                    # (L, C, 3C) fused qkv
        "bqkv": bqkv.reshape(L, 1, 3 * C),            # lane-dense bias
        "wp": stack("wproj").astype(bf16),            # (L, C, C) fused out-proj
        "bp": stack("bproj").reshape(L, 1, C),
        "n1_g": stack("n1_g").reshape(L, 1, C),
        "n1_b": stack("n1_b").reshape(L, 1, C),
        "w1": stack("w1").astype(bf16),               # (L, C, I)
        "b1": stack("b1").reshape(L, 1, I),
        "w2": stack("w2").astype(bf16),               # (L, I, C)
        "b2": stack("b2").reshape(L, 1, C),
        "tok_emb": params["tok_emb"],                 # (V, C) f32 — wrapper gather
        "emb_t": params["tok_emb"].T.astype(bf16),    # (C, V) bf16 — tied lm_head
        "pos_emb": params["pos_emb"],                 # (P, C) f32
        "lm_b": params["lm_head_b"].reshape(1, -1),   # (1, V) f32
    }


# ------------------------------ model wrapper --------------------------------
def smollm_forward(packed, input_ids, cfg, targets=None):
    B, T = input_ids.shape
    C, V = cfg["hidden_size"], cfg["vocab_size"]

    # Token + position embedding gather (plain-JAX glue).
    # TODO(synk): fold this gather into the kernel via PrefetchScalarGridSpec
    # (input_ids as scalar prefetch + pl.Element row BlockSpec on tok_emb).
    pos = jnp.arange(T)
    x0 = packed["tok_emb"][input_ids] + packed["pos_emb"][pos][None]   # (B,T,C) f32

    kernel = functools.partial(
        smollm_fused_kernel,
        num_layers=cfg["num_hidden_layers"],
        num_heads=cfg["num_attention_heads"],
        eps=cfg["rms_norm_eps"],
    )

    def const(a):   # whole-array weight block, identical for every grid step
        return pl.BlockSpec(a.shape, lambda b, nd=a.ndim: (0,) * nd)

    grid_spec = pltpu.PrefetchScalarGridSpec(
        num_scalar_prefetch=0,
        grid=(B,),                                        # one sequence per step
        in_specs=[
            pl.BlockSpec((None, T, C), lambda b: (b, 0, 0)),          # x0
            const(packed["ln1_g"]), const(packed["ln1_b"]),
            const(packed["wqkv"]), const(packed["bqkv"]),
            const(packed["wp"]), const(packed["bp"]),
            const(packed["n1_g"]), const(packed["n1_b"]),
            const(packed["w1"]), const(packed["b1"]),
            const(packed["w2"]), const(packed["b2"]),
            const(packed["emb_t"]), const(packed["lm_b"]),
        ],
        out_specs=pl.BlockSpec((None, T, V), lambda b: (b, 0, 0)),
        scratch_shapes=[
            pltpu.VMEM((T, 3 * C), jnp.float32),   # qkv head-slicing staging
            pltpu.VMEM((T, C), jnp.float32),       # head-merge staging
        ],
    )

    logits = pl.pallas_call(
        kernel,
        out_shape=jax.ShapeDtypeStruct((B, T, V), jnp.float32),
        grid_spec=grid_spec,
        compiler_params=pltpu.CompilerParams(
            dimension_semantics=("parallel",)),    # batch axis → v7x's 2 TCs
    )(
        x0,
        packed["ln1_g"], packed["ln1_b"],
        packed["wqkv"], packed["bqkv"],
        packed["wp"], packed["bp"],
        packed["n1_g"], packed["n1_b"],
        packed["w1"], packed["b1"],
        packed["w2"], packed["b2"],
        packed["emb_t"], packed["lm_b"],
    )

    loss = None
    if targets is not None:
        # TODO(synk): fuse the cross-entropy reduction into the kernel at real
        # vocab size to avoid storing full (B,T,V) logits.
        logp = jax.nn.log_softmax(logits, axis=-1)
        loss = -jnp.mean(jnp.take_along_axis(logp, targets[..., None], axis=-1))
    return logits, loss


# --------------------------- pure-JAX reference ------------------------------
def _ref_forward(params, input_ids, cfg):
    """PyTorch-shaped reference in plain JAX with the same bf16 weight casts as
    the kernel, so the comparison is apples-to-apples."""
    C = cfg["hidden_size"]; H = cfg["num_attention_heads"]; D = C // H
    eps = cfg["rms_norm_eps"]
    f32, bf16 = jnp.float32, jnp.bfloat16
    B, T = input_ids.shape

    pos = jnp.arange(T)
    x = params["tok_emb"][input_ids] + params["pos_emb"][pos][None]

    causal = jnp.tril(jnp.ones((T, T), bool))
    for lp in params["layers"]:
        h = _layernorm(x, lp["ln1_g"], lp["ln1_b"], eps)
        qkv = jnp.einsum("btc,cf->btf", h.astype(bf16), lp["wqkv"].astype(bf16),
                         preferred_element_type=f32) + lp["bqkv"]
        q, k, v = jnp.split(qkv, 3, axis=-1)
        q = q.reshape(B, T, H, D).transpose(0, 2, 1, 3).astype(bf16)
        k = k.reshape(B, T, H, D).transpose(0, 2, 1, 3).astype(bf16)
        v = v.reshape(B, T, H, D).transpose(0, 2, 1, 3).astype(bf16)
        att = jnp.einsum("bhtd,bhsd->bhts", q, k,
                         preferred_element_type=f32) / math.sqrt(D)
        att = jnp.where(causal, att, -1e30)
        att = jax.nn.softmax(att, axis=-1)
        y = jnp.einsum("bhts,bhsd->bhtd", att.astype(bf16), v,
                       preferred_element_type=f32)
        y = y.transpose(0, 2, 1, 3).reshape(B, T, C)
        x = x + jnp.einsum("btc,cd->btd", y.astype(bf16), lp["wproj"].astype(bf16),
                           preferred_element_type=f32) + lp["bproj"]
        x = _layernorm(x, lp["n1_g"], lp["n1_b"], eps)
        hmid = jnp.einsum("btc,ci->bti", x.astype(bf16), lp["w1"].astype(bf16),
                          preferred_element_type=f32) + lp["b1"]
        hmid = hmid * jax.nn.sigmoid(hmid)
        x = x + jnp.einsum("bti,ic->btc", hmid.astype(bf16), lp["w2"].astype(bf16),
                           preferred_element_type=f32) + lp["b2"]
    return jnp.einsum("btc,vc->btv", x.astype(bf16), params["tok_emb"].astype(bf16),
                      preferred_element_type=f32) + params["lm_head_b"]


if __name__ == "__main__":
    B, T = 2, 8
    params = init_params(jax.random.PRNGKey(0), CFG)
    packed = pack_params(params, CFG)
    input_ids = jax.random.randint(
        jax.random.PRNGKey(1), (B, T), 0, CFG["vocab_size"], dtype=jnp.int32)

    logits, _ = smollm_forward(packed, input_ids, CFG)
    logits = jax.block_until_ready(logits)
    assert logits.shape == (B, T, CFG["vocab_size"])

    ref = jax.block_until_ready(_ref_forward(params, input_ids, CFG))
    max_err = float(jnp.max(jnp.abs(logits - ref)))
    assert jnp.allclose(logits, ref, atol=1e-2, rtol=1e-2), (
        f"mismatch vs reference (max abs err {max_err:.2e})")

    print("KERNEL_OK")
</pallas_src>

<mosaic_0001>
module attributes {stable_mosaic.version = 11 : i64} {
  func.func @smollm_fused_kernel(%arg0: i32, %arg1: memref<1x8x128xf32, #tpu.memory_space<vmem>>, %arg2: memref<2x1x128xf32, #tpu.memory_space<vmem>>, %arg3: memref<2x1x128xf32, #tpu.memory_space<vmem>>, %arg4: memref<2x128x384xbf16, #tpu.memory_space<vmem>>, %arg5: memref<2x1x384xf32, #tpu.memory_space<vmem>>, %arg6: memref<2x128x128xbf16, #tpu.memory_space<vmem>>, %arg7: memref<2x1x128xf32, #tpu.memory_space<vmem>>, %arg8: memref<2x1x128xf32, #tpu.memory_space<vmem>>, %arg9: memref<2x1x128xf32, #tpu.memory_space<vmem>>, %arg10: memref<2x128x256xbf16, #tpu.memory_space<vmem>>, %arg11: memref<2x1x256xf32, #tpu.memory_space<vmem>>, %arg12: memref<2x256x128xbf16, #tpu.memory_space<vmem>>, %arg13: memref<2x1x128xf32, #tpu.memory_space<vmem>>, %arg14: memref<128x512xbf16, #tpu.memory_space<vmem>>, %arg15: memref<1x512xf32, #tpu.memory_space<vmem>>, %arg16: memref<1x8x512xf32, #tpu.memory_space<vmem>>, %arg17: memref<8x384xf32, #tpu.memory_space<vmem>>, %arg18: memref<8x128xf32, #tpu.memory_space<vmem>>) attributes {dimension_semantics = [#tpu.dimension_semantics<parallel>], iteration_bounds = array<i64: 2>, scalar_prefetch = 0 : i64, scratch_operands = 2 : i64, tpu.core_type = #tpu.core_type<tc>, window_params = [{transform_indices = @transform_0, window_bounds = array<i64: 1, 8, 128>}, {pipeline_mode = #tpu.pipeline_mode<synchronous>, transform_indices = @transform_1, window_bounds = array<i64: 2, 1, 128>}, {pipeline_mode = #tpu.pipeline_mode<synchronous>, transform_indices = @transform_2, window_bounds = array<i64: 2, 1, 128>}, {pipeline_mode = #tpu.pipeline_mode<synchronous>, transform_indices = @transform_3, window_bounds = array<i64: 2, 128, 384>}, {pipeline_mode = #tpu.pipeline_mode<synchronous>, transform_indices = @transform_4, window_bounds = array<i64: 2, 1, 384>}, {pipeline_mode = #tpu.pipeline_mode<synchronous>, transform_indices = @transform_5, window_bounds = array<i64: 2, 128, 128>}, {pipeline_mode = #tpu.pipeline_mode<synchronous>, transform_indices = @transform_6, window_bounds = array<i64: 2, 1, 128>}, {pipeline_mode = #tpu.pipeline_mode<synchronous>, transform_indices = @transform_7, window_bounds = array<i64: 2, 1, 128>}, {pipeline_mode = #tpu.pipeline_mode<synchronous>, transform_indices = @transform_8, window_bounds = array<i64: 2, 1, 128>}, {pipeline_mode = #tpu.pipeline_mode<synchronous>, transform_indices = @transform_9, window_bounds = array<i64: 2, 128, 256>}, {pipeline_mode = #tpu.pipeline_mode<synchronous>, transform_indices = @transform_10, window_bounds = array<i64: 2, 1, 256>}, {pipeline_mode = #tpu.pipeline_mode<synchronous>, transform_indices = @transform_11, window_bounds = array<i64: 2, 256, 128>}, {pipeline_mode = #tpu.pipeline_mode<synchronous>, transform_indices = @transform_12, window_bounds = array<i64: 2, 1, 128>}, {pipeline_mode = #tpu.pipeline_mode<synchronous>, transform_indices = @transform_13, window_bounds = array<i64: 128, 512>}, {pipeline_mode = #tpu.pipeline_mode<synchronous>, transform_indices = @transform_14, window_bounds = array<i64: 1, 512>}, {transform_indices = @transform_15, window_bounds = array<i64: 1, 8, 512>}]} {
    %c0 = arith.constant 0 : index
    %c0_0 = arith.constant 0 : index
    %c0_1 = arith.constant 0 : index
    %0 = vector.load %arg1[%c0, %c0_0, %c0_1] : memref<1x8x128xf32, #tpu.memory_space<vmem>>, vector<1x8x128xf32>
    %1 = vector.shape_cast %0 : vector<1x8x128xf32> to vector<8x128xf32>
    %2 = tpu.iota {dimensions = array<i32: 0>} : vector<8x8xi32>
    %3 = tpu.iota {dimensions = array<i32: 1>} : vector<8x8xi32>
    %4 = arith.cmpi sle, %3, %2 : vector<8x8xi32>
    %cst = arith.constant 0.000000e+00 : f32
    %cst_2 = arith.constant -1.000000e+30 : f32
    %5 = vector.broadcast %cst : f32 to vector<8x8xf32>
    %6 = vector.broadcast %cst_2 : f32 to vector<8x8xf32>
    %7 = arith.select %4, %5, %6 : vector<8x8xi1>, vector<8x8xf32>
    %c0_3 = arith.constant 0 : index
    %c0_4 = arith.constant 0 : index
    %c0_5 = arith.constant 0 : index
    %8 = vector.load %arg2[%c0_3, %c0_4, %c0_5] : memref<2x1x128xf32, #tpu.memory_space<vmem>>, vector<1x1x128xf32>
    %9 = vector.shape_cast %8 : vector<1x1x128xf32> to vector<1x128xf32>
    %c0_6 = arith.constant 0 : index
    %c0_7 = arith.constant 0 : index
    %c0_8 = arith.constant 0 : index
    %10 = vector.load %arg3[%c0_6, %c0_7, %c0_8] : memref<2x1x128xf32, #tpu.memory_space<vmem>>, vector<1x1x128xf32>
    %11 = vector.shape_cast %10 : vector<1x1x128xf32> to vector<1x128xf32>
    %cst_9 = arith.constant dense<0.000000e+00> : vector<8xf32>
    %12 = vector.multi_reduction <add>, %1, %cst_9 [1] : vector<8x128xf32> to vector<8xf32>
    %13 = vector.shape_cast %12 : vector<8xf32> to vector<8x1xf32>
    %cst_10 = arith.constant 1.280000e+02 : f32
    %14 = vector.broadcast %cst_10 : f32 to vector<8x1xf32>
    %15 = arith.divf %13, %14 : vector<8x1xf32>
    %16 = vector.broadcast %15 : vector<8x1xf32> to vector<8x128xf32>
    %17 = arith.subf %1, %16 : vector<8x128xf32>
    %18 = arith.mulf %17, %17 : vector<8x128xf32>
    %cst_11 = arith.constant dense<0.000000e+00> : vector<8xf32>
    %19 = vector.multi_reduction <add>, %18, %cst_11 [1] : vector<8x128xf32> to vector<8xf32>
    %20 = vector.shape_cast %19 : vector<8xf32> to vector<8x1xf32>
    %cst_12 = arith.constant 1.280000e+02 : f32
    %21 = vector.broadcast %cst_12 : f32 to vector<8x1xf32>
    %22 = arith.divf %20, %21 : vector<8x1xf32>
    %23 = vector.broadcast %15 : vector<8x1xf32> to vector<8x128xf32>
    %24 = arith.subf %1, %23 : vector<8x128xf32>
    %cst_13 = arith.constant 9.99999974E-6 : f32
    %25 = vector.broadcast %cst_13 : f32 to vector<8x1xf32>
    %26 = arith.addf %22, %25 : vector<8x1xf32>
    %27 = math.rsqrt %26 : vector<8x1xf32>
    %28 = vector.broadcast %27 : vector<8x1xf32> to vector<8x128xf32>
    %29 = arith.mulf %24, %28 : vector<8x128xf32>
    %30 = vector.broadcast %9 : vector<1x128xf32> to vector<8x128xf32>
    %31 = arith.mulf %29, %30 : vector<8x128xf32>
    %32 = vector.broadcast %11 : vector<1x128xf32> to vector<8x128xf32>
    %33 = arith.addf %31, %32 : vector<8x128xf32>
    %34 = arith.truncf %33 : vector<8x128xf32> to vector<8x128xbf16>
    %c0_14 = arith.constant 0 : index
    %c0_15 = arith.constant 0 : index
    %c0_16 = arith.constant 0 : index
    %35 = vector.load %arg4[%c0_14, %c0_15, %c0_16] : memref<2x128x384xbf16, #tpu.memory_space<vmem>>, vector<1x128x384xbf16>
    %36 = vector.shape_cast %35 : vector<1x128x384xbf16> to vector<128x384xbf16>
    %cst_17 = arith.constant dense<0.000000e+00> : vector<8x384xf32>
    %37 = tpu.matmul %34, %36, %cst_17 {dimension_numbers = #tpu.dot_dimension_numbers<[1], [0], [0], [1], [0, 0, 1, 1], [], []>} : vector<8x128xbf16>, vector<128x384xbf16>, vector<8x384xf32> -> vector<8x384xf32>
    %c0_18 = arith.constant 0 : index
    %c0_19 = arith.constant 0 : index
    %c0_20 = arith.constant 0 : index
    %38 = vector.load %arg5[%c0_18, %c0_19, %c0_20] : memref<2x1x384xf32, #tpu.memory_space<vmem>>, vector<1x1x384xf32>
    %39 = vector.shape_cast %38 : vector<1x1x384xf32> to vector<1x384xf32>
    %40 = vector.broadcast %39 : vector<1x384xf32> to vector<8x384xf32>
    %41 = arith.addf %37, %40 : vector<8x384xf32>
    %c0_21 = arith.constant 0 : index
    %c0_22 = arith.constant 0 : index
    %42 = vector.load %arg17[%c0_21, %c0_22] : memref<8x384xf32, #tpu.memory_space<vmem>>, vector<8x384xf32>
    tpu.vector_store %arg17[%c0_21, %c0_22], %41 {strides = array<i32>} : memref<8x384xf32, #tpu.memory_space<vmem>>, vector<8x384xf32>,
    %c0_23 = arith.constant 0 : index
    %c0_24 = arith.constant 0 : index
    %43 = vector.load %arg17[%c0_23, %c0_24] : memref<8x384xf32, #tpu.memory_space<vmem>>, vector<8x32xf32>
    %c0_25 = arith.constant 0 : index
    %c32 = arith.constant 32 : index
    %44 = vector.load %arg17[%c0_25, %c32] : memref<8x384xf32, #tpu.memory_space<vmem>>, vector<8x32xf32>
    %c0_26 = arith.constant 0 : index
    %c64 = arith.constant 64 : index
    %45 = vector.load %arg17[%c0_26, %c64] : memref<8x384xf32, #tpu.memory_space<vmem>>, vector<8x32xf32>
    %c0_27 = arith.constant 0 : index
    %c96 = arith.constant 96 : index
    %46 = vector.load %arg17[%c0_27, %c96] : memref<8x384xf32, #tpu.memory_space<vmem>>, vector<8x32xf32>
    %47 = vector.shape_cast %43 : vector<8x32xf32> to vector<1x8x32xf32>
    %48 = vector.shape_cast %44 : vector<8x32xf32> to vector<1x8x32xf32>
    %49 = vector.shape_cast %45 : vector<8x32xf32> to vector<1x8x32xf32>
    %50 = vector.shape_cast %46 : vector<8x32xf32> to vector<1x8x32xf32>
    %51 = tpu.concatenate %47, %48, %49, %50 in 0 : vector<1x8x32xf32>, vector<1x8x32xf32>, vector<1x8x32xf32>, vector<1x8x32xf32> -> vector<4x8x32xf32>
    %52 = arith.truncf %51 : vector<4x8x32xf32> to vector<4x8x32xbf16>
    %c0_28 = arith.constant 0 : index
    %c128 = arith.constant 128 : index
    %53 = vector.load %arg17[%c0_28, %c128] : memref<8x384xf32, #tpu.memory_space<vmem>>, vector<8x32xf32>
    %c0_29 = arith.constant 0 : index
    %c160 = arith.constant 160 : index
    %54 = vector.load %arg17[%c0_29, %c160] : memref<8x384xf32, #tpu.memory_space<vmem>>, vector<8x32xf32>
    %c0_30 = arith.constant 0 : index
    %c192 = arith.constant 192 : index
    %55 = vector.load %arg17[%c0_30, %c192] : memref<8x384xf32, #tpu.memory_space<vmem>>, vector<8x32xf32>
    %c0_31 = arith.constant 0 : index
    %c224 = arith.constant 224 : index
    %56 = vector.load %arg17[%c0_31, %c224] : memref<8x384xf32, #tpu.memory_space<vmem>>, vector<8x32xf32>
    %57 = vector.shape_cast %53 : vector<8x32xf32> to vector<1x8x32xf32>
    %58 = vector.shape_cast %54 : vector<8x32xf32> to vector<1x8x32xf32>
    %59 = vector.shape_cast %55 : vector<8x32xf32> to vector<1x8x32xf32>
    %60 = vector.shape_cast %56 : vector<8x32xf32> to vector<1x8x32xf32>
    %61 = tpu.concatenate %57, %58, %59, %60 in 0 : vector<1x8x32xf32>, vector<1x8x32xf32>, vector<1x8x32xf32>, vector<1x8x32xf32> -> vector<4x8x32xf32>
    %62 = arith.truncf %61 : vector<4x8x32xf32> to vector<4x8x32xbf16>
    %c0_32 = arith.constant 0 : index
    %c256 = arith.constant 256 : index
    %63 = vector.load %arg17[%c0_32, %c256] : memref<8x384xf32, #tpu.memory_space<vmem>>, vector<8x32xf32>
    %c0_33 = arith.constant 0 : index
    %c288 = arith.constant 288 : index
    %64 = vector.load %arg17[%c0_33, %c288] : memref<8x384xf32, #tpu.memory_space<vmem>>, vector<8x32xf32>
    %c0_34 = arith.constant 0 : index
    %c320 = arith.constant 320 : index
    %65 = vector.load %arg17[%c0_34, %c320] : memref<8x384xf32, #tpu.memory_space<vmem>>, vector<8x32xf32>
    %c0_35 = arith.constant 0 : index
    %c352 = arith.constant 352 : index
    %66 = vector.load %arg17[%c0_35, %c352] : memref<8x384xf32, #tpu.memory_space<vmem>>, vector<8x32xf32>
    %67 = vector.shape_cast %63 : vector<8x32xf32> to vector<1x8x32xf32>
    %68 = vector.shape_cast %64 : vector<8x32xf32> to vector<1x8x32xf32>
    %69 = vector.shape_cast %65 : vector<8x32xf32> to vector<1x8x32xf32>
    %70 = vector.shape_cast %66 : vector<8x32xf32> to vector<1x8x32xf32>
    %71 = tpu.concatenate %67, %68, %69, %70 in 0 : vector<1x8x32xf32>, vector<1x8x32xf32>, vector<1x8x32xf32>, vector<1x8x32xf32> -> vector<4x8x32xf32>
    %72 = arith.truncf %71 : vector<4x8x32xf32> to vector<4x8x32xbf16>
    "tpu.trace_start"() <{level = 10 : i32, message = "htd,hsd->hts"}> : () -> ()
    %cst_36 = arith.constant dense<0.000000e+00> : vector<4x8x8xf32>
    %73 = tpu.matmul %52, %62, %cst_36 {dimension_numbers = #tpu.dot_dimension_numbers<[2], [2], [1], [1], [0, 0, 0, 1, 1, 1], [0], [0]>} : vector<4x8x32xbf16>, vector<4x8x32xbf16>, vector<4x8x8xf32> -> vector<4x8x8xf32>
    "tpu.trace_stop"() : () -> ()
    %74 = vector.shape_cast %7 : vector<8x8xf32> to vector<1x8x8xf32>
    %75 = vector.broadcast %74 : vector<1x8x8xf32> to vector<4x8x8xf32>
    %76 = arith.addf %73, %75 : vector<4x8x8xf32>
    %cst_37 = arith.constant dense<0xFF800000> : vector<4x8xf32>
    %77 = vector.multi_reduction <maximumf>, %76, %cst_37 [2] : vector<4x8x8xf32> to vector<4x8xf32>
    %78 = vector.shape_cast %77 : vector<4x8xf32> to vector<4x8x1xf32>
    %79 = vector.broadcast %78 : vector<4x8x1xf32> to vector<4x8x8xf32>
    %80 = arith.subf %76, %79 : vector<4x8x8xf32>
    %81 = math.exp %80 : vector<4x8x8xf32>
    %cst_38 = arith.constant dense<0.000000e+00> : vector<4x8xf32>
    %82 = vector.multi_reduction <add>, %81, %cst_38 [2] : vector<4x8x8xf32> to vector<4x8xf32>
    %83 = vector.shape_cast %82 : vector<4x8xf32> to vector<4x8x1xf32>
    %84 = tpu.reciprocal %83 {approx = true} : vector<4x8x1xf32> -> vector<4x8x1xf32>
    %85 = vector.broadcast %84 : vector<4x8x1xf32> to vector<4x8x8xf32>
    %86 = arith.mulf %81, %85 : vector<4x8x8xf32>
    %87 = arith.truncf %86 : vector<4x8x8xf32> to vector<4x8x8xbf16>
    "tpu.trace_start"() <{level = 10 : i32, message = "hts,hsd->htd"}> : () -> ()
    %cst_39 = arith.constant dense<0.000000e+00> : vector<4x8x32xf32>
    %88 = tpu.matmul %87, %72, %cst_39 {dimension_numbers = #tpu.dot_dimension_numbers<[2], [1], [1], [2], [0, 0, 0, 1, 1, 2], [0], [0]>} : vector<4x8x8xbf16>, vector<4x8x32xbf16>, vector<4x8x32xf32> -> vector<4x8x32xf32>
    "tpu.trace_stop"() : () -> ()
    %89 = vector.extract_strided_slice %88 {offsets = [0, 0, 0], sizes = [1, 8, 32], strides = [1, 1, 1]} : vector<4x8x32xf32> to vector<1x8x32xf32>
    %90 = vector.shape_cast %89 : vector<1x8x32xf32> to vector<8x32xf32>
    %c0_40 = arith.constant 0 : index
    %c0_41 = arith.constant 0 : index
    %91 = vector.load %arg18[%c0_40, %c0_41] : memref<8x128xf32, #tpu.memory_space<vmem>>, vector<8x32xf32>
    tpu.vector_store %arg18[%c0_40, %c0_41], %90 {strides = array<i32>} : memref<8x128xf32, #tpu.memory_space<vmem>>, vector<8x32xf32>,
    %92 = vector.extract_strided_slice %88 {offsets = [1, 0, 0], sizes = [1, 8, 32], strides = [1, 1, 1]} : vector<4x8x32xf32> to vector<1x8x32xf32>
    %93 = vector.shape_cast %92 : vector<1x8x32xf32> to vector<8x32xf32>
    %c0_42 = arith.constant 0 : index
    %c32_43 = arith.constant 32 : index
    %94 = vector.load %arg18[%c0_42, %c32_43] : memref<8x128xf32, #tpu.memory_space<vmem>>, vector<8x32xf32>
    tpu.vector_store %arg18[%c0_42, %c32_43], %93 {strides = array<i32>} : memref<8x128xf32, #tpu.memory_space<vmem>>, vector<8x32xf32>,
    %95 = vector.extract_strided_slice %88 {offsets = [2, 0, 0], sizes = [1, 8, 32], strides = [1, 1, 1]} : vector<4x8x32xf32> to vector<1x8x32xf32>
    %96 = vector.shape_cast %95 : vector<1x8x32xf32> to vector<8x32xf32>
    %c0_44 = arith.constant 0 : index
    %c64_45 = arith.constant 64 : index
    %97 = vector.load %arg18[%c0_44, %c64_45] : memref<8x128xf32, #tpu.memory_space<vmem>>, vector<8x32xf32>
    tpu.vector_store %arg18[%c0_44, %c64_45], %96 {strides = array<i32>} : memref<8x128xf32, #tpu.memory_space<vmem>>, vector<8x32xf32>,
    %98 = vector.extract_strided_slice %88 {offsets = [3, 0, 0], sizes = [1, 8, 32], strides = [1, 1, 1]} : vector<4x8x32xf32> to vector<1x8x32xf32>
    %99 = vector.shape_cast %98 : vector<1x8x32xf32> to vector<8x32xf32>
    %c0_46 = arith.constant 0 : index
    %c96_47 = arith.constant 96 : index
    %100 = vector.load %arg18[%c0_46, %c96_47] : memref<8x128xf32, #tpu.memory_space<vmem>>, vector<8x32xf32>
    tpu.vector_store %arg18[%c0_46, %c96_47], %99 {strides = array<i32>} : memref<8x128xf32, #tpu.memory_space<vmem>>, vector<8x32xf32>,
    %c0_48 = arith.constant 0 : index
    %c0_49 = arith.constant 0 : index
    %101 = vector.load %arg18[%c0_48, %c0_49] : memref<8x128xf32, #tpu.memory_space<vmem>>, vector<8x128xf32>
    %102 = arith.truncf %101 : vector<8x128xf32> to vector<8x128xbf16>
    %c0_50 = arith.constant 0 : index
    %c0_51 = arith.constant 0 : index
    %c0_52 = arith.constant 0 : index
    %103 = vector.load %arg6[%c0_50, %c0_51, %c0_52] : memref<2x128x128xbf16, #tpu.memory_space<vmem>>, vector<1x128x128xbf16>
    %104 = vector.shape_cast %103 : vector<1x128x128xbf16> to vector<128x128xbf16>
    %cst_53 = arith.constant dense<0.000000e+00> : vector<8x128xf32>
    %105 = tpu.matmul %102, %104, %cst_53 {dimension_numbers = #tpu.dot_dimension_numbers<[1], [0], [0], [1], [0, 0, 1, 1], [], []>} : vector<8x128xbf16>, vector<128x128xbf16>, vector<8x128xf32> -> vector<8x128xf32>
    %c0_54 = arith.constant 0 : index
    %c0_55 = arith.constant 0 : index
    %c0_56 = arith.constant 0 : index
    %106 = vector.load %arg7[%c0_54, %c0_55, %c0_56] : memref<2x1x128xf32, #tpu.memory_space<vmem>>, vector<1x1x128xf32>
    %107 = vector.shape_cast %106 : vector<1x1x128xf32> to vector<1x128xf32>
    %108 = vector.broadcast %107 : vector<1x128xf32> to vector<8x128xf32>
    %109 = arith.addf %105, %108 : vector<8x128xf32>
    %110 = arith.addf %1, %109 : vector<8x128xf32>
    %c0_57 = arith.constant 0 : index
    %c0_58 = arith.constant 0 : index
    %c0_59 = arith.constant 0 : index
    %111 = vector.load %arg8[%c0_57, %c0_58, %c0_59] : memref<2x1x128xf32, #tpu.memory_space<vmem>>, vector<1x1x128xf32>
    %112 = vector.shape_cast %111 : vector<1x1x128xf32> to vector<1x128xf32>
    %c0_60 = arith.constant 0 : index
    %c0_61 = arith.constant 0 : index
    %c0_62 = arith.constant 0 : index
    %113 = vector.load %arg9[%c0_60, %c0_61, %c0_62] : memref<2x1x128xf32, #tpu.memory_space<vmem>>, vector<1x1x128xf32>
    %114 = vector.shape_cast %113 : vector<1x1x128xf32> to vector<1x128xf32>
    %cst_63 = arith.constant dense<0.000000e+00> : vector<8xf32>
    %115 = vector.multi_reduction <add>, %110, %cst_63 [1] : vector<8x128xf32> to vector<8xf32>
    %116 = vector.shape_cast %115 : vector<8xf32> to vector<8x1xf32>
    %cst_64 = arith.constant 1.280000e+02 : f32
    %117 = vector.broadcast %cst_64 : f32 to vector<8x1xf32>
    %118 = arith.divf %116, %117 : vector<8x1xf32>
    %119 = vector.broadcast %118 : vector<8x1xf32> to vector<8x128xf32>
    %120 = arith.subf %110, %119 : vector<8x128xf32>
    %121 = arith.mulf %120, %120 : vector<8x128xf32>
    %cst_65 = arith.constant dense<0.000000e+00> : vector<8xf32>
    %122 = vector.multi_reduction <add>, %121, %cst_65 [1] : vector<8x128xf32> to vector<8xf32>
    %123 = vector.shape_cast %122 : vector<8xf32> to vector<8x1xf32>
    %cst_66 = arith.constant 1.280000e+02 : f32
    %124 = vector.broadcast %cst_66 : f32 to vector<8x1xf32>
    %125 = arith.divf %123, %124 : vector<8x1xf32>
    %126 = vector.broadcast %118 : vector<8x1xf32> to vector<8x128xf32>
    %127 = arith.subf %110, %126 : vector<8x128xf32>
    %cst_67 = arith.constant 9.99999974E-6 : f32
    %128 = vector.broadcast %cst_67 : f32 to vector<8x1xf32>
    %129 = arith.addf %125, %128 : vector<8x1xf32>
    %130 = math.rsqrt %129 : vector<8x1xf32>
    %131 = vector.broadcast %130 : vector<8x1xf32> to vector<8x128xf32>
    %132 = arith.mulf %127, %131 : vector<8x128xf32>
    %133 = vector.broadcast %112 : vector<1x128xf32> to vector<8x128xf32>
    %134 = arith.mulf %132, %133 : vector<8x128xf32>
    %135 = vector.broadcast %114 : vector<1x128xf32> to vector<8x128xf32>
    %136 = arith.addf %134, %135 : vector<8x128xf32>
    %137 = arith.truncf %136 : vector<8x128xf32> to vector<8x128xbf16>
    %c0_68 = arith.constant 0 : index
    %c0_69 = arith.constant 0 : index
    %c0_70 = arith.constant 0 : index
    %138 = vector.load %arg10[%c0_68, %c0_69, %c0_70] : memref<2x128x256xbf16, #tpu.memory_space<vmem>>, vector<1x128x256xbf16>
    %139 = vector.shape_cast %138 : vector<1x128x256xbf16> to vector<128x256xbf16>
    %cst_71 = arith.constant dense<0.000000e+00> : vector<8x256xf32>
    %140 = tpu.matmul %137, %139, %cst_71 {dimension_numbers = #tpu.dot_dimension_numbers<[1], [0], [0], [1], [0, 0, 1, 1], [], []>} : vector<8x128xbf16>, vector<128x256xbf16>, vector<8x256xf32> -> vector<8x256xf32>
    %c0_72 = arith.constant 0 : index
    %c0_73 = arith.constant 0 : index
    %c0_74 = arith.constant 0 : index
    %141 = vector.load %arg11[%c0_72, %c0_73, %c0_74] : memref<2x1x256xf32, #tpu.memory_space<vmem>>, vector<1x1x256xf32>
    %142 = vector.shape_cast %141 : vector<1x1x256xf32> to vector<1x256xf32>
    %143 = vector.broadcast %142 : vector<1x256xf32> to vector<8x256xf32>
    %144 = arith.addf %140, %143 : vector<8x256xf32>
    %145 = arith.negf %144 : vector<8x256xf32>
    %146 = math.exp %145 : vector<8x256xf32>
    %cst_75 = arith.constant 1.000000e+00 : f32
    %147 = vector.broadcast %cst_75 : f32 to vector<8x256xf32>
    %148 = arith.addf %147, %146 : vector<8x256xf32>
    %149 = arith.divf %147, %148 : vector<8x256xf32>
    %150 = arith.mulf %144, %149 : vector<8x256xf32>
    %151 = arith.truncf %150 : vector<8x256xf32> to vector<8x256xbf16>
    %c0_76 = arith.constant 0 : index
    %c0_77 = arith.constant 0 : index
    %c0_78 = arith.constant 0 : index
    %152 = vector.load %arg12[%c0_76, %c0_77, %c0_78] : memref<2x256x128xbf16, #tpu.memory_space<vmem>>, vector<1x256x128xbf16>
    %153 = vector.shape_cast %152 : vector<1x256x128xbf16> to vector<256x128xbf16>
    %cst_79 = arith.constant dense<0.000000e+00> : vector<8x128xf32>
    %154 = tpu.matmul %151, %153, %cst_79 {dimension_numbers = #tpu.dot_dimension_numbers<[1], [0], [0], [1], [0, 0, 1, 1], [], []>} : vector<8x256xbf16>, vector<256x128xbf16>, vector<8x128xf32> -> vector<8x128xf32>
    %c0_80 = arith.constant 0 : index
    %c0_81 = arith.constant 0 : index
    %c0_82 = arith.constant 0 : index
    %155 = vector.load %arg13[%c0_80, %c0_81, %c0_82] : memref<2x1x128xf32, #tpu.memory_space<vmem>>, vector<1x1x128xf32>
    %156 = vector.shape_cast %155 : vector<1x1x128xf32> to vector<1x128xf32>
    %157 = vector.broadcast %156 : vector<1x128xf32> to vector<8x128xf32>
    %158 = arith.addf %154, %157 : vector<8x128xf32>
    %159 = arith.addf %136, %158 : vector<8x128xf32>
    %c1 = arith.constant 1 : index
    %c0_83 = arith.constant 0 : index
    %c0_84 = arith.constant 0 : index
    %160 = vector.load %arg2[%c1, %c0_83, %c0_84] : memref<2x1x128xf32, #tpu.memory_space<vmem>>, vector<1x1x128xf32>
    %161 = vector.shape_cast %160 : vector<1x1x128xf32> to vector<1x128xf32>
    %c1_85 = arith.constant 1 : index
    %c0_86 = arith.constant 0 : index
    %c0_87 = arith.constant 0 : index
    %162 = vector.load %arg3[%c1_85, %c0_86, %c0_87] : memref<2x1x128xf32, #tpu.memory_space<vmem>>, vector<1x1x128xf32>
    %163 = vector.shape_cast %162 : vector<1x1x128xf32> to vector<1x128xf32>
    %cst_88 = arith.constant dense<0.000000e+00> : vector<8xf32>
    %164 = vector.multi_reduction <add>, %159, %cst_88 [1] : vector<8x128xf32> to vector<8xf32>
    %165 = vector.shape_cast %164 : vector<8xf32> to vector<8x1xf32>
    %cst_89 = arith.constant 1.280000e+02 : f32
    %166 = vector.broadcast %cst_89 : f32 to vector<8x1xf32>
    %167 = arith.divf %165, %166 : vector<8x1xf32>
    %168 = vector.broadcast %167 : vector<8x1xf32> to vector<8x128xf32>
    %169 = arith.subf %159, %168 : vector<8x128xf32>
    %170 = arith.mulf %169, %169 : vector<8x128xf32>
    %cst_90 = arith.constant dense<0.000000e+00> : vector<8xf32>
    %171 = vector.multi_reduction <add>, %170, %cst_90 [1] : vector<8x128xf32> to vector<8xf32>
    %172 = vector.shape_cast %171 : vector<8xf32> to vector<8x1xf32>
    %cst_91 = arith.constant 1.280000e+02 : f32
    %173 = vector.broadcast %cst_91 : f32 to vector<8x1xf32>
    %174 = arith.divf %172, %173 : vector<8x1xf32>
    %175 = vector.broadcast %167 : vector<8x1xf32> to vector<8x128xf32>
    %176 = arith.subf %159, %175 : vector<8x128xf32>
    %cst_92 = arith.constant 9.99999974E-6 : f32
    %177 = vector.broadcast %cst_92 : f32 to vector<8x1xf32>
    %178 = arith.addf %174, %177 : vector<8x1xf32>
    %179 = math.rsqrt %178 : vector<8x1xf32>
    %180 = vector.broadcast %179 : vector<8x1xf32> to vector<8x128xf32>
    %181 = arith.mulf %176, %180 : vector<8x128xf32>
    %182 = vector.broadcast %161 : vector<1x128xf32> to vector<8x128xf32>
    %183 = arith.mulf %181, %182 : vector<8x128xf32>
    %184 = vector.broadcast %163 : vector<1x128xf32> to vector<8x128xf32>
    %185 = arith.addf %183, %184 : vector<8x128xf32>
    %186 = arith.truncf %185 : vector<8x128xf32> to vector<8x128xbf16>
    %c1_93 = arith.constant 1 : index
    %c0_94 = arith.constant 0 : index
    %c0_95 = arith.constant 0 : index
    %187 = vector.load %arg4[%c1_93, %c0_94, %c0_95] : memref<2x128x384xbf16, #tpu.memory_space<vmem>>, vector<1x128x384xbf16>
    %188 = vector.shape_cast %187 : vector<1x128x384xbf16> to vector<128x384xbf16>
    %cst_96 = arith.constant dense<0.000000e+00> : vector<8x384xf32>
    %189 = tpu.matmul %186, %188, %cst_96 {dimension_numbers = #tpu.dot_dimension_numbers<[1], [0], [0], [1], [0, 0, 1, 1], [], []>} : vector<8x128xbf16>, vector<128x384xbf16>, vector<8x384xf32> -> vector<8x384xf32>
    %c1_97 = arith.constant 1 : index
    %c0_98 = arith.constant 0 : index
    %c0_99 = arith.constant 0 : index
    %190 = vector.load %arg5[%c1_97, %c0_98, %c0_99] : memref<2x1x384xf32, #tpu.memory_space<vmem>>, vector<1x1x384xf32>
    %191 = vector.shape_cast %190 : vector<1x1x384xf32> to vector<1x384xf32>
    %192 = vector.broadcast %191 : vector<1x384xf32> to vector<8x384xf32>
    %193 = arith.addf %189, %192 : vector<8x384xf32>
    %c0_100 = arith.constant 0 : index
    %c0_101 = arith.constant 0 : index
    %194 = vector.load %arg17[%c0_100, %c0_101] : memref<8x384xf32, #tpu.memory_space<vmem>>, vector<8x384xf32>
    tpu.vector_store %arg17[%c0_100, %c0_101], %193 {strides = array<i32>} : memref<8x384xf32, #tpu.memory_space<vmem>>, vector<8x384xf32>,
    %c0_102 = arith.constant 0 : index
    %c0_103 = arith.constant 0 : index
    %195 = vector.load %arg17[%c0_102, %c0_103] : memref<8x384xf32, #tpu.memory_space<vmem>>, vector<8x32xf32>
    %c0_104 = arith.constant 0 : index
    %c32_105 = arith.constant 32 : index
    %196 = vector.load %arg17[%c0_104, %c32_105] : memref<8x384xf32, #tpu.memory_space<vmem>>, vector<8x32xf32>
    %c0_106 = arith.constant 0 : index
    %c64_107 = arith.constant 64 : index
    %197 = vector.load %arg17[%c0_106, %c64_107] : memref<8x384xf32, #tpu.memory_space<vmem>>, vector<8x32xf32>
    %c0_108 = arith.constant 0 : index
    %c96_109 = arith.constant 96 : index
    %198 = vector.load %arg17[%c0_108, %c96_109] : memref<8x384xf32, #tpu.memory_space<vmem>>, vector<8x32xf32>
    %199 = vector.shape_cast %195 : vector<8x32xf32> to vector<1x8x32xf32>
    %200 = vector.shape_cast %196 : vector<8x32xf32> to vector<1x8x32xf32>
    %201 = vector.shape_cast %197 : vector<8x32xf32> to vector<1x8x32xf32>
    %202 = vector.shape_cast %198 : vector<8x32xf32> to vector<1x8x32xf32>
    %203 = tpu.concatenate %199, %200, %201, %202 in 0 : vector<1x8x32xf32>, vector<1x8x32xf32>, vector<1x8x32xf32>, vector<1x8x32xf32> -> vector<4x8x32xf32>
    %204 = arith.truncf %203 : vector<4x8x32xf32> to vector<4x8x32xbf16>
    %c0_110 = arith.constant 0 : index
    %c128_111 = arith.constant 128 : index
    %205 = vector.load %arg17[%c0_110, %c128_111] : memref<8x384xf32, #tpu.memory_space<vmem>>, vector<8x32xf32>
    %c0_112 = arith.constant 0 : index
    %c160_113 = arith.constant 160 : index
    %206 = vector.load %arg17[%c0_112, %c160_113] : memref<8x384xf32, #tpu.memory_space<vmem>>, vector<8x32xf32>
    %c0_114 = arith.constant 0 : index
    %c192_115 = arith.constant 192 : index
    %207 = vector.load %arg17[%c0_114, %c192_115] : memref<8x384xf32, #tpu.memory_space<vmem>>, vector<8x32xf32>
    %c0_116 = arith.constant 0 : index
    %c224_117 = arith.constant 224 : index
    %208 = vector.load %arg17[%c0_116, %c224_117] : memref<8x384xf32, #tpu.memory_space<vmem>>, vector<8x32xf32>
    %209 = vector.shape_cast %205 : vector<8x32xf32> to vector<1x8x32xf32>
    %210 = vector.shape_cast %206 : vector<8x32xf32> to vector<1x8x32xf32>
    %211 = vector.shape_cast %207 : vector<8x32xf32> to vector<1x8x32xf32>
    %212 = vector.shape_cast %208 : vector<8x32xf32> to vector<1x8x32xf32>
    %213 = tpu.concatenate %209, %210, %211, %212 in 0 : vector<1x8x32xf32>, vector<1x8x32xf32>, vector<1x8x32xf32>, vector<1x8x32xf32> -> vector<4x8x32xf32>
    %214 = arith.truncf %213 : vector<4x8x32xf32> to vector<4x8x32xbf16>
    %c0_118 = arith.constant 0 : index
    %c256_119 = arith.constant 256 : index
    %215 = vector.load %arg17[%c0_118, %c256_119] : memref<8x384xf32, #tpu.memory_space<vmem>>, vector<8x32xf32>
    %c0_120 = arith.constant 0 : index
    %c288_121 = arith.constant 288 : index
    %216 = vector.load %arg17[%c0_120, %c288_121] : memref<8x384xf32, #tpu.memory_space<vmem>>, vector<8x32xf32>
    %c0_122 = arith.constant 0 : index
    %c320_123 = arith.constant 320 : index
    %217 = vector.load %arg17[%c0_122, %c320_123] : memref<8x384xf32, #tpu.memory_space<vmem>>, vector<8x32xf32>
    %c0_124 = arith.constant 0 : index
    %c352_125 = arith.constant 352 : index
    %218 = vector.load %arg17[%c0_124, %c352_125] : memref<8x384xf32, #tpu.memory_space<vmem>>, vector<8x32xf32>
    %219 = vector.shape_cast %215 : vector<8x32xf32> to vector<1x8x32xf32>
    %220 = vector.shape_cast %216 : vector<8x32xf32> to vector<1x8x32xf32>
    %221 = vector.shape_cast %217 : vector<8x32xf32> to vector<1x8x32xf32>
    %222 = vector.shape_cast %218 : vector<8x32xf32> to vector<1x8x32xf32>
    %223 = tpu.concatenate %219, %220, %221, %222 in 0 : vector<1x8x32xf32>, vector<1x8x32xf32>, vector<1x8x32xf32>, vector<1x8x32xf32> -> vector<4x8x32xf32>
    %224 = arith.truncf %223 : vector<4x8x32xf32> to vector<4x8x32xbf16>
    "tpu.trace_start"() <{level = 10 : i32, message = "htd,hsd->hts"}> : () -> ()
    %cst_126 = arith.constant dense<0.000000e+00> : vector<4x8x8xf32>
    %225 = tpu.matmul %204, %214, %cst_126 {dimension_numbers = #tpu.dot_dimension_numbers<[2], [2], [1], [1], [0, 0, 0, 1, 1, 1], [0], [0]>} : vector<4x8x32xbf16>, vector<4x8x32xbf16>, vector<4x8x8xf32> -> vector<4x8x8xf32>
    "tpu.trace_stop"() : () -> ()
    %226 = vector.shape_cast %7 : vector<8x8xf32> to vector<1x8x8xf32>
    %227 = vector.broadcast %226 : vector<1x8x8xf32> to vector<4x8x8xf32>
    %228 = arith.addf %225, %227 : vector<4x8x8xf32>
    %cst_127 = arith.constant dense<0xFF800000> : vector<4x8xf32>
    %229 = vector.multi_reduction <maximumf>, %228, %cst_127 [2] : vector<4x8x8xf32> to vector<4x8xf32>
    %230 = vector.shape_cast %229 : vector<4x8xf32> to vector<4x8x1xf32>
    %231 = vector.broadcast %230 : vector<4x8x1xf32> to vector<4x8x8xf32>
    %232 = arith.subf %228, %231 : vector<4x8x8xf32>
    %233 = math.exp %232 : vector<4x8x8xf32>
    %cst_128 = arith.constant dense<0.000000e+00> : vector<4x8xf32>
    %234 = vector.multi_reduction <add>, %233, %cst_128 [2] : vector<4x8x8xf32> to vector<4x8xf32>
    %235 = vector.shape_cast %234 : vector<4x8xf32> to vector<4x8x1xf32>
    %236 = tpu.reciprocal %235 {approx = true} : vector<4x8x1xf32> -> vector<4x8x1xf32>
    %237 = vector.broadcast %236 : vector<4x8x1xf32> to vector<4x8x8xf32>
    %238 = arith.mulf %233, %237 : vector<4x8x8xf32>
    %239 = arith.truncf %238 : vector<4x8x8xf32> to vector<4x8x8xbf16>
    "tpu.trace_start"() <{level = 10 : i32, message = "hts,hsd->htd"}> : () -> ()
    %cst_129 = arith.constant dense<0.000000e+00> : vector<4x8x32xf32>
    %240 = tpu.matmul %239, %224, %cst_129 {dimension_numbers = #tpu.dot_dimension_numbers<[2], [1], [1], [2], [0, 0, 0, 1, 1, 2], [0], [0]>} : vector<4x8x8xbf16>, vector<4x8x32xbf16>, vector<4x8x32xf32> -> vector<4x8x32xf32>
    "tpu.trace_stop"() : () -> ()
    %241 = vector.extract_strided_slice %240 {offsets = [0, 0, 0], sizes = [1, 8, 32], strides = [1, 1, 1]} : vector<4x8x32xf32> to vector<1x8x32xf32>
    %242 = vector.shape_cast %241 : vector<1x8x32xf32> to vector<8x32xf32>
    %c0_130 = arith.constant 0 : index
    %c0_131 = arith.constant 0 : index
    %243 = vector.load %arg18[%c0_130, %c0_131] : memref<8x128xf32, #tpu.memory_space<vmem>>, vector<8x32xf32>
    tpu.vector_store %arg18[%c0_130, %c0_131], %242 {strides = array<i32>} : memref<8x128xf32, #tpu.memory_space<vmem>>, vector<8x32xf32>,
    %244 = vector.extract_strided_slice %240 {offsets = [1, 0, 0], sizes = [1, 8, 32], strides = [1, 1, 1]} : vector<4x8x32xf32> to vector<1x8x32xf32>
    %245 = vector.shape_cast %244 : vector<1x8x32xf32> to vector<8x32xf32>
    %c0_132 = arith.constant 0 : index
    %c32_133 = arith.constant 32 : index
    %246 = vector.load %arg18[%c0_132, %c32_133] : memref<8x128xf32, #tpu.memory_space<vmem>>, vector<8x32xf32>
    tpu.vector_store %arg18[%c0_132, %c32_133], %245 {strides = array<i32>} : memref<8x128xf32, #tpu.memory_space<vmem>>, vector<8x32xf32>,
    %247 = vector.extract_strided_slice %240 {offsets = [2, 0, 0], sizes = [1, 8, 32], strides = [1, 1, 1]} : vector<4x8x32xf32> to vector<1x8x32xf32>
    %248 = vector.shape_cast %247 : vector<1x8x32xf32> to vector<8x32xf32>
    %c0_134 = arith.constant 0 : index
    %c64_135 = arith.constant 64 : index
    %249 = vector.load %arg18[%c0_134, %c64_135] : memref<8x128xf32, #tpu.memory_space<vmem>>, vector<8x32xf32>
    tpu.vector_store %arg18[%c0_134, %c64_135], %248 {strides = array<i32>} : memref<8x128xf32, #tpu.memory_space<vmem>>, vector<8x32xf32>,
    %250 = vector.extract_strided_slice %240 {offsets = [3, 0, 0], sizes = [1, 8, 32], strides = [1, 1, 1]} : vector<4x8x32xf32> to vector<1x8x32xf32>
    %251 = vector.shape_cast %250 : vector<1x8x32xf32> to vector<8x32xf32>
    %c0_136 = arith.constant 0 : index
    %c96_137 = arith.constant 96 : index
    %252 = vector.load %arg18[%c0_136, %c96_137] : memref<8x128xf32, #tpu.memory_space<vmem>>, vector<8x32xf32>
    tpu.vector_store %arg18[%c0_136, %c96_137], %251 {strides = array<i32>} : memref<8x128xf32, #tpu.memory_space<vmem>>, vector<8x32xf32>,
    %c0_138 = arith.constant 0 : index
    %c0_139 = arith.constant 0 : index
    %253 = vector.load %arg18[%c0_138, %c0_139] : memref<8x128xf32, #tpu.memory_space<vmem>>, vector<8x128xf32>
    %254 = arith.truncf %253 : vector<8x128xf32> to vector<8x128xbf16>
    %c1_140 = arith.constant 1 : index
    %c0_141 = arith.constant 0 : index
    %c0_142 = arith.constant 0 : index
    %255 = vector.load %arg6[%c1_140, %c0_141, %c0_142] : memref<2x128x128xbf16, #tpu.memory_space<vmem>>, vector<1x128x128xbf16>
    %256 = vector.shape_cast %255 : vector<1x128x128xbf16> to vector<128x128xbf16>
    %cst_143 = arith.constant dense<0.000000e+00> : vector<8x128xf32>
    %257 = tpu.matmul %254, %256, %cst_143 {dimension_numbers = #tpu.dot_dimension_numbers<[1], [0], [0], [1], [0, 0, 1, 1], [], []>} : vector<8x128xbf16>, vector<128x128xbf16>, vector<8x128xf32> -> vector<8x128xf32>
    %c1_144 = arith.constant 1 : index
    %c0_145 = arith.constant 0 : index
    %c0_146 = arith.constant 0 : index
    %258 = vector.load %arg7[%c1_144, %c0_145, %c0_146] : memref<2x1x128xf32, #tpu.memory_space<vmem>>, vector<1x1x128xf32>
    %259 = vector.shape_cast %258 : vector<1x1x128xf32> to vector<1x128xf32>
    %260 = vector.broadcast %259 : vector<1x128xf32> to vector<8x128xf32>
    %261 = arith.addf %257, %260 : vector<8x128xf32>
    %262 = arith.addf %159, %261 : vector<8x128xf32>
    %c1_147 = arith.constant 1 : index
    %c0_148 = arith.constant 0 : index
    %c0_149 = arith.constant 0 : index
    %263 = vector.load %arg8[%c1_147, %c0_148, %c0_149] : memref<2x1x128xf32, #tpu.memory_space<vmem>>, vector<1x1x128xf32>
    %264 = vector.shape_cast %263 : vector<1x1x128xf32> to vector<1x128xf32>
    %c1_150 = arith.constant 1 : index
    %c0_151 = arith.constant 0 : index
    %c0_152 = arith.constant 0 : index
    %265 = vector.load %arg9[%c1_150, %c0_151, %c0_152] : memref<2x1x128xf32, #tpu.memory_space<vmem>>, vector<1x1x128xf32>
    %266 = vector.shape_cast %265 : vector<1x1x128xf32> to vector<1x128xf32>
    %cst_153 = arith.constant dense<0.000000e+00> : vector<8xf32>
    %267 = vector.multi_reduction <add>, %262, %cst_153 [1] : vector<8x128xf32> to vector<8xf32>
    %268 = vector.shape_cast %267 : vector<8xf32> to vector<8x1xf32>
    %cst_154 = arith.constant 1.280000e+02 : f32
    %269 = vector.broadcast %cst_154 : f32 to vector<8x1xf32>
    %270 = arith.divf %268, %269 : vector<8x1xf32>
    %271 = vector.broadcast %270 : vector<8x1xf32> to vector<8x128xf32>
    %272 = arith.subf %262, %271 : vector<8x128xf32>
    %273 = arith.mulf %272, %272 : vector<8x128xf32>
    %cst_155 = arith.constant dense<0.000000e+00> : vector<8xf32>
    %274 = vector.multi_reduction <add>, %273, %cst_155 [1] : vector<8x128xf32> to vector<8xf32>
    %275 = vector.shape_cast %274 : vector<8xf32> to vector<8x1xf32>
    %cst_156 = arith.constant 1.280000e+02 : f32
    %276 = vector.broadcast %cst_156 : f32 to vector<8x1xf32>
    %277 = arith.divf %275, %276 : vector<8x1xf32>
    %278 = vector.broadcast %270 : vector<8x1xf32> to vector<8x128xf32>
    %279 = arith.subf %262, %278 : vector<8x128xf32>
    %cst_157 = arith.constant 9.99999974E-6 : f32
    %280 = vector.broadcast %cst_157 : f32 to vector<8x1xf32>
    %281 = arith.addf %277, %280 : vector<8x1xf32>
    %282 = math.rsqrt %281 : vector<8x1xf32>
    %283 = vector.broadcast %282 : vector<8x1xf32> to vector<8x128xf32>
    %284 = arith.mulf %279, %283 : vector<8x128xf32>
    %285 = vector.broadcast %264 : vector<1x128xf32> to vector<8x128xf32>
    %286 = arith.mulf %284, %285 : vector<8x128xf32>
    %287 = vector.broadcast %266 : vector<1x128xf32> to vector<8x128xf32>
    %288 = arith.addf %286, %287 : vector<8x128xf32>
    %289 = arith.truncf %288 : vector<8x128xf32> to vector<8x128xbf16>
    %c1_158 = arith.constant 1 : index
    %c0_159 = arith.constant 0 : index
    %c0_160 = arith.constant 0 : index
    %290 = vector.load %arg10[%c1_158, %c0_159, %c0_160] : memref<2x128x256xbf16, #tpu.memory_space<vmem>>, vector<1x128x256xbf16>
    %291 = vector.shape_cast %290 : vector<1x128x256xbf16> to vector<128x256xbf16>
    %cst_161 = arith.constant dense<0.000000e+00> : vector<8x256xf32>
    %292 = tpu.matmul %289, %291, %cst_161 {dimension_numbers = #tpu.dot_dimension_numbers<[1], [0], [0], [1], [0, 0, 1, 1], [], []>} : vector<8x128xbf16>, vector<128x256xbf16>, vector<8x256xf32> -> vector<8x256xf32>
    %c1_162 = arith.constant 1 : index
    %c0_163 = arith.constant 0 : index
    %c0_164 = arith.constant 0 : index
    %293 = vector.load %arg11[%c1_162, %c0_163, %c0_164] : memref<2x1x256xf32, #tpu.memory_space<vmem>>, vector<1x1x256xf32>
    %294 = vector.shape_cast %293 : vector<1x1x256xf32> to vector<1x256xf32>
    %295 = vector.broadcast %294 : vector<1x256xf32> to vector<8x256xf32>
    %296 = arith.addf %292, %295 : vector<8x256xf32>
    %297 = arith.negf %296 : vector<8x256xf32>
    %298 = math.exp %297 : vector<8x256xf32>
    %cst_165 = arith.constant 1.000000e+00 : f32
    %299 = vector.broadcast %cst_165 : f32 to vector<8x256xf32>
    %300 = arith.addf %299, %298 : vector<8x256xf32>
    %301 = arith.divf %299, %300 : vector<8x256xf32>
    %302 = arith.mulf %296, %301 : vector<8x256xf32>
    %303 = arith.truncf %302 : vector<8x256xf32> to vector<8x256xbf16>
    %c1_166 = arith.constant 1 : index
    %c0_167 = arith.constant 0 : index
    %c0_168 = arith.constant 0 : index
    %304 = vector.load %arg12[%c1_166, %c0_167, %c0_168] : memref<2x256x128xbf16, #tpu.memory_space<vmem>>, vector<1x256x128xbf16>
    %305 = vector.shape_cast %304 : vector<1x256x128xbf16> to vector<256x128xbf16>
    %cst_169 = arith.constant dense<0.000000e+00> : vector<8x128xf32>
    %306 = tpu.matmul %303, %305, %cst_169 {dimension_numbers = #tpu.dot_dimension_numbers<[1], [0], [0], [1], [0, 0, 1, 1], [], []>} : vector<8x256xbf16>, vector<256x128xbf16>, vector<8x128xf32> -> vector<8x128xf32>
    %c1_170 = arith.constant 1 : index
    %c0_171 = arith.constant 0 : index
    %c0_172 = arith.constant 0 : index
    %307 = vector.load %arg13[%c1_170, %c0_171, %c0_172] : memref<2x1x128xf32, #tpu.memory_space<vmem>>, vector<1x1x128xf32>
    %308 = vector.shape_cast %307 : vector<1x1x128xf32> to vector<1x128xf32>
    %309 = vector.broadcast %308 : vector<1x128xf32> to vector<8x128xf32>
    %310 = arith.addf %306, %309 : vector<8x128xf32>
    %311 = arith.addf %288, %310 : vector<8x128xf32>
    %312 = arith.truncf %311 : vector<8x128xf32> to vector<8x128xbf16>
    %c0_173 = arith.constant 0 : index
    %c0_174 = arith.constant 0 : index
    %313 = vector.load %arg14[%c0_173, %c0_174] : memref<128x512xbf16, #tpu.memory_space<vmem>>, vector<128x512xbf16>
    %cst_175 = arith.constant dense<0.000000e+00> : vector<8x512xf32>
    %314 = tpu.matmul %312, %313, %cst_175 {dimension_numbers = #tpu.dot_dimension_numbers<[1], [0], [0], [1], [0, 0, 1, 1], [], []>} : vector<8x128xbf16>, vector<128x512xbf16>, vector<8x512xf32> -> vector<8x512xf32>
    %c0_176 = arith.constant 0 : index
    %c0_177 = arith.constant 0 : index
    %315 = vector.load %arg15[%c0_176, %c0_177] : memref<1x512xf32, #tpu.memory_space<vmem>>, vector<1x512xf32>
    %316 = vector.broadcast %315 : vector<1x512xf32> to vector<8x512xf32>
    %317 = arith.addf %314, %316 : vector<8x512xf32>
    %c0_178 = arith.constant 0 : index
    %c0_179 = arith.constant 0 : index
    %c0_180 = arith.constant 0 : index
    %318 = vector.load %arg16[%c0_178, %c0_179, %c0_180] : memref<1x8x512xf32, #tpu.memory_space<vmem>>, vector<1x8x512xf32>
    %319 = vector.shape_cast %318 : vector<1x8x512xf32> to vector<8x512xf32>
    %320 = vector.shape_cast %317 : vector<8x512xf32> to vector<1x8x512xf32>
    tpu.vector_store %arg16[%c0_178, %c0_179, %c0_180], %320 {strides = array<i32>} : memref<1x8x512xf32, #tpu.memory_space<vmem>>, vector<1x8x512xf32>,
    return
  }
  func.func @transform_0(%arg0: i32) -> (i32, i32, i32) {
    %c0_i32 = arith.constant 0 : i32
    %c0_i32_0 = arith.constant 0 : i32
    %c0_i32_1 = arith.constant 0 : i32
    return %arg0, %c0_i32, %c0_i32_0 : i32, i32, i32
  }
  func.func @transform_1(%arg0: i32) -> (i32, i32, i32) {
    %c0_i32 = arith.constant 0 : i32
    %c0_i32_0 = arith.constant 0 : i32
    %c0_i32_1 = arith.constant 0 : i32
    %c0_i32_2 = arith.constant 0 : i32
    return %c0_i32, %c0_i32_0, %c0_i32_1 : i32, i32, i32
  }
  func.func @transform_2(%arg0: i32) -> (i32, i32, i32) {
    %c0_i32 = arith.constant 0 : i32
    %c0_i32_0 = arith.constant 0 : i32
    %c0_i32_1 = arith.constant 0 : i32
    %c0_i32_2 = arith.constant 0 : i32
    return %c0_i32, %c0_i32_0, %c0_i32_1 : i32, i32, i32
  }
  func.func @transform_3(%arg0: i32) -> (i32, i32, i32) {
    %c0_i32 = arith.constant 0 : i32
    %c0_i32_0 = arith.constant 0 : i32
    %c0_i32_1 = arith.constant 0 : i32
    %c0_i32_2 = arith.constant 0 : i32
    return %c0_i32, %c0_i32_0, %c0_i32_1 : i32, i32, i32
  }
  func.func @transform_4(%arg0: i32) -> (i32, i32, i32) {
    %c0_i32 = arith.constant 0 : i32
    %c0_i32_0 = arith.constant 0 : i32
    %c0_i32_1 = arith.constant 0 : i32
    %c0_i32_2 = arith.constant 0 : i32
    return %c0_i32, %c0_i32_0, %c0_i32_1 : i32, i32, i32
  }
  func.func @transform_5(%arg0: i32) -> (i32, i32, i32) {
    %c0_i32 = arith.constant 0 : i32
    %c0_i32_0 = arith.constant 0 : i32
    %c0_i32_1 = arith.constant 0 : i32
    %c0_i32_2 = arith.constant 0 : i32
    return %c0_i32, %c0_i32_0, %c0_i32_1 : i32, i32, i32
  }
  func.func @transform_6(%arg0: i32) -> (i32, i32, i32) {
    %c0_i32 = arith.constant 0 : i32
    %c0_i32_0 = arith.constant 0 : i32
    %c0_i32_1 = arith.constant 0 : i32
    %c0_i32_2 = arith.constant 0 : i32
    return %c0_i32, %c0_i32_0, %c0_i32_1 : i32, i32, i32
  }
  func.func @transform_7(%arg0: i32) -> (i32, i32, i32) {
    %c0_i32 = arith.constant 0 : i32
    %c0_i32_0 = arith.constant 0 : i32
    %c0_i32_1 = arith.constant 0 : i32
    %c0_i32_2 = arith.constant 0 : i32
    return %c0_i32, %c0_i32_0, %c0_i32_1 : i32, i32, i32
  }
  func.func @transform_8(%arg0: i32) -> (i32, i32, i32) {
    %c0_i32 = arith.constant 0 : i32
    %c0_i32_0 = arith.constant 0 : i32
    %c0_i32_1 = arith.constant 0 : i32
    %c0_i32_2 = arith.constant 0 : i32
    return %c0_i32, %c0_i32_0, %c0_i32_1 : i32, i32, i32
  }
  func.func @transform_9(%arg0: i32) -> (i32, i32, i32) {
    %c0_i32 = arith.constant 0 : i32
    %c0_i32_0 = arith.constant 0 : i32
    %c0_i32_1 = arith.constant 0 : i32
    %c0_i32_2 = arith.constant 0 : i32
    return %c0_i32, %c0_i32_0, %c0_i32_1 : i32, i32, i32
  }
  func.func @transform_10(%arg0: i32) -> (i32, i32, i32) {
    %c0_i32 = arith.constant 0 : i32
    %c0_i32_0 = arith.constant 0 : i32
    %c0_i32_1 = arith.constant 0 : i32
    %c0_i32_2 = arith.constant 0 : i32
    return %c0_i32, %c0_i32_0, %c0_i32_1 : i32, i32, i32
  }
  func.func @transform_11(%arg0: i32) -> (i32, i32, i32) {
    %c0_i32 = arith.constant 0 : i32
    %c0_i32_0 = arith.constant 0 : i32
    %c0_i32_1 = arith.constant 0 : i32
    %c0_i32_2 = arith.constant 0 : i32
    return %c0_i32, %c0_i32_0, %c0_i32_1 : i32, i32, i32
  }
  func.func @transform_12(%arg0: i32) -> (i32, i32, i32) {
    %c0_i32 = arith.constant 0 : i32
    %c0_i32_0 = arith.constant 0 : i32
    %c0_i32_1 = arith.constant 0 : i32
    %c0_i32_2 = arith.constant 0 : i32
    return %c0_i32, %c0_i32_0, %c0_i32_1 : i32, i32, i32
  }
  func.func @transform_13(%arg0: i32) -> (i32, i32) {
    %c0_i32 = arith.constant 0 : i32
    %c0_i32_0 = arith.constant 0 : i32
    %c0_i32_1 = arith.constant 0 : i32
    return %c0_i32, %c0_i32_0 : i32, i32
  }
  func.func @transform_14(%arg0: i32) -> (i32, i32) {
    %c0_i32 = arith.constant 0 : i32
    %c0_i32_0 = arith.constant 0 : i32
    %c0_i32_1 = arith.constant 0 : i32
    return %c0_i32, %c0_i32_0 : i32, i32
  }
  func.func @transform_15(%arg0: i32) -> (i32, i32, i32) {
    %c0_i32 = arith.constant 0 : i32
    %c0_i32_0 = arith.constant 0 : i32
    %c0_i32_1 = arith.constant 0 : i32
    return %arg0, %c0_i32, %c0_i32_0 : i32, i32, i32
  }
}

</mosaic_0001>

<bundles_post_ra>
// kernel: tpu_custom_call.1
= control target key start
LH: loop header
LB: loop body
LE: loop exit
PB: predicated region body
PF: predicated region fallthrough
CT: control target
= control target key end

     0   :  { %s5162_s0 = inlined_call_operand.hbm [shape: f32[2,8,128], index: 0, kind: input, shape index: {}]   ;;  %s5163_s1 = inlined_call_operand.hbm [shape: f32[2,1,128], index: 1, kind: input, shape index: {}]   ;;  %s5164_s2 = inlined_call_operand.hbm [shape: f32[2,1,128], index: 2, kind: input, shape index: {}]   ;;  %s5165_s3 = inlined_call_operand.hbm [shape: bf16[2,128,384], index: 3, kind: input, shape index: {}]   ;;  %s5166_s4 = inlined_call_operand.hbm [shape: f32[2,1,384], index: 4, kind: input, shape index: {}]   ;;  %s5167_s5 = inlined_call_operand.hbm [shape: bf16[2,128,128], index: 5, kind: input, shape index: {}]   ;;  %s5168_s6 = inlined_call_operand.hbm [shape: f32[2,1,128], index: 6, kind: input, shape index: {}]   ;;  %s5169_s7 = inlined_call_operand.hbm [shape: f32[2,1,128], index: 7, kind: input, shape index: {}]   ;;  %s5170_s8 = inlined_call_operand.hbm [shape: f32[2,1,128], index: 8, kind: input, shape index: {}]   ;;  %s5171_s9 = inlined_call_operand.hbm [shape: bf16[2,128,256], index: 9, kind: input, shape index: {}]   ;;  %s5172_s10 = inlined_call_operand.vmem [shape: f32[2,1,256], index: 10, kind: input, shape index: {}]   ;;  %s5173_s11 = inlined_call_operand.hbm [shape: bf16[2,256,128], index: 11, kind: input, shape index: {}]   ;;  %s5174_s12 = inlined_call_operand.vmem [shape: f32[2,1,128], index: 12, kind: input, shape index: {}]   ;;  %s5175_s13 = inlined_call_operand.hbm [shape: bf16[128,512], index: 13, kind: input, shape index: {}]   ;;  %s5176_s14 = inlined_call_operand.vmem [shape: f32[1,512], index: 14, kind: input, shape index: {}]   ;;  %s5177_s15 = inlined_call_operand.hbm [shape: f32[2,8,512], index: 15, kind: output, shape index: {}]  }
   0x1   :  { %5188 = sst [smem:[#allocation35_spill]] %s5162_s0 }
   0x2   :  { %5189 = sst [smem:[#allocation36_spill]] %s5163_s1 }
   0x3   :  { %5190 = sst [smem:[#allocation37_spill]] %s5164_s2 }
   0x4   :  { %5191 = sst [smem:[#allocation38_spill]] %s5165_s3 }
   0x5   :  { %5192 = sst [smem:[#allocation39_spill]] %s5166_s4 }
   0x6   :  { %5193 = sst [smem:[#allocation40_spill]] %s5172_s10 }
   0x7   :  { %5194 = sst [smem:[#allocation41_spill]] %s5174_s12 }
   0x8   :  { %5195 = sst [smem:[#allocation42_spill]] %s5176_s14 }
   0x9   :  { %5196 = sst [smem:[#allocation43_spill]] %s5177_s15 }
   0xa   :  { %20 = vsyncpa [#allocation5], 0 }
   0xb   :  { %22 = vsyncpa [#allocation5 + $0x1], 0 }
   0xc   :  { %23 = vsyncpa [#allocation8], 0 }
   0xd   :  { %24 = vsyncpa [#allocation11], 0 }
   0xe   :  { %25 = vsyncpa [#allocation14], 0 }
   0xf   :  { %26 = vsyncpa [#allocation17], 0 }
  0x10   :  { %27 = vsyncpa [#allocation20], 0 }
  0x11   :  { %28 = vsyncpa [#allocation23], 0 }
  0x12   :  { %29 = vsyncpa [#allocation6], 0 }
  0x13   :  { %31 = vsyncpa [#allocation6 + $0x1], 0  ;;  %s4730_s18 = smov 0   ;;  %s4732_s19 = smov 0  }
  0x14   :  { %s4734_s20 = smov 0   ;;  %s4736_s21 = smov 0  }
  0x15 LB: > { %s5197_s1 = sld [smem:[#allocation36_spill]]  ;;  %s4754_s25 = sadd.s32 4294967295, %s4621_s21   ;;  %s4621_s21 = sphi %s4736_s21, %s5224_s21   ;;  %s4617_s20 = sphi %s4734_s20, %s5223_s20   ;;  %s4613_s19 = sphi %s4732_s19, %s5222_s19   ;;  %s4609_s18 = sphi %s4730_s18, %s5221_s18  }
  0x16   : > { %5198 = sst [smem:[#allocation33_spill]] %s4754_s25  ;;  %p3071_p0 = scmp.ge.s32.totalorder %s4621_s21, 1 }
  0x17   : > { %p58_p1 = scmp.eq.s32.totalorder %s4754_s25, 0  ;;  %p388_p2 = scmp.lt.s32.totalorder %s4621_s21, 3 }
  0x18   : > { %s4623_s27 = smov [#allocation7]   ;;  %s5201_s3 = sld [smem:[#allocation38_spill]] }
  0x19   : > { %p4759_p3 = pnand %p3071_p0, %p388_p2  ;;  %s401_s28 = sshll.u32 %s4623_s27, 4  ;;  %s402_s28 = int_to_ptr.vmem [resolvable:$true] %s401_s28 }
  0x1a   : > { %s4624_s22 = smov [#allocation10]   ;;  %s4625_s27 = smov 16  }
  0x1b   : > { %s399_s24 = sshll.u32 %s5197_s1, 4  ;;  %p3976_p4 = pneg %p4759_p3  ;;  %s400_s24 = int_to_ptr.hbm [resolvable:$true] %s399_s24 }
  0x1c   : > { %s5199_s26 = scalar_select %p4759_p3, 1, 0 }
  0x1d   : > { %p4771_p6 = pnand %p3976_p4, %p58_p1  ;;  %s429_s23 = sshll.u32 %s4624_s22, 4  ;;  %s430_s23 = int_to_ptr.vmem [resolvable:$true] %s429_s23 }
  0x1e   : > { %5200 = sst [smem:[#allocation34_spill]] %s5199_s26  ;;  %s427_s16 = sshll.u32 %s5201_s3, 4  ;;  %s428_s16 = int_to_ptr.hbm [resolvable:$true] %s427_s16 }
  0x1f   : > { %s4626_s1 = smov 1   ;;  %s4627_s29 = smov 192  }
  0x20   : > { %3979 = dma.hbm_to_vmem [thread:$0]  (!%p4771_p6), %s400_s24, 32, %s402_s28, [#allocation8], %s4625_s27, %s4625_s27, %s4626_s1  }
  0x21   : > { %s4628_s30 = smov 12   ;;  %s455_s14 = sshll.u32 %s5167_s5, 4  ;;  %s456_s14 = int_to_ptr.hbm [resolvable:$true] %s455_s14 }
  0x22   : > { %3985 = dma.hbm_to_vmem [thread:$0]  (!%p4771_p6), %s428_s16, 6144, %s430_s23, [#allocation11], %s4627_s29, %s4627_s29, %s4628_s30  }
  0x23   : > { %s4629_s22 = smov [#allocation13]   ;;  %s483_s0 = sshll.u32 %s5169_s7, 4  ;;  %s484_s0 = int_to_ptr.hbm [resolvable:$true] %s483_s0 }
  0x24   : > { %s457_s12 = sshll.u32 %s4629_s22, 4  ;;  %s5186_s25 = smov 64   ;;  %s458_s12 = int_to_ptr.vmem [resolvable:$true] %s457_s12 }
  0x25   : > { %s5187_s24 = smov 4   ;;  %s4632_s3 = smov [#allocation16]  }
  0x26   : > { %3991 = dma.hbm_to_vmem [thread:$0]  (!%p4771_p6), %s456_s14, 2048, %s458_s12, [#allocation14], %s5186_s25, %s5186_s25, %s5187_s24  }
  0x27   : > { %s485_s15 = sshll.u32 %s4632_s3, 4  ;;  %s511_s23 = sshll.u32 %s5171_s9, 4  ;;  %s486_s15 = int_to_ptr.vmem [resolvable:$true] %s485_s15  ;;  %s512_s23 = int_to_ptr.hbm [resolvable:$true] %s511_s23 }
  0x28   : > { %3997 = dma.hbm_to_vmem [thread:$0]  (!%p4771_p6), %s484_s0, 32, %s486_s15, [#allocation17], %s4625_s27, %s4625_s27, %s4626_s1  }
  0x29   : > { %s4633_s10 = smov [#allocation19]   ;;  %s5203_s2 = sld [smem:[#allocation37_spill]] }
  0x2a   : > { %s513_s26 = sshll.u32 %s4633_s10, 4  ;;  %s4634_s30 = smov 128   ;;  %s514_s26 = int_to_ptr.vmem [resolvable:$true] %s513_s26 }
  0x2b   : > { %s4635_s22 = smov 8   ;;  %s4636_s3 = smov [#allocation9]  }
  0x2c   : > { %4003 = dma.hbm_to_vmem [thread:$0]  (!%p4771_p6), %s512_s23, 4096, %s514_s26, [#allocation20], %s4634_s30, %s4634_s30, %s4635_s22  }
  0x2d   : > { %s415_s28 = sshll.u32 %s4636_s3, 4  ;;  %s5204_s4 = sld [smem:[#allocation39_spill]]  ;;  %s416_s28 = int_to_ptr.vmem [resolvable:$true] %s415_s28 }
  0x2e   : > { %s4637_s0 = smov [#allocation12]   ;;  %s469_s26 = sshll.u32 %s5168_s6, 4  ;;  %s470_s26 = int_to_ptr.hbm [resolvable:$true] %s469_s26 }
  0x2f   : > { %s413_s14 = sshll.u32 %s5203_s2, 4  ;;  %s443_s15 = sshll.u32 %s4637_s0, 4  ;;  %s414_s14 = int_to_ptr.hbm [resolvable:$true] %s413_s14  ;;  %s444_s15 = int_to_ptr.vmem [resolvable:$true] %s443_s15 }
  0x30   : > { %3982 = dma.hbm_to_vmem [thread:$0]  (!%p4771_p6), %s414_s14, 32, %s416_s28, [#allocation8], %s4625_s27, %s4625_s27, %s4626_s1  }
  0x31   : > { %s4638_s29 = smov 48   ;;  %s4639_s12 = smov 3  }
  0x32   : > { %s4640_s25 = smov [#allocation15]   ;;  %s497_s14 = sshll.u32 %s5170_s8, 4  ;;  %s498_s14 = int_to_ptr.hbm [resolvable:$true] %s497_s14 }
  0x33   : > { %s441_s24 = sshll.u32 %s5204_s4, 4  ;;  %s471_s30 = sshll.u32 %s4640_s25, 4  ;;  %s442_s24 = int_to_ptr.hbm [resolvable:$true] %s441_s24  ;;  %s472_s30 = int_to_ptr.vmem [resolvable:$true] %s471_s30 }
  0x34   : > { %3988 = dma.hbm_to_vmem [thread:$0]  (!%p4771_p6), %s442_s24, 96, %s444_s15, [#allocation11], %s4638_s29, %s4638_s29, %s4639_s12  }
  0x35   : > { %3994 = dma.hbm_to_vmem [thread:$0]  (!%p4771_p6), %s470_s26, 32, %s472_s30, [#allocation14], %s4625_s27, %s4625_s27, %s4626_s1  }
  0x36   : > { %s528_s0 = sshll.u32 %s5173_s11, 4  ;;  %s4641_s24 = smov [#allocation18]   ;;  %s529_s0 = int_to_ptr.hbm [resolvable:$true] %s528_s0 }
  0x37   : > { %s499_s15 = sshll.u32 %s4641_s24, 4  ;;  %s4642_s10 = smov [#allocation21]   ;;  %s500_s15 = int_to_ptr.vmem [resolvable:$true] %s499_s15 }
  0x38   : > { %4000 = dma.hbm_to_vmem [thread:$0]  (!%p4771_p6), %s498_s14, 32, %s500_s15, [#allocation17], %s4625_s27, %s4625_s27, %s4626_s1  }
  0x39   : > { %s530_s23 = sshll.u32 %s4642_s10, 4  ;;  %s545_s12 = sshll.u32 %s5175_s13, 4  ;;  %s531_s23 = int_to_ptr.vmem [resolvable:$true] %s530_s23  ;;  %s546_s12 = int_to_ptr.hbm [resolvable:$true] %s545_s12 }
  0x3a   : > { %s5205_s25 = smov 4   ;;  %s5206_s30 = smov 64  }
  0x3b   : > { %4006 = dma.hbm_to_vmem [thread:$0]  (!%p4771_p6), %s529_s0, 4096, %s531_s23, [#allocation20], %s5206_s30, %s5206_s30, %s5205_s25  }
  0x3c   : > { %s5207_s1 = sld [smem:[#allocation33_spill]]  ;;  %s4643_s22 = smov [#allocation22]  }
  0x3d   : > { %s547_s3 = sshll.u32 %s4643_s22, 4  ;;  %s4644_s14 = smov 256   ;;  %s548_s3 = int_to_ptr.vmem [resolvable:$true] %s547_s3 }
  0x3e   : > { %4009 = dma.hbm_to_vmem [thread:$0]  (!%p4771_p6), %s546_s12, 4096, %s548_s3, [#allocation23], %s4644_s14, %s4644_s14, %s4625_s27  }
  0x3f   : > { %s3070_s28 = sadd.s32 4294967294, %s4621_s21   ;;  %s4848_s16 = sadd.s32 1, %s4621_s21  }
  0x40   : > { %s41_s24 = ssub.s32 %s4621_s21, %s4848_s16  ;;  %s44_s15 = sadd.s32 1, %s4617_s20 }
  0x41   : > { %p42_p7 = scmp.eq.s32.totalorder %s41_s24, 0  ;;  %p51_p8 = scmp.ne.s32.totalorder %s4617_s20, %s4613_s19 }
  0x42   : > { %p52_p9 = scmp.eq.s32.totalorder %s4621_s21, 0  ;;  %p57_p10 = scmp.ne.s32.totalorder %s4613_s19, %s4609_s18 }
  0x43   : > { %s4859_s0 = scalar_select %p42_p7, %s4617_s20, %s44_s15  }
  0x44   : > { %p4861_p11 = por %p52_p9, %p51_p8  ;;  %p4867_p12 = por %p58_p1, %p57_p10 }
  0x45   : > { %p375_p13 = scmp.eq.s32.totalorder %s5207_s1, 1  ;;  %p381_p0 = scmp.eq.s32.totalorder %s3070_s28, 1 }
  0x46   : > { %p4029_p2 = scmp.lt.s32.totalorder %s4621_s21, 2  ;;  %s564_s27 = sand.u32 1, %s4617_s20  }
  0x47   : > { %p4874_p4 = por %p375_p13, %p51_p8  ;;  %p4878_p6 = por %p381_p0, %p57_p10 }
  0x48   : > { %s3084_s29 = sshll.u32 %s564_s27, 3  ;;  %s3085_s12 = sshll.u32 %s4621_s21, 3 }
  0x49   : > { %s5212_s22 = sld [smem:[#allocation35_spill]]  ;;  %s568_s14 = scalar_lea.vmem [#allocation4], %s3084_s29 }
  0x4a   : > { %s576_s24 = sshll.u32 %s568_s14, 4  ;;  %p4888_p7 = pnand %p4029_p2, %p4861_p11  ;;  %s577_s24 = int_to_ptr.vmem [resolvable:$true] %s576_s24 }
  0x4b   : > { %s565_s15 = scalar_lea.sflag [#allocation5], %s564_s27 }
  0x4c   : > { %p4505_p9 = pneg %p4888_p7 }
  0x4f   : > { %s572_s3 = scalar_lea.hbm %s5212_s22, %s3085_s12  ;;  %s4508_s25 = scalar_lea.hbm %s5212_s22, 16 }
  0x50   : > { %s574_s1 = sshll.u32 %s572_s3, 4  ;;  %s575_s1 = int_to_ptr.hbm [resolvable:$true] %s574_s1 }
  0x51   : > { %s4501_s2 = sshra.s32 %s575_s1, 4  ;;  %s4502_s2 = int_to_ptr.hbm [resolvable:$true] %s4501_s2 }
  0x52   : > { %s4503_s4 = scalar_lea.hbm %s4502_s2, 8  ;;  %p4509_p11 = scmp.lt.s32.totalorder %s4502_s2, %s5212_s22 }
  0x53   : > { %p4504_p8 = scmp.ne.s32.totalorder %s4502_s2, %s4503_s4  ;;  %p4510_p0 = scmp.lt.s32.totalorder %s4508_s25, %s4503_s4 }
  0x55   : > { %p4506_p10 = pnand %p4505_p9, %p4504_p8  ;;  %p4511_p2 = por %p4510_p0, %p4509_p11 }
  0x57   : > { %p4507_p13 = pneg %p4506_p10 }
  0x59   : > { %p4512_p5 = pnand %p4511_p2, %p4507_p13 }
  0x5b   : > { %4515 = shalt.err (!%p4512_p5)
}
  0x5c   : > { %4013 = dma.hbm_to_vmem [thread:$0]  (!%p4888_p7), %s575_s1, 128, %s577_s24, %s565_s15  }
  0x5d   : > { %585 = sbr.rel (%p4759_p3) target bundleno = 4032 (0xfc0), region = 80  ;;  %s4905_s3 = sand.u32 (!%p4759_p3), 1, %s4613_s19  }
  0x5e   : > { %s3087_s14 = sshll.u32 (!%p4759_p3), %s4905_s3, 3  ;;  %s588_s29 = scalar_lea.sflag (!%p4759_p3), [#allocation5], %s4905_s3 }
  0x5f   : > { %s591_s12 = scalar_lea.vmem (!%p4759_p3), [#allocation4], %s3087_s14 }
  0x62   : > { %4576 = dma.done.wait (%p4867_p12), %s588_s29, 128  }
  0x63   : > { %4578 = vsyncadd (%p4867_p12), %s588_s29, 4294967168  ;;  %s5215_s2 = sld [smem:[#allocation33_spill]] }
  0x64   : > { %4580 = dma.done.wait (%p58_p1), [#allocation8], 64  }
  0x65   : > { %4582 = vsyncadd (%p58_p1), [#allocation8], 4294967232 }
  0x66   : > { %4584 = dma.done.wait (%p58_p1), [#allocation11], 6240  }
  0x67   : > { %4586 = vsyncadd (%p58_p1), [#allocation11], 4294961056 }
  0x68   : > { %4588 = dma.done.wait (%p58_p1), [#allocation14], 2080  }
  0x69   : > { %4590 = vsyncadd (%p58_p1), [#allocation14], 4294965216 }
  0x6a   : > { %4592 = dma.done.wait (%p58_p1), [#allocation17], 64  }
  0x6b   : > { %4594 = vsyncadd (%p58_p1), [#allocation17], 4294967232 }
  0x6c   : > { %4596 = dma.done.wait (%p58_p1), [#allocation20], 8192  }
  0x6d   : > { %4598 = vsyncadd (%p58_p1), [#allocation20], 4294959104 }
  0x6e   : > { %4600 = dma.done.wait (%p58_p1), [#allocation23], 4096  }
  0x6f   : > { %4602 = vsyncadd (%p58_p1), [#allocation23], 4294963200  ;;  %v4937_v0 = vld [vmem:[%s591_s12] sm:$0xff]  ;;  %v4645_v1 = vmov 128.0   ;;  %v3186_v2 = vld [vmem:[#allocation10 + $0xa8] sm:$0xf] }
  0x70   : > { %704 = vadd.xlane.f32.xlu0 %v4937_v0  ;;  %4113 = vrcp.f32 %v4645_v1  ;;  %v3789_v3 = vld [vmem:[#allocation10 + $0xb0] sm:$0xf0]  ;;  %v3788_v4 = vld [vmem:[#allocation10 + $0xac] sm:$0xf]  ;;  %v3188_v6 = vld [vmem:[#allocation10 + $0xb4] sm:$0xf0] }
  0x71   : > { %v3187_v5 = vor.u32 %v3789_v3, %v3186_v2  ;;  %v3194_v7 = vld [vmem:[#allocation10 + $0xb0] sm:$0xf]  ;;  %v3790_v8 = vld [vmem:[#allocation10 + $0xb8] sm:$0xf0]  ;;  %v3191_v9 = vor.u32 %v3788_v4, %v3188_v6  ;;  %v3785_v23 = vld [vmem:[#allocation10 + $0x94] sm:$0xf] }
  0x72   : > { %v3195_v10 = vor.u32 %v3790_v8, %v3194_v7  ;;  %v3174_v21 = vld [vmem:[#allocation10 + $0x90] sm:$0xf]  ;;  %v3786_v22 = vld [vmem:[#allocation10 + $0x98] sm:$0xf0]  ;;  %v3176_v25 = vld [vmem:[#allocation10 + $0x9c] sm:$0xf0] }
  0x73   : > { %908 = vmatpush.bf16.msra.mxu0 %v3187_v5  ;;  %921 = vmatpush.bf16.msra.mxu1 %v3191_v9  ;;  %v3175_v24 = vor.u32 %v3786_v22, %v3174_v21  ;;  %v3182_v26 = vld [vmem:[#allocation10 + $0x98] sm:$0xf]  ;;  %v3787_v27 = vld [vmem:[#allocation10 + $0xa0] sm:$0xf0]  ;;  %v3179_v28 = vor.u32 %v3785_v23, %v3176_v25  ;;  %v3782_v32 = vld [vmem:[#allocation10 + $0x7c] sm:$0xf] }
  0x74   : > { %934 = vmatpush.bf16.msra.mxu2 %v3195_v10  ;;  %v3183_v29 = vor.u32 %v3787_v27, %v3182_v26  ;;  %v3162_v30 = vld [vmem:[#allocation10 + $0x78] sm:$0xf]  ;;  %v3783_v31 = vld [vmem:[#allocation10 + $0x80] sm:$0xf0]  ;;  %v3164_v34 = vld [vmem:[#allocation10 + $0x84] sm:$0xf0] }
  0x75   : > { %v3163_v33 = vor.u32 %v3783_v31, %v3162_v30  ;;  %v3170_v35 = vld [vmem:[#allocation10 + $0x80] sm:$0xf]  ;;  %v3784_v36 = vld [vmem:[#allocation10 + $0x88] sm:$0xf0]  ;;  %v3167_v37 = vor.u32 %v3782_v32, %v3164_v34  ;;  %v3779_v41 = vld [vmem:[#allocation10 + $0x64] sm:$0xf] }
  0x76   : > { %v4114_v11 = vpop.eup %4113  ;;  %v3171_v38 = vor.u32 %v3784_v36, %v3170_v35  ;;  %v3150_v39 = vld [vmem:[#allocation10 + $0x60] sm:$0xf]  ;;  %v3780_v40 = vld [vmem:[#allocation10 + $0x68] sm:$0xf0]  ;;  %v3152_v43 = vld [vmem:[#allocation10 + $0x6c] sm:$0xf0] }
  0x77   : > { %v707_v12 = vmul.f32 128.0, %v4114_v11  ;;  %vm711_vm0 = vweird.f32 %v4114_v11  ;;  %909 = vmatpush.bf16.msra.mxu0 %v3175_v24  ;;  %922 = vmatpush.bf16.msra.mxu1 %v3179_v28  ;;  %v3151_v42 = vor.u32 %v3780_v40, %v3150_v39  ;;  %v3158_v44 = vld [vmem:[#allocation10 + $0x68] sm:$0xf]  ;;  %v3781_v45 = vld [vmem:[#allocation10 + $0x70] sm:$0xf0]  ;;  %v3155_v46 = vor.u32 %v3779_v41, %v3152_v43  ;;  %s4646_s4 = smov 32  }
  0x78   : > { %935 = vmatpush.bf16.msra.mxu2 %v3183_v29  ;;  %v3159_v47 = vor.u32 %v3781_v45, %v3158_v44  ;;  %v3138_v48 = vld [vmem:[#allocation10 + $0x48] sm:$0xf]  ;;  %v3777_v49 = vld [vmem:[#allocation10 + $0x50] sm:$0xf0]  ;;  %v3776_v50 = vld [vmem:[#allocation10 + $0x4c] sm:$0xf] }
  0x79   : > { %v708_v13 = vsub.f32 1.0, %v707_v12  ;;  %v3139_v51 = vor.u32 %v3777_v49, %v3138_v48  ;;  %v3140_v52 = vld [vmem:[#allocation10 + $0x54] sm:$0xf0]  ;;  %v3146_v53 = vld [vmem:[#allocation10 + $0x50] sm:$0xf]  ;;  %vm995_vm4 = vcmask 261120  }
  0x7a   : > { %v3778_v54 = vld [vmem:[#allocation10 + $0x58] sm:$0xf0]  ;;  %v3143_v55 = vor.u32 %v3776_v50, %v3140_v52  ;;  %v3126_v57 = vld [vmem:[#allocation10 + $0x30] sm:$0xf]  ;;  %v3773_v59 = vld [vmem:[#allocation10 + $0x34] sm:$0xf] }
  0x7b   : > { %v709_v14 = vmul.f32 %v4114_v11, %v708_v13  ;;  %910 = vmatpush.bf16.msra.mxu0 %v3163_v33  ;;  %923 = vmatpush.bf16.msra.mxu1 %v3167_v37  ;;  %v3147_v56 = vor.u32 %v3778_v54, %v3146_v53  ;;  %v3774_v58 = vld [vmem:[#allocation10 + $0x38] sm:$0xf0]  ;;  %v3128_v61 = vld [vmem:[#allocation10 + $0x3c] sm:$0xf0]  ;;  %v3134_v62 = vld [vmem:[#allocation10 + $0x38] sm:$0xf] }
  0x7c   : > { %936 = vmatpush.bf16.msra.mxu2 %v3171_v38  ;;  %v3127_v60 = vor.u32 %v3774_v58, %v3126_v57  ;;  %v3775_v63 = vld [vmem:[#allocation10 + $0x40] sm:$0xf0]  ;;  %v3131_v1 = vor.u32 %v3773_v59, %v3128_v61  ;;  %v3114_v3 = vld [vmem:[#allocation10 + $0x18] sm:$0xf]  ;;  %v3770_v5 = vld [vmem:[#allocation10 + $0x1c] sm:$0xf] }
  0x7d   : > { %v710_v15 = vadd.f32 %v4114_v11, %v709_v14  ;;  %v3135_v2 = vor.u32 %v3775_v63, %v3134_v62  ;;  %v3771_v4 = vld [vmem:[#allocation10 + $0x20] sm:$0xf0]  ;;  %v3116_v7 = vld [vmem:[#allocation10 + $0x24] sm:$0xf0]  ;;  %v3122_v8 = vld [vmem:[#allocation10 + $0x20] sm:$0xf] }
  0x7e   : > { %v3115_v6 = vor.u32 %v3771_v4, %v3114_v3  ;;  %v3772_v9 = vld [vmem:[#allocation10 + $0x28] sm:$0xf0]  ;;  %v3119_v10 = vor.u32 %v3770_v5, %v3116_v7  ;;  %v3102_v12 = vld [vmem:[#allocation10] sm:$0xf]  ;;  %v3767_v14 = vld [vmem:[#allocation10 + $0x4] sm:$0xf]  ;;  %v696_v4 = vlaneseq }
  0x7f   : > { %v4940_v16 = vsel %vm711_vm0, %v4114_v11, %v710_v15  ;;  %911 = vmatpush.bf16.msra.mxu0 %v3151_v42  ;;  %924 = vmatpush.bf16.msra.mxu1 %v3155_v46  ;;  %v3123_v11 = vor.u32 %v3772_v9, %v3122_v8  ;;  %v3768_v13 = vld [vmem:[#allocation10 + $0x8] sm:$0xf0]  ;;  %v4101_v32 = vld [vmem:[#allocation7] ss:$0 sm:$0xff]  ;;  %v4102_v35 = vld [vmem:[#allocation9] ss:$0 sm:$0xff] }
  0x80   : > { %937 = vmatpush.bf16.msra.mxu2 %v3159_v47  ;;  %v3103_v15 = vor.u32 %v3768_v13, %v3102_v12  ;;  %v772_v39 = vld [vmem:[#allocation12] sm:$0x7]  ;;  %s4647_s17 = smov 64   ;;  %s4648_s24 = smov 96   ;;  %vm1124_vm5 = vcmask 1043456   ;;  %v697_v7 = vshrl.u32 %v696_v4, 7 }
  0x81   : > { %v775_v40 = vperm.slane %v772_v39, 1  ;;  %v774_v44 = vperm.slane %v772_v39, 0  ;;  %v776_v45 = vperm.slane %v772_v39, 2  ;;  %v699_v8 = vand.u32 127, %v696_v4  ;;  %s5216_s15 = sld [smem:[#allocation40_spill]]  ;;  %s3099_s1 = sshll.u32 %s4905_s3, 5 }
  0x82   : > { %vm1072_vm7 = vcmask 64512   ;;  %vm1203_vm8 = vcmask 523520   ;;  %vm1209_vm9 = vcmask 785920   ;;  %vm1215_vm10 = vcmask 1048320   ;;  %s5217_s10 = sld [smem:[#allocation41_spill]]  ;;  %s3927_s28 = sshll.u32 %s5215_s2, 5 }
  0x83   : > { %912 = vmatpush.bf16.msra.mxu0 %v3139_v51  ;;  %925 = vmatpush.bf16.msra.mxu1 %v3143_v55  ;;  %vm700_vm6 = vcmp.le.s32.totalorder %v699_v8, %v697_v7  ;;  %s5219_s27 = sld [smem:[#allocation43_spill]]  ;;  %s693_s29 = scalar_lea.vmem [#allocation24], %s3099_s1 }
  0x84   : > { %938 = vmatpush.bf16.msra.mxu2 %v3147_v56  ;;  %s2892_s12 = sshll.u32 %s693_s29, 4  ;;  %s2879_s2 = scalar_lea.sflag [#allocation6], %s4905_s3  ;;  %s2893_s12 = int_to_ptr.vmem [resolvable:$true] %s2892_s12 }
  0x87   : > { %913 = vmatpush.bf16.msra.mxu0 %v3127_v60  ;;  %926 = vmatpush.bf16.msra.mxu1 %v3131_v1 }
  0x88   : > { %939 = vmatpush.bf16.msra.mxu2 %v3135_v2 }
  0x89   : > { %s2890_s14 = scalar_lea.hbm %s5219_s27, %s3927_s28  ;;  %s4551_s25 = scalar_lea.hbm %s5219_s27, 64 }
  0x8b   : > { %914 = vmatpush.bf16.msra.mxu0 %v3115_v6  ;;  %927 = vmatpush.bf16.msra.mxu1 %v3119_v10  ;;  %v4649_v10 = vmov -1e+30  }
  0x8c   : > { %940 = vmatpush.bf16.msra.mxu2 %v3123_v11  ;;  %v4968_v11 = vsel %vm700_vm6, 0.0, %v4649_v10 }
  0x8f   : > { %915 = vmatpush.bf16.msra.mxu0 %v3103_v15 }
  0xe3   : > { %v705_v17 = vpop.xlane.xlu0 %704 }
  0xe4   : > { %v713_v18 = vmul.f32 %v4940_v16, %v705_v17  ;;  %v3104_v17 = vld [vmem:[#allocation10 + $0xc] sm:$0xf0] }
  0xe5   : > { %v3107_v21 = vor.u32 %v3767_v14, %v3104_v17 }
  0xe6   : > { %v4944_v19 = vsub.f32 %v4937_v0, %v713_v18  ;;  %v3110_v18 = vld [vmem:[#allocation10 + $0x8] sm:$0xf] }
  0xe7   : > { %928 = vmatpush.bf16.msra.mxu1 %v3107_v21 }
  0xe8   : > { %v715_v20 = vmul.f32 %v4944_v19, %v4944_v19 }
  0xea   : > { %716 = vadd.xlane.f32.xlu0 %v715_v20  ;;  %v3769_v20 = vld [vmem:[#allocation10 + $0x10] sm:$0xf0] }
  0xeb   : > { %v3111_v22 = vor.u32 %v3769_v20, %v3110_v18 }
  0xed   : > { %941 = vmatpush.bf16.msra.mxu2 %v3111_v22 }
 0x15d   : > { %v717_v23 = vpop.xlane.xlu0 %716 }
 0x15e   : > { %v718_v24 = vmul.f32 %v717_v23, %v4940_v16 }
 0x160   : > { %v719_v25 = vadd.f32 1e-05, %v718_v24 }
 0x162   : > { %4115 = vrsqrt.f32 %v719_v25  ;;  %vm726_vm2 = vweird.f32 %v719_v25 }
 0x168   : > { %v4116_v26 = vpop.eup %4115 }
 0x169   : > { %v721_v27 = vmul.f32 %v4116_v26, %v719_v25  ;;  %vm727_vm1 = vweird.f32 %v4116_v26 }
 0x16a   : > { %vm728_vm3 = vmor %vm726_vm2, %vm727_vm1 }
 0x16b   : > { %v722_v28 = vmul.f32 %v4116_v26, %v721_v27 }
 0x16d   : > { %v723_v29 = vmul.f32 0.5, %v722_v28 }
 0x16f   : > { %v724_v30 = vsub.f32 1.5, %v723_v29 }
 0x171   : > { %v725_v31 = vmul.f32 %v4116_v26, %v724_v30 }
 0x173   : > { %v729_v33 = vsel %vm728_vm3, %v4116_v26, %v725_v31 }
 0x174   : > { %v730_v34 = vmul.f32 %v729_v33, %v4944_v19 }
 0x176   : > { %v734_v36 = vmul.f32 %v4101_v32, %v730_v34 }
 0x178   : > { %v738_v37 = vadd.f32 %v4102_v35, %v734_v36 }
 0x17a   : > { %v739_v38 = vpack.c.bf16 %v738_v37, %v738_v37 }
 0x17c   : > { %916 = vmatmul.bf16.vlgmr.msra.gmra.mxu0 %v739_v38  ;;  %929 = vmatmul.bf16.vlgmr.msra.gmra.mxu1 %v739_v38 }
 0x17d   : > { %942 = vmatmul.bf16.vlgmr.msra.gmra.mxu2 %v739_v38 }
 0x1f9   : > { %v917_v41 = vpop.f32.mrf.mxu0  ;;  %v930_v42 = vpop.f32.mrf.mxu1 }
 0x1fa   : > { %v931_v43 = vadd.f32 %v930_v42, %v775_v40  ;;  %v918_v47 = vadd.f32 %v917_v41, %v774_v44 }
 0x1fc   : > { %973 = vrot.lane.b32.xlu0 %v931_v43, %s4646_s4  ;;  %970 = vrot.lane.b32.xlu2 %v931_v43, %s4647_s17  ;;  %v976_v19 = vpack.c.bf16 %v931_v43, %v931_v43  ;;  %v961_v53 = vpack.c.bf16 %v918_v47, %v918_v47 }
 0x1fd   : > { %967 = vrot.lane.b32.xlu1 %v931_v43, %s4648_s24 }
 0x1fe   : > { %v1000_v46 = vsel %vm995_vm4, %v976_v19, 0 }
 0x1ff   : > { %1009 = vmatpush.bf16.xpose.msra.mxu3 %v1000_v46 }
 0x200   : > { %v943_v48 = vpop.f32.mrf.mxu2 }
 0x201   : > { %v4954_v49 = vadd.f32 %v943_v48, %v776_v45  ;;  %v919_v50 = vpop.f32.mrf.mxu0  ;;  %v932_v51 = vpop.f32.mrf.mxu1 }
 0x203   : > { %v991_v52 = vpack.c.bf16 %v4954_v49, %v4954_v49 }
 0x204   : > { %955 = vrot.lane.b32.xlu2 %v918_v47, %s4647_s17 }
 0x205   : > { %952 = vrot.lane.b32.xlu1 %v918_v47, %s4648_s24  ;;  %v1126_v54 = vsel %vm1124_vm5, %v991_v52, 0 }
 0x206   : > { %1135 = vmatpush.bf16.msrb.mxu2 %v1126_v54  ;;  %3196 = vmatmul.msk.bf16.vlgmr.msra.gmra.mxu3 %vm995_vm4, %v961_v53 }
 0x208   : > { %v945_v55 = vpop.f32.mrf.mxu2 }
 0x20d   : > { %958 = vrot.lane.b32.xlu1 %v918_v47, %s4646_s4 }
 0x256   : > { %v971_v56 = vpop.permute.xlu2 %970 }
 0x257   : > { %v978_v58 = vpack.c.bf16 %v971_v56, %v971_v56 }
 0x259   : > { %v1038_v1 = vsel %vm995_vm4, %v978_v58, 0 }
 0x25e   : > { %v956_v9 = vpop.permute.xlu2 %955 }
 0x25f   : > { %v963_v12 = vpack.c.bf16 %v956_v9, %v956_v9 }
 0x26e   : > { %v974_v57 = vpop.permute.xlu0 %973 }
 0x26f   : > { %v979_v59 = vpack.c.bf16 %v974_v57, %v974_v57  ;;  %v968_v60 = vpop.permute.xlu1 %967 }
 0x270   : > { %v977_v61 = vpack.c.bf16 %v968_v60, %v968_v60 }
 0x271   : > { %v1057_v62 = vsel %vm995_vm4, %v979_v59, 0 }
 0x272   : > { %v1019_v63 = vsel %vm995_vm4, %v977_v61, 0  ;;  %1066 = vmatpush.bf16.xpose.msrb.mxu0 %v1057_v62 }
 0x273   : > { %1028 = vmatpush.bf16.xpose.msrb.mxu3 %v1019_v63 }
 0x277   : > { %v953_v2 = vpop.permute.xlu1 %952 }
 0x278   : > { %v962_v3 = vpack.c.bf16 %v953_v2, %v953_v2 }
 0x27a   : > { %3197 = vmatmul.msk.bf16.vlgmr.msrb.gmra.mxu3 %vm995_vm4, %v962_v3 }
 0x27b   : > { %1047 = vmatpush.bf16.xpose.msra.mxu3 %v1038_v1 }
 0x27f   : > { %v959_v5 = vpop.permute.xlu1 %958 }
 0x280   : > { %v964_v6 = vpack.c.bf16 %v959_v5, %v959_v5 }
 0x282   : > { %3199 = vmatmul.msk.bf16.vlgmr.msrb.gmra.mxu0 %vm995_vm4, %v964_v6 }
 0x289   : > { %v1011_v13 = vpop.f32.mrf.mxu3 }
 0x28a   : > { %v1012_v14 = vadd.f32 %v1011_v13, %v4968_v11  ;;  %3198 = vmatmul.msk.bf16.vlgmr.msra.gmra.mxu3 %vm995_vm4, %v963_v12 }
 0x28c   : > { %v1073_v15 = vsel %vm1072_vm7, %v1012_v14, -inf }
 0x28d   : > { %1074 = vmax.xlane.f32.xlu2 %v1073_v15  ;;  %v3798_v15 = vld [vmem:[#allocation13 + $0x38] sm:$0xff] }
 0x28e   : > { %1287 = vmatpush.bf16.msrb.mxu1 %v3798_v15  ;;  %v3256_v15 = vld [vmem:[#allocation19 + $0x28] sm:$0xf0] }
 0x291   : > { %v1013_v17 = vpop.f32.mrf.mxu3 }
 0x292   : > { %v3797_v17 = vld [vmem:[#allocation13 + $0x30] sm:$0xff] }
 0x293   : > { %1288 = vmatpush.bf16.msrb.mxu1 %v3797_v17 }
 0x2fd   : > { %v1030_v18 = vpop.f32.mrf.mxu3 }
 0x2fe   : > { %v1031_v20 = vadd.f32 %v1030_v18, %v4968_v11  ;;  %v3796_v18 = vld [vmem:[#allocation13 + $0x28] sm:$0xff] }
 0x2ff   : > { %v1068_v21 = vpop.f32.mrf.mxu0  ;;  %1289 = vmatpush.bf16.msrb.mxu1 %v3796_v18  ;;  %v3246_v18 = vld [vmem:[#allocation19 + $0x10] sm:$0xf] }
 0x300   : > { %v1069_v22 = vadd.f32 %v1068_v21, %v4968_v11  ;;  %v1076_v23 = vsel %vm1072_vm7, %v1031_v20, -inf  ;;  %v1075_v24 = vpop.xlane.xlu2 %1074 }
 0x301   : > { %1077 = vmax.xlane.f32.xlu1 %v1076_v23  ;;  %v1085_v25 = vsub.f32 %v1012_v14, %v1075_v24 }
 0x302   : > { %v1082_v26 = vsel %vm1072_vm7, %v1069_v22, -inf }
 0x303   : > { %v1089_v27 = vmul.f32 1.442695, %v1085_v25  ;;  %1083 = vmax.xlane.f32.xlu2 %v1082_v26  ;;  %v3795_v26 = vld [vmem:[#allocation13 + $0x20] sm:$0xff] }
 0x304   : > { %1290 = vmatpush.bf16.msrb.mxu1 %v3795_v26 }
 0x305   : > { %4117 = vpow2.f32 %v1089_v27  ;;  %v1032_v28 = vpop.f32.mrf.mxu3  ;;  %v3794_v27 = vld [vmem:[#allocation13 + $0x18] sm:$0xff] }
 0x306   : > { %v3793_v28 = vld [vmem:[#allocation13 + $0x10] sm:$0xff] }
 0x307   : > { %v1070_v29 = vpop.f32.mrf.mxu0 }
 0x308   : > { %1291 = vmatpush.bf16.msrb.mxu1 %v3794_v27  ;;  %v3792_v29 = vld [vmem:[#allocation13 + $0x8] sm:$0xff] }
 0x309   : > { %v3799_v27 = vld [vmem:[#allocation19 + $0x4] sm:$0xf] }
 0x30b   : > { %v4118_v30 = vpop.eup %4117 }
 0x30c   : > { %v1097_v31 = vsel %vm1072_vm7, %v4118_v30, 0.0  ;;  %1292 = vmatpush.bf16.msrb.mxu1 %v3793_v28  ;;  %v3240_v28 = vld [vmem:[#allocation19 + $0x8] sm:$0xf0] }
 0x30d   : > { %v1049_v32 = vpop.f32.mrf.mxu3  ;;  %1098 = vadd.xlane.f32.xlu2 %v1097_v31 }
 0x30e   : > { %v1050_v33 = vadd.f32 %v1049_v32, %v4968_v11 }
 0x310   : > { %v1079_v34 = vsel %vm1072_vm7, %v1050_v33, -inf  ;;  %1293 = vmatpush.bf16.msrb.mxu1 %v3792_v29 }
 0x311   : > { %1080 = vmax.xlane.f32.xlu0 %v1079_v34 }
 0x315   : > { %v1051_v35 = vpop.f32.mrf.mxu3 }
 0x325   : > { %985 = vrot.lane.b32.xlu0 %v4954_v49, %s4647_s17 }
 0x374   : > { %v1078_v36 = vpop.xlane.xlu1 %1077 }
 0x375   : > { %v1086_v37 = vsub.f32 %v1031_v20, %v1078_v36  ;;  %v4103_v36 = vld [vmem:[#allocation15] ss:$0 sm:$0xff] }
 0x376   : > { %v1084_v38 = vpop.xlane.xlu2 %1083 }
 0x377   : > { %v1091_v39 = vmul.f32 1.442695, %v1086_v37  ;;  %v1088_v40 = vsub.f32 %v1069_v22, %v1084_v38 }
 0x379   : > { %4119 = vpow2.f32 %v1091_v39  ;;  %v1095_v41 = vmul.f32 1.442695, %v1088_v40 }
 0x37b   : > { %4121 = vpow2.f32 %v1095_v41  ;;  %v3294_v41 = vld [vmem:[#allocation19 + $0x70] sm:$0xf] }
 0x37f   : > { %v4120_v42 = vpop.eup %4119 }
 0x380   : > { %v1100_v43 = vsel %vm1072_vm7, %v4120_v42, 0.0  ;;  %v1099_v44 = vpop.xlane.xlu2 %1098 }
 0x381   : > { %v4122_v19 = vpop.eup %4121  ;;  %1101 = vadd.xlane.f32.xlu1 %v1100_v43  ;;  %4123 = vrcp.f32 %v1099_v44  ;;  %v3813_v43 = vld [vmem:[#allocation19 + $0x74] sm:$0xf] }
 0x382   : > { %v1106_v45 = vsel %vm1072_vm7, %v4122_v19, 0.0 }
 0x383   : > { %1107 = vadd.xlane.f32.xlu2 %v1106_v45 }
 0x384   : > { %v1081_v46 = vpop.xlane.xlu0 %1080 }
 0x385   : > { %v1087_v47 = vsub.f32 %v1050_v33, %v1081_v46 }
 0x387   : > { %v4124_v48 = vpop.eup %4123  ;;  %v1093_v50 = vmul.f32 1.442695, %v1087_v47 }
 0x388   : > { %v1113_v51 = vmul.f32 %v4124_v48, %v4118_v30  ;;  %v3791_v30 = vld [vmem:[#allocation13] sm:$0xff] }
 0x389   : > { %4125 = vpow2.f32 %v1093_v50  ;;  %1294 = vmatpush.bf16.msrb.mxu1 %v3791_v30  ;;  %v3243_v30 = vor.u32 %v3799_v27, %v3240_v28 }
 0x38a   : > { %v1117_v52 = vpack.c.bf16 %v1113_v51, %v1113_v51  ;;  %v3812_v51 = vld [vmem:[#allocation19 + $0x64] sm:$0xf0] }
 0x38c   : > { %3200 = vmatmul.msk.bf16.vlgmr.msrb.gmra.mxu2 %vm1072_vm7, %v1117_v52  ;;  %v3811_v52 = vld [vmem:[#allocation19 + $0x64] sm:$0xf] }
 0x38f   : > { %v4126_v53 = vpop.eup %4125 }
 0x390   : > { %v1103_v54 = vsel %vm1072_vm7, %v4126_v53, 0.0 }
 0x391   : > { %1104 = vadd.xlane.f32.xlu2 %v1103_v54  ;;  %v3288_v54 = vld [vmem:[#allocation19 + $0x68] sm:$0xf0] }
 0x397   : > { %v986_v55 = vpop.permute.xlu0 %985 }
 0x398   : > { %v993_v56 = vpack.c.bf16 %v986_v55, %v986_v55  ;;  %v3291_v55 = vor.u32 %v3811_v52, %v3288_v54  ;;  %v3828_v52 = vld [vmem:[#allocation21 + $0x68] sm:$0xff]  ;;  %v3818_v54 = vld [vmem:[#allocation21 + $0x18] sm:$0xff] }
 0x39a   : > { %v1164_v57 = vsel %vm1124_vm5, %v993_v56, 0  ;;  %982 = vrot.lane.b32.xlu1 %v4954_v49, %s4648_s24  ;;  %v3278_v56 = vld [vmem:[#allocation19 + $0x50] sm:$0xf] }
 0x39b   : > { %1173 = vmatpush.bf16.msrb.mxu3 %v1164_v57  ;;  %v3810_v57 = vld [vmem:[#allocation19 + $0x54] sm:$0xf0] }
 0x3a9   : > { %988 = vrot.lane.b32.xlu2 %v4954_v49, %s4646_s4 }
 0x3f4   : > { %v1102_v59 = vpop.xlane.xlu1 %1101 }
 0x3f5   : > { %4127 = vrcp.f32 %v1102_v59  ;;  %v3279_v59 = vor.u32 %v3810_v57, %v3278_v56  ;;  %v3817_v56 = vld [vmem:[#allocation21 + $0x10] sm:$0xff] }
 0x3f6   : > { %v1108_v58 = vpop.xlane.xlu2 %1107  ;;  %v3825_v57 = vld [vmem:[#allocation21 + $0x50] sm:$0xff] }
 0x3f7   : > { %4129 = vrcp.f32 %v1108_v58  ;;  %v3809_v58 = vld [vmem:[#allocation19 + $0x54] sm:$0xf] }
 0x3fb   : > { %v4128_v61 = vpop.eup %4127 }
 0x3fc   : > { %v1114_v4 = vmul.f32 %v4128_v61, %v4120_v42  ;;  %v3814_v42 = vld [vmem:[#allocation19 + $0x74] sm:$0xf0] }
 0x3fd   : > { %v4130_v62 = vpop.eup %4129  ;;  %v3295_v44 = vor.u32 %v3814_v42, %v3294_v41 }
 0x3fe   : > { %v1116_v7 = vmul.f32 %v4130_v62, %v4122_v19  ;;  %v1118_v12 = vpack.c.bf16 %v1114_v4, %v1114_v4  ;;  %v3296_v19 = vld [vmem:[#allocation19 + $0x78] sm:$0xf0]  ;;  %v3270_v62 = vld [vmem:[#allocation19 + $0x40] sm:$0xf] }
 0x3ff   : > { %v3299_v45 = vor.u32 %v3813_v43, %v3296_v19  ;;  %v4105_v43 = vld [vmem:[#allocation18] ss:$0 sm:$0xff] }
 0x400   : > { %v1120_v13 = vpack.c.bf16 %v1116_v7, %v1116_v7  ;;  %v3805_v7 = vld [vmem:[#allocation19 + $0x34] sm:$0xf] }
 0x401   : > { %1447 = vmatpush.bf16.msra.mxu3 %v3299_v45 }
 0x404   : > { %v1105_v60 = vpop.xlane.xlu2 %1104 }
 0x405   : > { %4131 = vrcp.f32 %v1105_v60  ;;  %1448 = vmatpush.bf16.msra.mxu3 %v3291_v55  ;;  %v3280_v60 = vld [vmem:[#allocation19 + $0x58] sm:$0xf0] }
 0x406   : > { %v3283_v61 = vor.u32 %v3809_v58, %v3280_v60  ;;  %v3826_v55 = vld [vmem:[#allocation21 + $0x58] sm:$0xff]  ;;  %v3824_v60 = vld [vmem:[#allocation21 + $0x48] sm:$0xff] }
 0x407   : > { %v1348_v58 = vld [vmem:[%s5216_s15] sm:$0x3] }
 0x409   : > { %1449 = vmatpush.bf16.msra.mxu3 %v3283_v61  ;;  %v1350_v61 = vperm.slane %v1348_v58, 0 }
 0x40b   : > { %v4132_v63 = vpop.eup %4131 }
 0x40c   : > { %v1115_v1 = vmul.f32 %v4132_v63, %v4126_v53  ;;  %v983_v2 = vpop.permute.xlu1 %982  ;;  %v989_v3 = vpop.permute.xlu2 %988  ;;  %v3808_v63 = vld [vmem:[#allocation19 + $0x44] sm:$0xf0] }
 0x40d   : > { %v992_v5 = vpack.c.bf16 %v983_v2, %v983_v2  ;;  %v994_v6 = vpack.c.bf16 %v989_v3, %v989_v3  ;;  %v3271_v2 = vor.u32 %v3808_v63, %v3270_v62  ;;  %v3272_v3 = vld [vmem:[#allocation19 + $0x48] sm:$0xf0]  ;;  %v1351_v62 = vperm.slane %v1348_v58, 1  ;;  %v3815_v63 = vld [vmem:[#allocation21] sm:$0xff] }
 0x40e   : > { %v1119_v8 = vpack.c.bf16 %v1115_v1, %v1115_v1  ;;  %v3807_v1 = vld [vmem:[#allocation19 + $0x44] sm:$0xf] }
 0x40f   : > { %v1145_v9 = vsel %vm1124_vm5, %v992_v5, 0  ;;  %v1183_v49 = vsel %vm1124_vm5, %v994_v6, 0  ;;  %v1137_v10 = vpop.f32.mrf.mxu2  ;;  %v3275_v4 = vor.u32 %v3807_v1, %v3272_v3  ;;  %v3262_v5 = vld [vmem:[#allocation19 + $0x30] sm:$0xf]  ;;  %v3806_v6 = vld [vmem:[#allocation19 + $0x34] sm:$0xf0] }
 0x410   : > { %1198 = vst.msk [vmem:[#allocation3] sm:$0xff] %vm995_vm4, %v1137_v10  ;;  %1154 = vmatpush.bf16.msra.mxu2 %v1145_v9  ;;  %3202 = vmatmul.msk.bf16.vlgmr.msrb.gmra.mxu3 %vm1072_vm7, %v1119_v8  ;;  %v3263_v8 = vor.u32 %v3806_v6, %v3262_v5  ;;  %v3264_v9 = vld [vmem:[#allocation19 + $0x38] sm:$0xf0]  ;;  %v3254_v10 = vld [vmem:[#allocation19 + $0x20] sm:$0xf] }
 0x411   : > { %1192 = vmatpush.bf16.msra.mxu0 %v1183_v49  ;;  %1450 = vmatpush.bf16.msra.mxu3 %v3275_v4  ;;  %v3267_v49 = vor.u32 %v3805_v7, %v3264_v9  ;;  %v3823_v1 = vld [vmem:[#allocation21 + $0x40] sm:$0xff] }
 0x413   : > { %3201 = vmatmul.msk.bf16.vlgmr.msra.gmra.mxu2 %vm1072_vm7, %v1118_v12  ;;  %v3804_v12 = vld [vmem:[#allocation19 + $0x24] sm:$0xf0] }
 0x414   : > { %3203 = vmatmul.msk.bf16.vlgmr.msra.gmra.mxu0 %vm1072_vm7, %v1120_v13  ;;  %1434 = vmatpush.bf16.msrb.mxu2 %v3295_v44  ;;  %v3803_v13 = vld [vmem:[#allocation19 + $0x24] sm:$0xf] }
 0x415   : > { %1451 = vmatpush.bf16.msra.mxu3 %v3267_v49  ;;  %v3259_v17 = vor.u32 %v3803_v13, %v3256_v15 }
 0x417   : > { %v1139_v14 = vpop.f32.mrf.mxu2 }
 0x418   : > { %v3255_v14 = vor.u32 %v3804_v12, %v3254_v10 }
 0x419   : > { %1452 = vmatpush.bf16.msra.mxu3 %v3259_v17 }
 0x491   : > { %v1194_v20 = vpop.f32.mrf.mxu0 }
 0x493   : > { %v1175_v21 = vpop.f32.mrf.mxu3 }
 0x494   : > { %1206 = vrot.lane.b32.xlu1 %v1175_v21, %s4647_s17  ;;  %v3801_v21 = vld [vmem:[#allocation19 + $0x14] sm:$0xf] }
 0x496   : > { %v1156_v22 = vpop.f32.mrf.mxu2 }
 0x497   : > { %1200 = vrot.lane.b32.xlu0 %v1156_v22, %s4646_s4 }
 0x499   : > { %v1196_v23 = vpop.f32.mrf.mxu0 }
 0x49a   : > { %v3248_v23 = vld [vmem:[#allocation19 + $0x18] sm:$0xf0] }
 0x49b   : > { %v1177_v24 = vpop.f32.mrf.mxu3  ;;  %v3251_v26 = vor.u32 %v3801_v21, %v3248_v23 }
 0x49c   : > { %v3238_v24 = vld [vmem:[#allocation19] sm:$0xf] }
 0x49d   : > { %1453 = vmatpush.bf16.msra.mxu3 %v3251_v26 }
 0x49e   : > { %v1158_v25 = vpop.f32.mrf.mxu2 }
 0x49f   : > { %1212 = vrot.lane.b32.xlu0 %v1194_v20, %s4648_s24  ;;  %v3802_v20 = vld [vmem:[#allocation19 + $0x14] sm:$0xf0]  ;;  %v3800_v25 = vld [vmem:[#allocation19 + $0x4] sm:$0xf0] }
 0x4a0   : > { %v3247_v22 = vor.u32 %v3802_v20, %v3246_v18  ;;  %v3239_v29 = vor.u32 %v3800_v25, %v3238_v24 }
 0x4a1   : > { %1454 = vmatpush.bf16.msra.mxu3 %v3243_v30 }
 0x506   : > { %v1207_v32 = vpop.permute.xlu1 %1206 }
 0x509   : > { %v1201_v31 = vpop.permute.xlu0 %1200 }
 0x50a   : > { %1204 = vst.msk [vmem:[#allocation3] sm:$0xff] %vm1203_vm8, %v1201_v31 }
 0x50b   : > { %1210 = vst.msk [vmem:[#allocation3] sm:$0xff] %vm1209_vm9, %v1207_v32 }
 0x511   : > { %v1213_v33 = vpop.permute.xlu0 %1212 }
 0x512   : > { %1216 = vst.msk [vmem:[#allocation3] sm:$0xff] %vm1215_vm10, %v1213_v33 }
 0x519   : > { %v1217_v34 = vld [vmem:[#allocation3] sm:$0xff] }
 0x51a   : > { %v1218_v35 = vpack.c.bf16 %v1217_v34, %v1217_v34 }
 0x51c   : > { %1295 = vmatmul.bf16.vlgmr.msrb.gmra.mxu1 %v1218_v35 }
 0x599   : > { %v1296_v37 = vpop.f32.mrf.mxu1 }
 0x59a   : > { %v1297_v38 = vadd.f32 %v4103_v36, %v1296_v37 }
 0x59c   : > { %v1300_v39 = vadd.f32 %v1297_v38, %v4937_v0  ;;  %v3286_v0 = vld [vmem:[#allocation19 + $0x60] sm:$0xf] }
 0x59d   : > { %v3287_v53 = vor.u32 %v3812_v51, %v3286_v0  ;;  %v3829_v0 = vld [vmem:[#allocation21 + $0x70] sm:$0xff]  ;;  %v3820_v51 = vld [vmem:[#allocation21 + $0x28] sm:$0xff] }
 0x59e   : > { %1303 = vadd.xlane.f32.xlu1 %v1300_v39 }
 0x59f   : > { %1435 = vmatpush.bf16.msrb.mxu2 %v3287_v53  ;;  %v3827_v53 = vld [vmem:[#allocation21 + $0x60] sm:$0xff] }
 0x5a1   : > { %v1298_v40 = vpop.f32.mrf.mxu1 }
 0x5a2   : > { %v4104_v40 = vld [vmem:[#allocation16] ss:$0 sm:$0xff] }
 0x5a3   : > { %1436 = vmatpush.bf16.msrb.mxu2 %v3279_v59  ;;  %v3816_v59 = vld [vmem:[#allocation21 + $0x8] sm:$0xff] }
 0x5a7   : > { %1437 = vmatpush.bf16.msrb.mxu2 %v3271_v2 }
 0x5ab   : > { %1438 = vmatpush.bf16.msrb.mxu2 %v3263_v8 }
 0x5af   : > { %1439 = vmatpush.bf16.msrb.mxu2 %v3255_v14 }
 0x5b3   : > { %1440 = vmatpush.bf16.msrb.mxu2 %v3247_v22 }
 0x5b7   : > { %1441 = vmatpush.bf16.msrb.mxu2 %v3239_v29 }
 0x611   : > { %v1304_v46 = vpop.xlane.xlu1 %1303 }
 0x612   : > { %v1305_v47 = vmul.f32 %v1304_v46, %v4940_v16  ;;  %v3822_v46 = vld [vmem:[#allocation21 + $0x38] sm:$0xff] }
 0x613   : > { %1634 = vmatpush.bf16.msrb.mxu0 %v3822_v46 }
 0x614   : > { %v5005_v48 = vsub.f32 %v1300_v39, %v1305_v47  ;;  %v3830_v47 = vld [vmem:[#allocation21 + $0x78] sm:$0xff] }
 0x615   : > { %1647 = vmatpush.bf16.msra.mxu1 %v3830_v47 }
 0x616   : > { %v1307_v50 = vmul.f32 %v5005_v48, %v5005_v48 }
 0x618   : > { %1308 = vadd.xlane.f32.xlu2 %v1307_v50  ;;  %v3821_v50 = vld [vmem:[#allocation21 + $0x30] sm:$0xff] }
 0x619   : > { %1635 = vmatpush.bf16.msrb.mxu0 %v3821_v50  ;;  %1648 = vmatpush.bf16.msra.mxu1 %v3829_v0  ;;  %v3452_v50 = vld [vmem:[#allocation10 + $0x168] sm:$0xf]  ;;  %v3853_v0 = vld [vmem:[#allocation10 + $0x170] sm:$0xf0] }
 0x61d   : > { %1636 = vmatpush.bf16.msrb.mxu0 %v3820_v51  ;;  %1649 = vmatpush.bf16.msra.mxu1 %v3828_v52  ;;  %v3852_v51 = vld [vmem:[#allocation10 + $0x16c] sm:$0xf]  ;;  %v3453_v52 = vor.u32 %v3853_v0, %v3452_v50  ;;  %v3382_v0 = vld [vmem:[#allocation10 + $0xe4] sm:$0xf0] }
 0x61f   : > { %1864 = vmatpush.bf16.msra.mxu2 %v3453_v52  ;;  %v3836_v52 = vld [vmem:[#allocation10 + $0xe8] sm:$0xf0] }
 0x621   : > { %1650 = vmatpush.bf16.msra.mxu1 %v3827_v53  ;;  %v3460_v53 = vld [vmem:[#allocation10 + $0x170] sm:$0xf] }
 0x625   : > { %1651 = vmatpush.bf16.msra.mxu1 %v3826_v55 }
 0x629   : > { %1652 = vmatpush.bf16.msra.mxu1 %v3825_v57 }
 0x62d   : > { %1653 = vmatpush.bf16.msra.mxu1 %v3824_v60  ;;  %v3440_v60 = vld [vmem:[#allocation10 + $0x150] sm:$0xf] }
 0x631   : > { %1654 = vmatpush.bf16.msra.mxu1 %v3823_v1  ;;  %v3442_v1 = vld [vmem:[#allocation10 + $0x15c] sm:$0xf0] }
 0x68b   : > { %v1309_v31 = vpop.xlane.xlu2 %1308 }
 0x68c   : > { %v1310_v32 = vmul.f32 %v1309_v31, %v4940_v16 }
 0x68e   : > { %v1311_v33 = vadd.f32 1e-05, %v1310_v32 }
 0x690   : > { %4133 = vrsqrt.f32 %v1311_v33  ;;  %vm1318_vm12 = vweird.f32 %v1311_v33 }
 0x696   : > { %v4134_v34 = vpop.eup %4133 }
 0x697   : > { %v1313_v35 = vmul.f32 %v4134_v34, %v1311_v33  ;;  %vm1319_vm11 = vweird.f32 %v4134_v34 }
 0x698   : > { %vm1320_vm13 = vmor %vm1318_vm12, %vm1319_vm11 }
 0x699   : > { %v1314_v36 = vmul.f32 %v4134_v34, %v1313_v35 }
 0x69b   : > { %v1315_v37 = vmul.f32 0.5, %v1314_v36 }
 0x69d   : > { %v1316_v38 = vsub.f32 1.5, %v1315_v37 }
 0x69f   : > { %v1317_v39 = vmul.f32 %v4134_v34, %v1316_v38 }
 0x6a1   : > { %v1321_v41 = vsel %vm1320_vm13, %v4134_v34, %v1317_v39 }
 0x6a2   : > { %v1322_v42 = vmul.f32 %v1321_v41, %v5005_v48  ;;  %v3819_v48 = vld [vmem:[#allocation21 + $0x20] sm:$0xff] }
 0x6a3   : > { %1637 = vmatpush.bf16.msrb.mxu0 %v3819_v48  ;;  %v3454_v48 = vld [vmem:[#allocation10 + $0x174] sm:$0xf0] }
 0x6a4   : > { %v1326_v44 = vmul.f32 %v4104_v40, %v1322_v42  ;;  %v4106_v40 = vld [vmem:[%s5217_s10] ss:$0 sm:$0xff]  ;;  %v3457_v55 = vor.u32 %v3852_v51, %v3454_v48  ;;  %v3388_v51 = vld [vmem:[#allocation10 + $0xe0] sm:$0xf] }
 0x6a6   : > { %v5011_v19 = vadd.f32 %v4105_v43, %v1326_v44  ;;  %1877 = vmatpush.bf16.msrb.mxu3 %v3457_v55  ;;  %v3832_v55 = vld [vmem:[#allocation10 + $0xc8] sm:$0xf0] }
 0x6a7   : > { %1638 = vmatpush.bf16.msrb.mxu0 %v3818_v54  ;;  %v3854_v54 = vld [vmem:[#allocation10 + $0x178] sm:$0xf0] }
 0x6a8   : > { %v1331_v45 = vpack.c.bf16 %v5011_v19, %v5011_v19 }
 0x6aa   : > { %1442 = vmatmul.bf16.vlgmr.msrb.gmra.mxu2 %v1331_v45  ;;  %1455 = vmatmul.bf16.vlgmr.msra.gmra.mxu3 %v1331_v45 }
 0x6ab   : > { %1639 = vmatpush.bf16.msrb.mxu0 %v3817_v56  ;;  %v3461_v56 = vor.u32 %v3854_v54, %v3460_v53  ;;  %v3389_v53 = vor.u32 %v3836_v52, %v3388_v51  ;;  %v3368_v54 = vld [vmem:[#allocation10 + $0xc0] sm:$0xf] }
 0x6af   : > { %1640 = vmatpush.bf16.msrb.mxu0 %v3816_v59 }
 0x6b3   : > { %1641 = vmatpush.bf16.msrb.mxu0 %v3815_v63 }
 0x6b7   : > { %1890 = vmatpush.bf16.msra.mxu0 %v3461_v56  ;;  %v3831_v56 = vld [vmem:[#allocation10 + $0xc4] sm:$0xf] }
 0x72d   : > { %v1443_v2 = vpop.f32.mrf.mxu2  ;;  %v1456_v3 = vpop.f32.mrf.mxu3 }
 0x72e   : > { %v1444_v4 = vadd.f32 %v1443_v2, %v1350_v61  ;;  %v1457_v5 = vadd.f32 %v1456_v3, %v1351_v62  ;;  %v3850_v61 = vld [vmem:[#allocation10 + $0x158] sm:$0xf0]  ;;  %v3849_v62 = vld [vmem:[#allocation10 + $0x154] sm:$0xf]  ;;  %v3448_v2 = vld [vmem:[#allocation10 + $0x158] sm:$0xf] }
 0x72f   : > { %v3441_v63 = vor.u32 %v3850_v61, %v3440_v60  ;;  %v3851_v3 = vld [vmem:[#allocation10 + $0x160] sm:$0xf0]  ;;  %v3833_v60 = vld [vmem:[#allocation10 + $0xd0] sm:$0xf0] }
 0x730   : > { %v3300_v6 = vmul.f32 -1.442695, %v1444_v4  ;;  %v3301_v7 = vmul.f32 -1.442695, %v1457_v5 }
 0x731   : > { %1865 = vmatpush.bf16.msra.mxu2 %v3441_v63 }
 0x732   : > { %4135 = vpow2.f32 %v3300_v6  ;;  %v3428_v6 = vld [vmem:[#allocation10 + $0x138] sm:$0xf] }
 0x733   : > { %4137 = vpow2.f32 %v3301_v7  ;;  %v3847_v7 = vld [vmem:[#allocation10 + $0x140] sm:$0xf0] }
 0x735   : > { %v1445_v8 = vpop.f32.mrf.mxu2  ;;  %v1458_v9 = vpop.f32.mrf.mxu3 }
 0x736   : > { %v3846_v8 = vld [vmem:[#allocation10 + $0x13c] sm:$0xf]  ;;  %v3429_v9 = vor.u32 %v3847_v7, %v3428_v6 }
 0x738   : > { %v4136_v49 = vpop.eup %4135  ;;  %1866 = vmatpush.bf16.msra.mxu2 %v3429_v9  ;;  %v4107_v9 = vld [vmem:[#allocation7 + $0x1] ss:$0 sm:$0xff] }
 0x739   : > { %v4138_v10 = vpop.eup %4137  ;;  %v1466_v12 = vadd.f32 1.0, %v4136_v49  ;;  %v3430_v49 = vld [vmem:[#allocation10 + $0x144] sm:$0xf0] }
 0x73a   : > { %v1467_v13 = vadd.f32 1.0, %v4138_v10  ;;  %v3436_v10 = vld [vmem:[#allocation10 + $0x140] sm:$0xf] }
 0x73b   : > { %4139 = vrcp.f32 %v1466_v12  ;;  %v1479_v21 = vand.u32 2147483648, %v1466_v12  ;;  %v1477_v24 = vand.u32 2147483647, %v1466_v12  ;;  %vm1473_vm0 = vweird.f32 %v1466_v12 }
 0x73c   : > { %4141 = vrcp.f32 %v1467_v13  ;;  %v1494_v25 = vand.u32 2147483648, %v1467_v13  ;;  %v1492_v27 = vand.u32 2147483647, %v1467_v13  ;;  %vm1488_vm2 = vweird.f32 %v1467_v13 }
 0x73d   : > { %v1480_v29 = vor.u32 1.1754944e-38, %v1479_v21  ;;  %vm1478_vm3 = vcmp.eq.f32.partialorder %v1477_v24, 8.507059e+37  ;;  %v3418_v21 = vld [vmem:[#allocation10 + $0x12c] sm:$0xf0] }
 0x73e   : > { %v1495_v32 = vor.u32 1.1754944e-38, %v1494_v25  ;;  %vm1493_vm11 = vcmp.eq.f32.partialorder %v1492_v27, 8.507059e+37  ;;  %v3841_v27 = vld [vmem:[#allocation10 + $0x110] sm:$0xf0] }
 0x741   : > { %v4140_v14 = vpop.eup %4139 }
 0x742   : > { %v4142_v15 = vpop.eup %4141  ;;  %v1469_v17 = vmul.f32 %v4140_v14, %v1466_v12  ;;  %vm1474_vm14 = vweird.f32 %v4140_v14  ;;  %v3848_v12 = vld [vmem:[#allocation10 + $0x148] sm:$0xf0] }
 0x743   : > { %v1484_v18 = vmul.f32 %v4142_v15, %v1467_v13  ;;  %vm1489_vm15 = vweird.f32 %v4142_v15  ;;  %vm1475_vm1 = vmor %vm1473_vm0, %vm1474_vm14  ;;  %v3433_v13 = vor.u32 %v3846_v8, %v3430_v49 }
 0x744   : > { %v1470_v20 = vsub.f32 1.0, %v1469_v17  ;;  %vm1490_vm6 = vmor %vm1488_vm2, %vm1489_vm15  ;;  %v3844_v17 = vld [vmem:[#allocation10 + $0x128] sm:$0xf0] }
 0x745   : > { %v1485_v22 = vsub.f32 1.0, %v1484_v18  ;;  %v3843_v18 = vld [vmem:[#allocation10 + $0x124] sm:$0xf] }
 0x746   : > { %v1471_v23 = vmul.f32 %v4140_v14, %v1470_v20  ;;  %v3421_v24 = vor.u32 %v3843_v18, %v3418_v21 }
 0x747   : > { %v1486_v26 = vmul.f32 %v4142_v15, %v1485_v22  ;;  %v3424_v22 = vld [vmem:[#allocation10 + $0x128] sm:$0xf] }
 0x748   : > { %v1472_v28 = vadd.f32 %v4140_v14, %v1471_v23  ;;  %v3845_v23 = vld [vmem:[#allocation10 + $0x130] sm:$0xf0] }
 0x749   : > { %v1487_v30 = vadd.f32 %v4142_v15, %v1486_v26  ;;  %v3425_v25 = vor.u32 %v3845_v23, %v3424_v22  ;;  %v3404_v26 = vld [vmem:[#allocation10 + $0x108] sm:$0xf] }
 0x74a   : > { %v1476_v31 = vsel %vm1475_vm1, %v4140_v14, %v1472_v28  ;;  %v3437_v14 = vor.u32 %v3848_v12, %v3436_v10  ;;  %v3840_v28 = vld [vmem:[#allocation10 + $0x10c] sm:$0xf]  ;;  %v4108_v12 = vld [vmem:[#allocation9 + $0x1] ss:$0 sm:$0xff] }
 0x74b   : > { %v1481_v33 = vsel %vm1478_vm3, %v1480_v29, %v1476_v31  ;;  %v1491_v34 = vsel %vm1490_vm6, %v4142_v15, %v1487_v30  ;;  %v3416_v15 = vld [vmem:[#allocation10 + $0x120] sm:$0xf]  ;;  %v3405_v29 = vor.u32 %v3841_v27, %v3404_v26  ;;  %v3406_v30 = vld [vmem:[#allocation10 + $0x114] sm:$0xf0]  ;;  %v3412_v31 = vld [vmem:[#allocation10 + $0x110] sm:$0xf] }
 0x74c   : > { %v1498_v35 = vmul.f32 %v1481_v33, %v1444_v4  ;;  %v1496_v36 = vsel %vm1493_vm11, %v1495_v32, %v1491_v34  ;;  %v3445_v4 = vor.u32 %v3849_v62, %v3442_v1  ;;  %v3417_v20 = vor.u32 %v3844_v17, %v3416_v15  ;;  %v3842_v32 = vld [vmem:[#allocation10 + $0x118] sm:$0xf0]  ;;  %v1728_v17 = vld [vmem:[#allocation12 + $0x3] sm:$0x7] }
 0x74d   : > { %v1499_v37 = vmul.f32 %v1496_v36, %v1457_v5  ;;  %v3449_v5 = vor.u32 %v3851_v3, %v3448_v2  ;;  %v3409_v33 = vor.u32 %v3840_v28, %v3406_v30  ;;  %v3413_v34 = vor.u32 %v3842_v32, %v3412_v31  ;;  %v3838_v36 = vld [vmem:[#allocation10 + $0xf8] sm:$0xf0] }
 0x74e   : > { %v1500_v38 = vpack.c.bf16 %v1498_v35, %v1498_v35  ;;  %1878 = vmatpush.bf16.msrb.mxu3 %v3445_v4  ;;  %1867 = vmatpush.bf16.msra.mxu2 %v3417_v20  ;;  %v3392_v35 = vld [vmem:[#allocation10 + $0xf0] sm:$0xf]  ;;  %v1732_v18 = vperm.slane %v1728_v17, 2  ;;  %v1730_v21 = vperm.slane %v1728_v17, 0  ;;  %v1731_v22 = vperm.slane %v1728_v17, 1 }
 0x74f   : > { %v1501_v39 = vpack.c.bf16 %v1499_v37, %v1499_v37  ;;  %1891 = vmatpush.bf16.msra.mxu0 %v3449_v5  ;;  %v3837_v37 = vld [vmem:[#allocation10 + $0xf4] sm:$0xf] }
 0x750   : > { %1642 = vmatmul.bf16.vlgmr.msrb.gmra.mxu0 %v1500_v38  ;;  %v3393_v38 = vor.u32 %v3838_v36, %v3392_v35 }
 0x751   : > { %1655 = vmatmul.bf16.vlgmr.msra.gmra.mxu1 %v1501_v39  ;;  %v3394_v39 = vld [vmem:[#allocation10 + $0xfc] sm:$0xf0] }
 0x752   : > { %1879 = vmatpush.bf16.msrb.mxu3 %v3433_v13  ;;  %1868 = vmatpush.bf16.msra.mxu2 %v3405_v29 }
 0x753   : > { %1892 = vmatpush.bf16.msra.mxu0 %v3437_v14 }
 0x756   : > { %1880 = vmatpush.bf16.msrb.mxu3 %v3421_v24  ;;  %1869 = vmatpush.bf16.msra.mxu2 %v3393_v38 }
 0x757   : > { %1893 = vmatpush.bf16.msra.mxu0 %v3425_v25 }
 0x75a   : > { %1881 = vmatpush.bf16.msrb.mxu3 %v3409_v33 }
 0x75b   : > { %1894 = vmatpush.bf16.msra.mxu0 %v3413_v34 }
 0x7cd   : > { %v1643_v41 = vpop.f32.mrf.mxu0 }
 0x7ce   : > { %v1644_v42 = vadd.f32 %v4106_v40, %v1643_v41  ;;  %v1656_v43 = vpop.f32.mrf.mxu1  ;;  %v3400_v40 = vld [vmem:[#allocation10 + $0xf8] sm:$0xf]  ;;  %v3839_v41 = vld [vmem:[#allocation10 + $0x100] sm:$0xf0] }
 0x7d0   : > { %v1657_v44 = vadd.f32 %v1656_v43, %v1644_v42  ;;  %v3397_v42 = vor.u32 %v3837_v37, %v3394_v39  ;;  %v3401_v43 = vor.u32 %v3839_v41, %v3400_v40 }
 0x7d2   : > { %v5022_v45 = vadd.f32 %v1657_v44, %v5011_v19  ;;  %1882 = vmatpush.bf16.msrb.mxu3 %v3397_v42  ;;  %1895 = vmatpush.bf16.msra.mxu0 %v3401_v43  ;;  %v3380_v44 = vld [vmem:[#allocation10 + $0xd8] sm:$0xf] }
 0x7d4   : > { %1665 = vadd.xlane.f32.xlu0 %v5022_v45 }
 0x7d5   : > { %v1645_v46 = vpop.f32.mrf.mxu0 }
 0x7d6   : > { %v1658_v47 = vpop.f32.mrf.mxu1  ;;  %v3835_v46 = vld [vmem:[#allocation10 + $0xe0] sm:$0xf0]  ;;  %1896 = vmatpush.bf16.msra.mxu0 %v3389_v53 }
 0x7d7   : > { %v3834_v47 = vld [vmem:[#allocation10 + $0xdc] sm:$0xf]  ;;  %v3381_v50 = vor.u32 %v3835_v46, %v3380_v44 }
 0x7d8   : > { %v3385_v48 = vor.u32 %v3834_v47, %v3382_v0 }
 0x7d9   : > { %1870 = vmatpush.bf16.msra.mxu2 %v3381_v50 }
 0x7da   : > { %1883 = vmatpush.bf16.msrb.mxu3 %v3385_v48 }
 0x847   : > { %v1666_v57 = vpop.xlane.xlu0 %1665 }
 0x848   : > { %v1667_v19 = vmul.f32 %v1666_v57, %v4940_v16  ;;  %v3369_v57 = vor.u32 %v3832_v55, %v3368_v54 }
 0x84a   : > { %v5027_v58 = vsub.f32 %v5022_v45, %v1667_v19  ;;  %v3370_v19 = vld [vmem:[#allocation10 + $0xcc] sm:$0xf0]  ;;  %1871 = vmatpush.bf16.msra.mxu2 %v3369_v57 }
 0x84b   : > { %v3373_v61 = vor.u32 %v3831_v56, %v3370_v19 }
 0x84c   : > { %v1669_v59 = vmul.f32 %v5027_v58, %v5027_v58 }
 0x84d   : > { %1884 = vmatpush.bf16.msrb.mxu3 %v3373_v61 }
 0x84e   : > { %1670 = vadd.xlane.f32.xlu1 %v1669_v59  ;;  %v3376_v59 = vld [vmem:[#allocation10 + $0xc8] sm:$0xf] }
 0x84f   : > { %v3377_v62 = vor.u32 %v3833_v60, %v3376_v59 }
 0x851   : > { %1897 = vmatpush.bf16.msra.mxu0 %v3377_v62 }
 0x8c1   : > { %v1671_v63 = vpop.xlane.xlu1 %1670 }
 0x8c2   : > { %v1672_v1 = vmul.f32 %v1671_v63, %v4940_v16 }
 0x8c4   : > { %v1673_v2 = vadd.f32 1e-05, %v1672_v1 }
 0x8c6   : > { %4143 = vrsqrt.f32 %v1673_v2  ;;  %vm1680_vm13 = vweird.f32 %v1673_v2 }
 0x8cc   : > { %v4144_v3 = vpop.eup %4143 }
 0x8cd   : > { %v1675_v4 = vmul.f32 %v4144_v3, %v1673_v2  ;;  %vm1681_vm12 = vweird.f32 %v4144_v3 }
 0x8ce   : > { %vm1682_vm14 = vmor %vm1680_vm13, %vm1681_vm12 }
 0x8cf   : > { %v1676_v5 = vmul.f32 %v4144_v3, %v1675_v4 }
 0x8d1   : > { %v1677_v6 = vmul.f32 0.5, %v1676_v5 }
 0x8d3   : > { %v1678_v7 = vsub.f32 1.5, %v1677_v6 }
 0x8d5   : > { %v1679_v8 = vmul.f32 %v4144_v3, %v1678_v7 }
 0x8d7   : > { %v1683_v49 = vsel %vm1682_vm14, %v4144_v3, %v1679_v8 }
 0x8d8   : > { %v1684_v10 = vmul.f32 %v1683_v49, %v5027_v58 }
 0x8da   : > { %v1688_v13 = vmul.f32 %v4107_v9, %v1684_v10 }
 0x8dc   : > { %v1692_v14 = vadd.f32 %v4108_v12, %v1688_v13 }
 0x8de   : > { %v1693_v15 = vpack.c.bf16 %v1692_v14, %v1692_v14 }
 0x8e0   : > { %1872 = vmatmul.bf16.vlgmr.msra.gmra.mxu2 %v1693_v15  ;;  %1885 = vmatmul.bf16.vlgmr.msrb.gmra.mxu3 %v1693_v15 }
 0x8e1   : > { %1898 = vmatmul.bf16.vlgmr.msra.gmra.mxu0 %v1693_v15 }
 0x95e   : > { %v1899_v20 = vpop.f32.mrf.mxu0 }
 0x95f   : > { %v5033_v23 = vadd.f32 %v1899_v20, %v1732_v18 }
 0x961   : > { %v1947_v58 = vpack.c.bf16 %v5033_v23, %v5033_v23 }
 0x963   : > { %v1873_v24 = vpop.f32.mrf.mxu2  ;;  %v1886_v25 = vpop.f32.mrf.mxu3  ;;  %v2079_v31 = vsel %vm1124_vm5, %v1947_v58, 0 }
 0x964   : > { %v1874_v26 = vadd.f32 %v1873_v24, %v1730_v21  ;;  %v1887_v27 = vadd.f32 %v1886_v25, %v1731_v22 }
 0x966   : > { %v1901_v28 = vpop.f32.mrf.mxu0  ;;  %1926 = vrot.lane.b32.xlu0 %v1887_v27, %s4647_s17  ;;  %1923 = vrot.lane.b32.xlu2 %v1887_v27, %s4648_s24  ;;  %v1932_v29 = vpack.c.bf16 %v1887_v27, %v1887_v27  ;;  %v1917_v34 = vpack.c.bf16 %v1874_v26, %v1874_v26 }
 0x967   : > { %1908 = vrot.lane.b32.xlu1 %v1874_v26, %s4648_s24 }
 0x968   : > { %v1955_v30 = vsel %vm995_vm4, %v1932_v29, 0 }
 0x969   : > { %1964 = vmatpush.bf16.xpose.msrb.mxu1 %v1955_v30 }
 0x96b   : > { %v1875_v32 = vpop.f32.mrf.mxu2  ;;  %v1888_v33 = vpop.f32.mrf.mxu3 }
 0x96e   : > { %1929 = vrot.lane.b32.xlu2 %v1887_v27, %s4646_s4  ;;  %1911 = vrot.lane.b32.xlu0 %v1874_v26, %s4647_s17 }
 0x96f   : > { %1914 = vrot.lane.b32.xlu1 %v1874_v26, %s4646_s4 }
 0x970   : > { %3462 = vmatmul.msk.bf16.vlgmr.msrb.gmra.mxu1 %vm995_vm4, %v1917_v34 }
 0x971   : > { %2088 = vmatpush.bf16.msra.mxu1 %v2079_v31 }
 0x9c0   : > { %v1924_v35 = vpop.permute.xlu2 %1923 }
 0x9c1   : > { %v1933_v36 = vpack.c.bf16 %v1924_v35, %v1924_v35 }
 0x9c3   : > { %v1974_v37 = vsel %vm995_vm4, %v1933_v36, 0 }
 0x9c4   : > { %1983 = vmatpush.bf16.xpose.msrb.mxu2 %v1974_v37 }
 0x9c8   : > { %v1930_v38 = vpop.permute.xlu2 %1929 }
 0x9c9   : > { %v1935_v39 = vpack.c.bf16 %v1930_v38, %v1930_v38 }
 0x9cb   : > { %v2012_v40 = vsel %vm995_vm4, %v1935_v39, 0 }
 0x9cc   : > { %2021 = vmatpush.bf16.xpose.msrb.mxu0 %v2012_v40 }
 0x9d8   : > { %v1927_v41 = vpop.permute.xlu0 %1926 }
 0x9d9   : > { %v1934_v42 = vpack.c.bf16 %v1927_v41, %v1927_v41  ;;  %v1909_v43 = vpop.permute.xlu1 %1908 }
 0x9da   : > { %v1918_v44 = vpack.c.bf16 %v1909_v43, %v1909_v43 }
 0x9db   : > { %v1993_v46 = vsel %vm995_vm4, %v1934_v42, 0 }
 0x9dc   : > { %3463 = vmatmul.msk.bf16.vlgmr.msrb.gmra.mxu2 %vm995_vm4, %v1918_v44  ;;  %2002 = vmatpush.bf16.xpose.msra.mxu3 %v1993_v46 }
 0x9e0   : > { %v1912_v47 = vpop.permute.xlu0 %1911 }
 0x9e1   : > { %v1919_v50 = vpack.c.bf16 %v1912_v47, %v1912_v47  ;;  %v1915_v0 = vpop.permute.xlu1 %1914 }
 0x9e2   : > { %v1920_v51 = vpack.c.bf16 %v1915_v0, %v1915_v0 }
 0x9e3   : > { %3464 = vmatmul.msk.bf16.vlgmr.msra.gmra.mxu3 %vm995_vm4, %v1919_v50 }
 0x9e4   : > { %3465 = vmatmul.msk.bf16.vlgmr.msrb.gmra.mxu0 %vm995_vm4, %v1920_v51 }
 0x9ed   : > { %v1966_v52 = vpop.f32.mrf.mxu1 }
 0x9ee   : > { %v1967_v59 = vadd.f32 %v1966_v52, %v4968_v11 }
 0x9f0   : > { %v2027_v2 = vsel %vm1072_vm7, %v1967_v59, -inf }
 0x9f5   : > { %v1968_v48 = vpop.f32.mrf.mxu1 }
 0xa5f   : > { %v1985_v53 = vpop.f32.mrf.mxu2 }
 0xa60   : > { %v1986_v54 = vadd.f32 %v1985_v53, %v4968_v11 }
 0xa61   : > { %v2023_v55 = vpop.f32.mrf.mxu0 }
 0xa62   : > { %v2024_v56 = vadd.f32 %v2023_v55, %v4968_v11  ;;  %v2030_v57 = vsel %vm1072_vm7, %v1986_v54, -inf }
 0xa63   : > { %2031 = vmax.xlane.f32.xlu0 %v2030_v57 }
 0xa64   : > { %v2036_v19 = vsel %vm1072_vm7, %v2024_v56, -inf }
 0xa65   : > { %2037 = vmax.xlane.f32.xlu1 %v2036_v19  ;;  %v3862_v19 = vld [vmem:[#allocation13 + $0x78] sm:$0xff] }
 0xa66   : > { %v2004_v60 = vpop.f32.mrf.mxu3  ;;  %2239 = vmatpush.bf16.msrb.mxu1 %v3862_v19 }
 0xa67   : > { %v1987_v61 = vpop.f32.mrf.mxu2  ;;  %v2005_v62 = vadd.f32 %v2004_v60, %v4968_v11  ;;  %v3860_v60 = vld [vmem:[#allocation13 + $0x68] sm:$0xff] }
 0xa68   : > { %v3859_v61 = vld [vmem:[#allocation13 + $0x60] sm:$0xff] }
 0xa69   : > { %v2025_v63 = vpop.f32.mrf.mxu0  ;;  %v2033_v1 = vsel %vm1072_vm7, %v2005_v62, -inf }
 0xa6a   : > { %2034 = vmax.xlane.f32.xlu2 %v2033_v1 }
 0xa6b   : > { %2028 = vmax.xlane.f32.xlu0 %v2027_v2  ;;  %v3857_v2 = vld [vmem:[#allocation13 + $0x50] sm:$0xff] }
 0xa6e   : > { %v2006_v3 = vpop.f32.mrf.mxu3 }
 0xa6f   : > { %v3856_v3 = vld [vmem:[#allocation13 + $0x48] sm:$0xff] }
 0xa7f   : > { %1938 = vrot.lane.b32.xlu0 %v5033_v23, %s4648_s24 }
 0xad6   : > { %v2032_v4 = vpop.xlane.xlu0 %2031 }
 0xad7   : > { %v2040_v5 = vsub.f32 %v1986_v54, %v2032_v4  ;;  %v3855_v4 = vld [vmem:[#allocation13 + $0x40] sm:$0xff] }
 0xad8   : > { %v2038_v6 = vpop.xlane.xlu1 %2037 }
 0xad9   : > { %v2045_v7 = vmul.f32 1.442695, %v2040_v5  ;;  %v2042_v8 = vsub.f32 %v2024_v56, %v2038_v6 }
 0xadb   : > { %4145 = vpow2.f32 %v2045_v7  ;;  %v2049_v9 = vmul.f32 1.442695, %v2042_v8  ;;  %v4109_v8 = vld [vmem:[#allocation15 + $0x1] ss:$0 sm:$0xff] }
 0xadd   : > { %4147 = vpow2.f32 %v2049_v9  ;;  %v2035_v11 = vpop.xlane.xlu2 %2034 }
 0xade   : > { %v2041_v49 = vsub.f32 %v2005_v62, %v2035_v11  ;;  %v2029_v10 = vpop.xlane.xlu0 %2028  ;;  %v3858_v62 = vld [vmem:[#allocation13 + $0x58] sm:$0xff] }
 0xadf   : > { %v2039_v12 = vsub.f32 %v1967_v59, %v2029_v10  ;;  %v3861_v59 = vld [vmem:[#allocation13 + $0x70] sm:$0xff] }
 0xae0   : > { %v2047_v13 = vmul.f32 1.442695, %v2041_v49  ;;  %2240 = vmatpush.bf16.msrb.mxu1 %v3861_v59  ;;  %v3505_v59 = vld [vmem:[#allocation19 + $0x80] sm:$0xf] }
 0xae1   : > { %v4146_v14 = vpop.eup %4145  ;;  %v2043_v15 = vmul.f32 1.442695, %v2039_v12  ;;  %v3561_v12 = vld [vmem:[#allocation19 + $0xf0] sm:$0xf] }
 0xae2   : > { %4149 = vpow2.f32 %v2047_v13  ;;  %v2054_v17 = vsel %vm1072_vm7, %v4146_v14, 0.0  ;;  %v3878_v13 = vld [vmem:[#allocation19 + $0xf4] sm:$0xf0] }
 0xae3   : > { %v4148_v18 = vpop.eup %4147  ;;  %4151 = vpow2.f32 %v2043_v15  ;;  %2055 = vadd.xlane.f32.xlu2 %v2054_v17  ;;  %v3562_v15 = vor.u32 %v3878_v13, %v3561_v12  ;;  %v3563_v17 = vld [vmem:[#allocation19 + $0xf8] sm:$0xf0] }
 0xae4   : > { %v2060_v20 = vsel %vm1072_vm7, %v4148_v18, 0.0  ;;  %2241 = vmatpush.bf16.msrb.mxu1 %v3860_v60  ;;  %v3864_v60 = vld [vmem:[#allocation19 + $0x84] sm:$0xf0]  ;;  %v4111_v13 = vld [vmem:[#allocation18 + $0x1] ss:$0 sm:$0xff] }
 0xae5   : > { %2061 = vadd.xlane.f32.xlu1 %v2060_v20 }
 0xae8   : > { %v4150_v21 = vpop.eup %4149  ;;  %2242 = vmatpush.bf16.msrb.mxu1 %v3859_v61  ;;  %v3863_v61 = vld [vmem:[#allocation19 + $0x84] sm:$0xf] }
 0xae9   : > { %v4152_v22 = vpop.eup %4151  ;;  %v2057_v25 = vsel %vm1072_vm7, %v4150_v21, 0.0 }
 0xaea   : > { %v2051_v24 = vsel %vm1072_vm7, %v4152_v22, 0.0 }
 0xaeb   : > { %2052 = vadd.xlane.f32.xlu0 %v2051_v24 }
 0xaec   : > { %2243 = vmatpush.bf16.msrb.mxu1 %v3858_v62  ;;  %v3506_v62 = vor.u32 %v3864_v60, %v3505_v59 }
 0xaed   : > { %2058 = vadd.xlane.f32.xlu1 %v2057_v25  ;;  %v3876_v25 = vld [vmem:[#allocation19 + $0xe4] sm:$0xf0] }
 0xaf0   : > { %2244 = vmatpush.bf16.msrb.mxu1 %v3857_v2 }
 0xaf1   : > { %v1939_v26 = vpop.permute.xlu0 %1938 }
 0xaf2   : > { %v1948_v27 = vpack.c.bf16 %v1939_v26, %v1939_v26  ;;  %v3875_v26 = vld [vmem:[#allocation19 + $0xe4] sm:$0xf] }
 0xaf4   : > { %v2098_v58 = vsel %vm1124_vm5, %v1948_v27, 0  ;;  %2245 = vmatpush.bf16.msrb.mxu1 %v3856_v3 }
 0xaf5   : > { %2107 = vmatpush.bf16.msra.mxu2 %v2098_v58  ;;  %v3555_v58 = vld [vmem:[#allocation19 + $0xe8] sm:$0xf0] }
 0xaf8   : > { %2246 = vmatpush.bf16.msrb.mxu1 %v3855_v4 }
 0xaf9   : > { %2390 = vmatpush.bf16.msrb.mxu2 %v3562_v15 }
 0xafb   : > { %1941 = vrot.lane.b32.xlu2 %v5033_v23, %s4647_s17 }
 0xb06   : > { %1944 = vrot.lane.b32.xlu1 %v5033_v23, %s4646_s4 }
 0xb56   : > { %v2056_v28 = vpop.xlane.xlu2 %2055 }
 0xb57   : > { %4153 = vrcp.f32 %v2056_v28  ;;  %v3558_v28 = vor.u32 %v3875_v26, %v3555_v58  ;;  %v3882_v26 = vld [vmem:[#allocation21 + $0x98] sm:$0xff]  ;;  %v3881_v58 = vld [vmem:[#allocation21 + $0x90] sm:$0xff] }
 0xb58   : > { %v2062_v29 = vpop.xlane.xlu1 %2061 }
 0xb5d   : > { %v4154_v30 = vpop.eup %4153 }
 0xb5e   : > { %v2068_v31 = vmul.f32 %v4154_v30, %v4146_v14  ;;  %v1942_v32 = vpop.permute.xlu2 %1941  ;;  %v2053_v33 = vpop.xlane.xlu0 %2052  ;;  %v3877_v14 = vld [vmem:[#allocation19 + $0xf4] sm:$0xf]  ;;  %v3874_v30 = vld [vmem:[#allocation19 + $0xd4] sm:$0xf0] }
 0xb5f   : > { %v1949_v34 = vpack.c.bf16 %v1942_v32, %v1942_v32  ;;  %4155 = vrcp.f32 %v2053_v33  ;;  %v3547_v33 = vld [vmem:[#allocation19 + $0xd8] sm:$0xf0] }
 0xb60   : > { %v2072_v35 = vpack.c.bf16 %v2068_v31, %v2068_v31  ;;  %v2059_v36 = vpop.xlane.xlu1 %2058  ;;  %v3873_v31 = vld [vmem:[#allocation19 + $0xd4] sm:$0xf] }
 0xb61   : > { %v2117_v37 = vsel %vm1124_vm5, %v1949_v34, 0  ;;  %4157 = vrcp.f32 %v2059_v36  ;;  %v3550_v34 = vor.u32 %v3873_v31, %v3547_v33  ;;  %v3872_v36 = vld [vmem:[#allocation19 + $0xc4] sm:$0xf0] }
 0xb62   : > { %3467 = vmatmul.msk.bf16.vlgmr.msra.gmra.mxu2 %vm1072_vm7, %v2072_v35  ;;  %2126 = vmatpush.bf16.msrb.mxu3 %v2117_v37  ;;  %4159 = vrcp.f32 %v2062_v29  ;;  %v3545_v29 = vld [vmem:[#allocation19 + $0xd0] sm:$0xf]  ;;  %v3537_v35 = vld [vmem:[#allocation19 + $0xc0] sm:$0xf]  ;;  %v3871_v37 = vld [vmem:[#allocation19 + $0xc4] sm:$0xf] }
 0xb63   : > { %v3546_v32 = vor.u32 %v3874_v30, %v3545_v29  ;;  %v3502_v29 = vld [vmem:[%s5216_s15 + $0x2] sm:$0x3]  ;;  %v3880_v30 = vld [vmem:[#allocation21 + $0x88] sm:$0xff] }
 0xb64   : > { %v3888_v31 = vld [vmem:[#allocation21 + $0xc8] sm:$0xff]  ;;  %v2307_v33 = vperm.slane %v3502_v29, 1 }
 0xb65   : > { %v4156_v38 = vpop.eup %4155 }
 0xb66   : > { %v2067_v39 = vmul.f32 %v4156_v38, %v4152_v22  ;;  %v3538_v38 = vor.u32 %v3872_v36, %v3537_v35  ;;  %v3887_v35 = vld [vmem:[#allocation21 + $0xc0] sm:$0xff] }
 0xb67   : > { %v4158_v23 = vpop.eup %4157 }
 0xb68   : > { %v2071_v40 = vpack.c.bf16 %v2067_v39, %v2067_v39  ;;  %v2069_v41 = vmul.f32 %v4158_v23, %v4150_v21  ;;  %v4160_v43 = vpop.eup %4159  ;;  %v3539_v39 = vld [vmem:[#allocation19 + $0xc8] sm:$0xf0] }
 0xb69   : > { %v2070_v46 = vmul.f32 %v4160_v43, %v4148_v18  ;;  %v3566_v18 = vor.u32 %v3877_v14, %v3563_v17  ;;  %v3542_v23 = vor.u32 %v3871_v37, %v3539_v39  ;;  %v3886_v17 = vld [vmem:[#allocation21 + $0xb8] sm:$0xff] }
 0xb6a   : > { %v2073_v42 = vpack.c.bf16 %v2069_v41, %v2069_v41  ;;  %3466 = vmatmul.msk.bf16.vlgmr.msra.gmra.mxu1 %vm1072_vm7, %v2071_v40  ;;  %v3529_v40 = vld [vmem:[#allocation19 + $0xb0] sm:$0xf]  ;;  %v3870_v41 = vld [vmem:[#allocation19 + $0xb4] sm:$0xf0] }
 0xb6b   : > { %v2074_v0 = vpack.c.bf16 %v2070_v46, %v2070_v46  ;;  %2403 = vmatpush.bf16.msra.mxu3 %v3566_v18  ;;  %v3530_v43 = vor.u32 %v3870_v41, %v3529_v40  ;;  %v3894_v18 = vld [vmem:[#allocation21 + $0xf8] sm:$0xff]  ;;  %v3748_v41 = vld [vmem:[#allocation22 + $0xe0] sm:$0xf] }
 0xb6c   : > { %3468 = vmatmul.msk.bf16.vlgmr.msrb.gmra.mxu3 %vm1072_vm7, %v2073_v42  ;;  %v3869_v42 = vld [vmem:[#allocation19 + $0xb4] sm:$0xf]  ;;  %2605 = vmatpush.bf16.msra.mxu1 %v3894_v18 }
 0xb6f   : > { %2404 = vmatpush.bf16.msra.mxu3 %v3558_v28  ;;  %v3889_v28 = vld [vmem:[#allocation21 + $0xd0] sm:$0xff] }
 0xb73   : > { %2405 = vmatpush.bf16.msra.mxu3 %v3550_v34  ;;  %v3879_v34 = vld [vmem:[#allocation21 + $0x80] sm:$0xff] }
 0xb77   : > { %2406 = vmatpush.bf16.msra.mxu3 %v3542_v23 }
 0xb78   : > { %v1945_v44 = vpop.permute.xlu1 %1944 }
 0xb79   : > { %v1950_v47 = vpack.c.bf16 %v1945_v44, %v1945_v44  ;;  %v3531_v44 = vld [vmem:[#allocation19 + $0xb8] sm:$0xf0] }
 0xb7a   : > { %v3534_v46 = vor.u32 %v3869_v42, %v3531_v44  ;;  %v3925_v42 = vld [vmem:[#allocation22 + $0xec] sm:$0xf0] }
 0xb7b   : > { %v2136_v50 = vsel %vm1124_vm5, %v1950_v47, 0  ;;  %v3521_v47 = vld [vmem:[#allocation19 + $0xa0] sm:$0xf]  ;;  %v3749_v44 = vor.u32 %v3925_v42, %v3748_v41  ;;  %v3908_v41 = vld [vmem:[#allocation22 + $0x6c] sm:$0xf] }
 0xb7c   : > { %2145 = vmatpush.bf16.msra.mxu0 %v2136_v50  ;;  %2407 = vmatpush.bf16.msra.mxu3 %v3534_v46  ;;  %v3868_v50 = vld [vmem:[#allocation19 + $0xa4] sm:$0xf0]  ;;  %v3750_v46 = vld [vmem:[#allocation22 + $0xf0] sm:$0xf0]  ;;  %v3694_v42 = vld [vmem:[#allocation22 + $0x78] sm:$0xf0] }
 0xb7f   : > { %3469 = vmatmul.msk.bf16.vlgmr.msra.gmra.mxu0 %vm1072_vm7, %v2074_v0  ;;  %v3867_v0 = vld [vmem:[#allocation19 + $0xa4] sm:$0xf] }
 0xb80   : > { %2592 = vmatpush.bf16.msrb.mxu0 %v3886_v17 }
 0xbe5   : > { %v2109_v51 = vpop.f32.mrf.mxu2 }
 0xbe6   : > { %2153 = vrot.lane.b32.xlu2 %v2109_v51, %s4646_s4  ;;  %v3522_v51 = vor.u32 %v3868_v50, %v3521_v47  ;;  %v3756_v47 = vld [vmem:[#allocation22 + $0xe8] sm:$0xf]  ;;  %v3926_v50 = vld [vmem:[#allocation22 + $0xf4] sm:$0xf0]  ;;  %s2894_s4 = sshll.u32 %s2890_s14, 4  ;;  %s2895_s4 = int_to_ptr.hbm [resolvable:$true] %s2894_s4 }
 0xbe7   : > { %v2090_v52 = vpop.f32.mrf.mxu1 }
 0xbe8   : > { %2151 = vst.msk [vmem:[#allocation3] sm:$0xff] %vm995_vm4, %v2090_v52  ;;  %v3523_v52 = vld [vmem:[#allocation19 + $0xa8] sm:$0xf0] }
 0xbed   : > { %v2111_v48 = vpop.f32.mrf.mxu2 }
 0xbee   : > { %v3526_v48 = vor.u32 %v3867_v0, %v3523_v52  ;;  %v3924_v52 = vld [vmem:[#allocation22 + $0xec] sm:$0xf] }
 0xbef   : > { %v2092_v53 = vpop.f32.mrf.mxu1  ;;  %v2128_v54 = vpop.f32.mrf.mxu3 }
 0xbf0   : > { %2158 = vrot.lane.b32.xlu2 %v2128_v54, %s4647_s17  ;;  %2408 = vmatpush.bf16.msra.mxu3 %v3526_v48  ;;  %v3513_v53 = vld [vmem:[#allocation19 + $0x90] sm:$0xf]  ;;  %v3866_v54 = vld [vmem:[#allocation19 + $0x94] sm:$0xf0]  ;;  %v3758_v48 = vld [vmem:[#allocation22 + $0xf8] sm:$0xf0] }
 0xbf1   : > { %s4545_s17 = sshra.s32 %s2895_s4, 4  ;;  %s4546_s17 = int_to_ptr.hbm [resolvable:$true] %s4545_s17 }
 0xbf2   : > { %p4552_p12 = scmp.lt.s32.totalorder %s4546_s17, %s5219_s27 }
 0xbf7   : > { %v2130_v55 = vpop.f32.mrf.mxu3 }
 0xbf8   : > { %v3865_v55 = vld [vmem:[#allocation19 + $0x94] sm:$0xf] }
 0xbfc   : > { %v2147_v56 = vpop.f32.mrf.mxu0 }
 0xbfd   : > { %2163 = vrot.lane.b32.xlu1 %v2147_v56, %s4648_s24  ;;  %v3514_v56 = vor.u32 %v3866_v54, %v3513_v53  ;;  %v3732_v53 = vld [vmem:[#allocation22 + $0xc0] sm:$0xf]  ;;  %v3761_v54 = vor.u32 %v3924_v52, %v3758_v48  ;;  %v3697_v48 = vor.u32 %v3908_v41, %v3694_v42  ;;  %v3646_v41 = vld [vmem:[#allocation22 + $0x18] sm:$0xf0]  ;;  %s5218_s24 = sld [smem:[#allocation42_spill]] }
 0xc04   : > { %v2149_v57 = vpop.f32.mrf.mxu0 }
 0xc05   : > { %v3515_v57 = vld [vmem:[#allocation19 + $0x98] sm:$0xf0] }
 0xc06   : > { %v3518_v19 = vor.u32 %v3865_v55, %v3515_v57  ;;  %v3921_v55 = vld [vmem:[#allocation22 + $0xcc] sm:$0xf0]  ;;  %v3734_v57 = vld [vmem:[#allocation22 + $0xd0] sm:$0xf0] }
 0xc07   : > { %v3733_v60 = vor.u32 %v3921_v55, %v3732_v53  ;;  %v3670_v53 = vld [vmem:[#allocation22 + $0x50] sm:$0xf0]  ;;  %v3906_v55 = vld [vmem:[#allocation22 + $0x54] sm:$0xf0] }
 0xc08   : > { %2409 = vmatpush.bf16.msra.mxu3 %v3518_v19 }
 0xc40   : > { %v2154_v63 = vpop.permute.xlu2 %2153 }
 0xc41   : > { %2156 = vst.msk [vmem:[#allocation3] sm:$0xff] %vm1203_vm8, %v2154_v63  ;;  %v3507_v63 = vld [vmem:[#allocation19 + $0x88] sm:$0xf0] }
 0xc4a   : > { %v2159_v1 = vpop.permute.xlu2 %2158 }
 0xc4b   : > { %2161 = vst.msk [vmem:[#allocation3] sm:$0xff] %vm1209_vm9, %v2159_v1  ;;  %v3510_v1 = vor.u32 %v3863_v61, %v3507_v63  ;;  %v3922_v63 = vld [vmem:[#allocation22 + $0xd4] sm:$0xf0] }
 0xc4d   : > { %2410 = vmatpush.bf16.msra.mxu3 %v3510_v1  ;;  %v3920_v1 = vld [vmem:[#allocation22 + $0xcc] sm:$0xf] }
 0xc6f   : > { %v2164_v5 = vpop.permute.xlu1 %2163 }
 0xc70   : > { %2166 = vst.msk [vmem:[#allocation3] sm:$0xff] %vm1215_vm10, %v2164_v5 }
 0xc77   : > { %v2167_v6 = vld [vmem:[#allocation3] sm:$0xff] }
 0xc78   : > { %v2168_v7 = vpack.c.bf16 %v2167_v6, %v2167_v6 }
 0xc7a   : > { %2247 = vmatmul.bf16.vlgmr.msrb.gmra.mxu1 %v2168_v7 }
 0xcf7   : > { %v2248_v9 = vpop.f32.mrf.mxu1 }
 0xcf8   : > { %v2249_v11 = vadd.f32 %v4109_v8, %v2248_v9 }
 0xcfa   : > { %v2252_v49 = vadd.f32 %v2249_v11, %v5022_v45  ;;  %v3553_v45 = vld [vmem:[#allocation19 + $0xe0] sm:$0xf] }
 0xcfb   : > { %v3554_v27 = vor.u32 %v3876_v25, %v3553_v45  ;;  %v3892_v45 = vld [vmem:[#allocation21 + $0xe8] sm:$0xff]  ;;  %v3891_v25 = vld [vmem:[#allocation21 + $0xe0] sm:$0xff] }
 0xcfc   : > { %2257 = vadd.xlane.f32.xlu2 %v2252_v49 }
 0xcfd   : > { %2391 = vmatpush.bf16.msrb.mxu2 %v3554_v27  ;;  %v3890_v27 = vld [vmem:[#allocation21 + $0xd8] sm:$0xff] }
 0xcff   : > { %v2250_v10 = vpop.f32.mrf.mxu1 }
 0xd01   : > { %2392 = vmatpush.bf16.msrb.mxu2 %v3546_v32  ;;  %v2306_v32 = vperm.slane %v3502_v29, 0 }
 0xd05   : > { %2393 = vmatpush.bf16.msrb.mxu2 %v3538_v38 }
 0xd09   : > { %2394 = vmatpush.bf16.msrb.mxu2 %v3530_v43  ;;  %v3923_v43 = vld [vmem:[#allocation22 + $0xe4] sm:$0xf] }
 0xd0a   : > { %v3753_v0 = vor.u32 %v3923_v43, %v3750_v46 }
 0xd0c   : > { %2835 = vmatpush.bf16.msrb.mxu3 %v3753_v0  ;;  %v3903_v0 = vld [vmem:[#allocation22 + $0x44] sm:$0xf] }
 0xd0d   : > { %2395 = vmatpush.bf16.msrb.mxu2 %v3522_v51  ;;  %v3757_v51 = vor.u32 %v3926_v50, %v3756_v47  ;;  %v3668_v47 = vld [vmem:[#allocation22 + $0x40] sm:$0xf]  ;;  %v3905_v50 = vld [vmem:[#allocation22 + $0x4c] sm:$0xf0] }
 0xd11   : > { %2396 = vmatpush.bf16.msrb.mxu2 %v3514_v56  ;;  %v3919_v56 = vld [vmem:[#allocation22 + $0xc4] sm:$0xf] }
 0xd12   : > { %v3737_v61 = vor.u32 %v3919_v56, %v3734_v57  ;;  %v3904_v57 = vld [vmem:[#allocation22 + $0x4c] sm:$0xf] }
 0xd14   : > { %2836 = vmatpush.bf16.msrb.mxu3 %v3737_v61  ;;  %v3669_v61 = vor.u32 %v3905_v50, %v3668_v47 }
 0xd15   : > { %2397 = vmatpush.bf16.msrb.mxu2 %v3506_v62  ;;  %v3740_v62 = vld [vmem:[#allocation22 + $0xc8] sm:$0xf] }
 0xd19   : > { %2822 = vmatpush.bf16.msra.mxu2 %v3749_v44 }
 0xd1d   : > { %2823 = vmatpush.bf16.msra.mxu2 %v3733_v60 }
 0xd6f   : > { %v2258_v20 = vpop.xlane.xlu2 %2257 }
 0xd70   : > { %v2259_v21 = vmul.f32 %v2258_v20, %v4940_v16  ;;  %v3885_v20 = vld [vmem:[#allocation21 + $0xb0] sm:$0xff] }
 0xd71   : > { %2593 = vmatpush.bf16.msrb.mxu0 %v3885_v20  ;;  %v3700_v20 = vld [vmem:[#allocation22 + $0x80] sm:$0xf] }
 0xd72   : > { %v5086_v22 = vsub.f32 %v2252_v49, %v2259_v21  ;;  %v4110_v49 = vld [vmem:[#allocation16 + $0x1] ss:$0 sm:$0xff]  ;;  %v3893_v21 = vld [vmem:[#allocation21 + $0xf0] sm:$0xff] }
 0xd73   : > { %2606 = vmatpush.bf16.msra.mxu1 %v3893_v21  ;;  %v3913_v21 = vld [vmem:[#allocation22 + $0x8c] sm:$0xf0] }
 0xd74   : > { %v2261_v24 = vmul.f32 %v5086_v22, %v5086_v22 }
 0xd76   : > { %2262 = vadd.xlane.f32.xlu1 %v2261_v24  ;;  %v3884_v24 = vld [vmem:[#allocation21 + $0xa8] sm:$0xff] }
 0xd77   : > { %2594 = vmatpush.bf16.msrb.mxu0 %v3884_v24  ;;  %2607 = vmatpush.bf16.msra.mxu1 %v3892_v45 }
 0xd7b   : > { %2608 = vmatpush.bf16.msra.mxu1 %v3891_v25  ;;  %v3702_v25 = vld [vmem:[#allocation22 + $0x90] sm:$0xf0] }
 0xd7f   : > { %2609 = vmatpush.bf16.msra.mxu1 %v3890_v27  ;;  %v3701_v27 = vor.u32 %v3913_v21, %v3700_v20  ;;  %v3652_v21 = vld [vmem:[#allocation22 + $0x20] sm:$0xf] }
 0xd83   : > { %2610 = vmatpush.bf16.msra.mxu1 %v3889_v28 }
 0xd87   : > { %2611 = vmatpush.bf16.msra.mxu1 %v3888_v31  ;;  %v3710_v31 = vld [vmem:[#allocation22 + $0x98] sm:$0xf0] }
 0xd8b   : > { %2612 = vmatpush.bf16.msra.mxu1 %v3887_v35  ;;  %v3907_v35 = vld [vmem:[#allocation22 + $0x64] sm:$0xf] }
 0xd8f   : > { %2861 = vmatpush.bf16.msrb.mxu1 %v3761_v54  ;;  %v3676_v54 = vld [vmem:[#allocation22 + $0x48] sm:$0xf] }
 0xde9   : > { %v2263_v2 = vpop.xlane.xlu1 %2262 }
 0xdea   : > { %v2264_v3 = vmul.f32 %v2263_v2, %v4940_v16  ;;  %v3741_v2 = vor.u32 %v3922_v63, %v3740_v62 }
 0xdec   : > { %v2265_v4 = vadd.f32 1e-05, %v2264_v3  ;;  %v3742_v3 = vld [vmem:[#allocation22 + $0xd8] sm:$0xf0] }
 0xdee   : > { %4161 = vrsqrt.f32 %v2265_v4  ;;  %vm2272_vm5 = vweird.f32 %v2265_v4 }
 0xdf4   : > { %v4162_v5 = vpop.eup %4161 }
 0xdf5   : > { %v2267_v6 = vmul.f32 %v4162_v5, %v2265_v4  ;;  %vm2273_vm4 = vweird.f32 %v4162_v5  ;;  %v3716_v4 = vld [vmem:[#allocation22 + $0xa0] sm:$0xf] }
 0xdf6   : > { %vm2274_vm7 = vmor %vm2272_vm5, %vm2273_vm4 }
 0xdf7   : > { %v2268_v7 = vmul.f32 %v4162_v5, %v2267_v6  ;;  %v3745_v6 = vor.u32 %v3920_v1, %v3742_v3  ;;  %v3673_v1 = vor.u32 %v3903_v0, %v3670_v53  ;;  %v2652_v53 = vld [vmem:[%s5218_s24] sm:$0xf]  ;;  %s4547_s24 = scalar_lea.hbm %s4546_s17, 32 }
 0xdf8   : > { %p4548_p1 = scmp.ne.s32.totalorder %s4546_s17, %s4547_s24  ;;  %p4553_p7 = scmp.lt.s32.totalorder %s4551_s25, %s4547_s24 }
 0xdf9   : > { %v2269_v8 = vmul.f32 0.5, %v2268_v7  ;;  %v3915_v7 = vld [vmem:[#allocation22 + $0xa4] sm:$0xf]  ;;  %2862 = vmatpush.bf16.msrb.mxu1 %v3745_v6 }
 0xdfa   : > { %p4549_p3 = pnand %p4548_p1, %p4874_p4  ;;  %p4554_p8 = por %p4553_p7, %p4552_p12 }
 0xdfb   : > { %v2270_v9 = vsub.f32 1.5, %v2269_v8  ;;  %v3718_v8 = vld [vmem:[#allocation22 + $0xb0] sm:$0xf0] }
 0xdfc   : > { %v3721_v17 = vor.u32 %v3915_v7, %v3718_v8  ;;  %p4550_p5 = pneg %p4549_p3 }
 0xdfd   : > { %v2271_v11 = vmul.f32 %v4162_v5, %v2270_v9  ;;  %v3724_v9 = vld [vmem:[#allocation22 + $0xa8] sm:$0xf] }
 0xdfe   : > { %2837 = vmatpush.bf16.msrb.mxu3 %v3721_v17  ;;  %p4555_p9 = pnand %p4554_p8, %p4550_p5 }
 0xdff   : > { %v2275_v10 = vsel %vm2274_vm7, %v4162_v5, %v2271_v11  ;;  %v3917_v5 = vld [vmem:[#allocation22 + $0xac] sm:$0xf0] }
 0xe00   : > { %v2276_v12 = vmul.f32 %v2275_v10, %v5086_v22  ;;  %v3883_v22 = vld [vmem:[#allocation21 + $0xa0] sm:$0xff]  ;;  %v3918_v10 = vld [vmem:[#allocation22 + $0xb4] sm:$0xf0] }
 0xe01   : > { %2595 = vmatpush.bf16.msrb.mxu0 %v3883_v22  ;;  %v3725_v18 = vor.u32 %v3918_v10, %v3724_v9  ;;  %v3911_v22 = vld [vmem:[#allocation22 + $0x84] sm:$0xf] }
 0xe02   : > { %v2280_v14 = vmul.f32 %v4110_v49, %v2276_v12  ;;  %v3717_v49 = vor.u32 %v3917_v5, %v3716_v4  ;;  %v3916_v12 = vld [vmem:[#allocation22 + $0xac] sm:$0xf]  ;;  %v3705_v28 = vor.u32 %v3911_v22, %v3702_v25  ;;  %v3654_v25 = vld [vmem:[#allocation22 + $0x30] sm:$0xf0] }
 0xe04   : > { %v5092_v15 = vadd.f32 %v4111_v13, %v2280_v14  ;;  %v3726_v13 = vld [vmem:[#allocation22 + $0xb8] sm:$0xf0]  ;;  %2824 = vmatpush.bf16.msra.mxu2 %v3717_v49  ;;  %2838 = vmatpush.bf16.msrb.mxu3 %v3705_v28 }
 0xe05   : > { %2596 = vmatpush.bf16.msrb.mxu0 %v3882_v26  ;;  %v3729_v45 = vor.u32 %v3916_v12, %v3726_v13  ;;  %v3708_v26 = vld [vmem:[#allocation22 + $0x88] sm:$0xf] }
 0xe06   : > { %v2285_v16 = vpack.c.bf16 %v5092_v15, %v5092_v15 }
 0xe07   : > { %2863 = vmatpush.bf16.msrb.mxu1 %v3729_v45  ;;  %v3899_v45 = vld [vmem:[#allocation22 + $0x24] sm:$0xf] }
 0xe08   : > { %2398 = vmatmul.bf16.vlgmr.msrb.gmra.mxu2 %v2285_v16  ;;  %2411 = vmatmul.bf16.vlgmr.msra.gmra.mxu3 %v2285_v16 }
 0xe09   : > { %2597 = vmatpush.bf16.msrb.mxu0 %v3881_v58  ;;  %v3914_v58 = vld [vmem:[#allocation22 + $0x94] sm:$0xf0]  ;;  %2825 = vmatpush.bf16.msra.mxu2 %v3701_v27 }
 0xe0a   : > { %v3709_v29 = vor.u32 %v3914_v58, %v3708_v26  ;;  %v3660_v26 = vld [vmem:[#allocation22 + $0x28] sm:$0xf]  ;;  %v3902_v27 = vld [vmem:[#allocation22 + $0x34] sm:$0xf0]  ;;  %v3657_v58 = vor.u32 %v3899_v45, %v3654_v25 }
 0xe0b   : > { %v3661_v28 = vor.u32 %v3902_v27, %v3660_v26 }
 0xe0d   : > { %2598 = vmatpush.bf16.msrb.mxu0 %v3880_v30  ;;  %v3912_v30 = vld [vmem:[#allocation22 + $0x8c] sm:$0xf] }
 0xe11   : > { %2599 = vmatpush.bf16.msrb.mxu0 %v3879_v34  ;;  %v3909_v34 = vld [vmem:[#allocation22 + $0x6c] sm:$0xf0] }
 0xe15   : > { %2848 = vmatpush.bf16.msra.mxu0 %v3757_v51 }
 0xe19   : > { %2849 = vmatpush.bf16.msra.mxu0 %v3741_v2  ;;  %v3677_v2 = vor.u32 %v3906_v55, %v3676_v54  ;;  %v2656_v54 = vperm.slane %v2652_v53, 2  ;;  %v2657_v55 = vperm.slane %v2652_v53, 3 }
 0xe1d   : > { %2850 = vmatpush.bf16.msra.mxu0 %v3725_v18 }
 0xe21   : > { %2851 = vmatpush.bf16.msra.mxu0 %v3709_v29  ;;  %v3900_v29 = vld [vmem:[#allocation22 + $0x2c] sm:$0xf] }
 0xe8b   : > { %v2399_v36 = vpop.f32.mrf.mxu2  ;;  %v2412_v37 = vpop.f32.mrf.mxu3 }
 0xe8c   : > { %v5099_v38 = vadd.f32 %v2399_v36, %v2306_v32  ;;  %v5101_v39 = vadd.f32 %v2412_v37, %v2307_v33  ;;  %v3713_v32 = vor.u32 %v3912_v30, %v3710_v31  ;;  %v3684_v33 = vld [vmem:[#allocation22 + $0x60] sm:$0xf]  ;;  %v3686_v36 = vld [vmem:[#allocation22 + $0x70] sm:$0xf0]  ;;  %v3692_v37 = vld [vmem:[#allocation22 + $0x68] sm:$0xf] }
 0xe8d   : > { %v3689_v44 = vor.u32 %v3907_v35, %v3686_v36  ;;  %v3662_v30 = vld [vmem:[#allocation22 + $0x38] sm:$0xf0]  ;;  %v3897_v31 = vld [vmem:[#allocation22 + $0xc] sm:$0xf0]  ;;  %v3644_v35 = vld [vmem:[#allocation22 + $0x8] sm:$0xf] }
 0xe8e   : > { %v3567_v23 = vmul.f32 -1.442695, %v5099_v38  ;;  %v3568_v40 = vmul.f32 -1.442695, %v5101_v39  ;;  %2864 = vmatpush.bf16.msrb.mxu1 %v3713_v32  ;;  %v3895_v32 = vld [vmem:[#allocation22 + $0x4] sm:$0xf] }
 0xe8f   : > { %2839 = vmatpush.bf16.msrb.mxu3 %v3689_v44  ;;  %v3898_v36 = vld [vmem:[#allocation22 + $0x14] sm:$0xf0] }
 0xe90   : > { %4163 = vpow2.f32 %v3567_v23  ;;  %v3685_v23 = vor.u32 %v3909_v34, %v3684_v33  ;;  %v3638_v34 = vld [vmem:[#allocation22 + $0x10] sm:$0xf0] }
 0xe91   : > { %4165 = vpow2.f32 %v3568_v40  ;;  %v3910_v40 = vld [vmem:[#allocation22 + $0x74] sm:$0xf0] }
 0xe92   : > { %v3693_v46 = vor.u32 %v3910_v40, %v3692_v37  ;;  %2826 = vmatpush.bf16.msra.mxu2 %v3685_v23  ;;  %2865 = vmatpush.bf16.msrb.mxu1 %v3697_v48  ;;  %v3641_v37 = vor.u32 %v3895_v32, %v3638_v34  ;;  %v3645_v23 = vor.u32 %v3898_v36, %v3644_v35  ;;  %v3896_v40 = vld [vmem:[#allocation22 + $0xc] sm:$0xf] }
 0xe93   : > { %v2401_v19 = vpop.f32.mrf.mxu2  ;;  %v2414_v59 = vpop.f32.mrf.mxu3  ;;  %2840 = vmatpush.bf16.msrb.mxu3 %v3673_v1  ;;  %v3649_v42 = vor.u32 %v3896_v40, %v3646_v41 }
 0xe94   : > { %v3678_v19 = vld [vmem:[#allocation22 + $0x58] sm:$0xf0]  ;;  %2852 = vmatpush.bf16.msra.mxu0 %v3693_v46 }
 0xe95   : > { %v3681_v5 = vor.u32 %v3904_v57, %v3678_v19 }
 0xe96   : > { %v4164_v11 = vpop.eup %4163  ;;  %2827 = vmatpush.bf16.msra.mxu2 %v3669_v61 }
 0xe97   : > { %v4166_v14 = vpop.eup %4165  ;;  %v5105_v16 = vadd.f32 1.0, %v4164_v11  ;;  %2866 = vmatpush.bf16.msrb.mxu1 %v3681_v5  ;;  %2841 = vmatpush.bf16.msrb.mxu3 %v3657_v58 }
 0xe98   : > { %v5107_v24 = vadd.f32 1.0, %v4166_v14  ;;  %2853 = vmatpush.bf16.msra.mxu0 %v3677_v2 }
 0xe99   : > { %4167 = vrcp.f32 %v5105_v16  ;;  %v2433_v60 = vand.u32 2147483647, %v5105_v16  ;;  %v2435_v62 = vand.u32 2147483648, %v5105_v16  ;;  %vm2429_vm10 = vweird.f32 %v5105_v16 }
 0xe9a   : > { %4169 = vrcp.f32 %v5107_v24  ;;  %v2450_v4 = vand.u32 2147483648, %v5107_v24  ;;  %v2448_v7 = vand.u32 2147483647, %v5107_v24  ;;  %vm2444_vm0 = vweird.f32 %v5107_v24 }
 0xe9b   : > { %v2436_v9 = vor.u32 1.1754944e-38, %v2435_v62  ;;  %vm2434_vm1 = vcmp.eq.f32.partialorder %v2433_v60, 8.507059e+37  ;;  %2842 = vmatpush.bf16.msrb.mxu3 %v3641_v37  ;;  %v2655_v60 = vperm.slane %v2652_v53, 1 }
 0xe9c   : > { %v2451_v10 = vor.u32 1.1754944e-38, %v2450_v4  ;;  %vm2449_vm3 = vcmp.eq.f32.partialorder %v2448_v7, 8.507059e+37  ;;  %2854 = vmatpush.bf16.msra.mxu0 %v3661_v28 }
 0xe9f   : > { %v4168_v43 = vpop.eup %4167 }
 0xea0   : > { %v4170_v51 = vpop.eup %4169  ;;  %v2425_v52 = vmul.f32 %v4168_v43, %v5105_v16  ;;  %vm2430_vm8 = vweird.f32 %v4168_v43  ;;  %2855 = vmatpush.bf16.msra.mxu0 %v3645_v23 }
 0xea1   : > { %v2440_v56 = vmul.f32 %v4170_v51, %v5107_v24  ;;  %vm2445_vm9 = vweird.f32 %v4170_v51  ;;  %vm2431_vm15 = vmor %vm2429_vm10, %vm2430_vm8  ;;  %v3901_v24 = vld [vmem:[#allocation22 + $0x2c] sm:$0xf0] }
 0xea2   : > { %v2426_v59 = vsub.f32 1.0, %v2425_v52  ;;  %vm2446_vm2 = vmor %vm2444_vm0, %vm2445_vm9  ;;  %v3653_v22 = vor.u32 %v3901_v24, %v3652_v21 }
 0xea3   : > { %v2441_v63 = vsub.f32 1.0, %v2440_v56 }
 0xea4   : > { %v2427_v3 = vmul.f32 %v4168_v43, %v2426_v59  ;;  %2828 = vmatpush.bf16.msra.mxu2 %v3653_v22 }
 0xea5   : > { %v2442_v6 = vmul.f32 %v4170_v51, %v2441_v63 }
 0xea6   : > { %v2428_v8 = vadd.f32 %v4168_v43, %v2427_v3 }
 0xea7   : > { %v2443_v11 = vadd.f32 %v4170_v51, %v2442_v6 }
 0xea8   : > { %v2432_v49 = vsel %vm2431_vm15, %v4168_v43, %v2428_v8  ;;  %v4112_v43 = vld [vmem:[%s5217_s10 + $0x1] ss:$0 sm:$0xff] }
 0xea9   : > { %v2437_v12 = vsel %vm2434_vm1, %v2436_v9, %v2432_v49  ;;  %v2447_v13 = vsel %vm2446_vm2, %v4170_v51, %v2443_v11 }
 0xeaa   : > { %v2454_v14 = vmul.f32 %v2437_v12, %v5099_v38  ;;  %v2452_v17 = vsel %vm2449_vm3, %v2451_v10, %v2447_v13  ;;  %v3665_v38 = vor.u32 %v3900_v29, %v3662_v30 }
 0xeab   : > { %v2455_v16 = vmul.f32 %v2452_v17, %v5101_v39  ;;  %v3636_v39 = vld [vmem:[#allocation22] sm:$0xf] }
 0xeac   : > { %v2456_v18 = vpack.c.bf16 %v2454_v14, %v2454_v14  ;;  %2867 = vmatpush.bf16.msrb.mxu1 %v3665_v38  ;;  %v3637_v33 = vor.u32 %v3897_v31, %v3636_v39 }
 0xead   : > { %v2457_v20 = vpack.c.bf16 %v2455_v16, %v2455_v16 }
 0xeae   : > { %2600 = vmatmul.bf16.vlgmr.msrb.gmra.mxu0 %v2456_v18  ;;  %2829 = vmatpush.bf16.msra.mxu2 %v3637_v33 }
 0xeaf   : > { %2613 = vmatmul.bf16.vlgmr.msra.gmra.mxu1 %v2457_v20 }
 0xeb0   : > { %2868 = vmatpush.bf16.msrb.mxu1 %v3649_v42 }
 0xf2b   : > { %v2601_v44 = vpop.f32.mrf.mxu0 }
 0xf2c   : > { %v2602_v46 = vadd.f32 %v4112_v43, %v2601_v44  ;;  %v2614_v47 = vpop.f32.mrf.mxu1 }
 0xf2e   : > { %v2615_v50 = vadd.f32 %v2614_v47, %v2602_v46 }
 0xf30   : > { %v2618_v0 = vadd.f32 %v2615_v50, %v5092_v15  ;;  %v2654_v15 = vperm.slane %v2652_v53, 0 }
 0xf32   : > { %v2619_v51 = vpack.c.bf16 %v2618_v0, %v2618_v0 }
 0xf33   : > { %v2603_v52 = vpop.f32.mrf.mxu0 }
 0xf34   : > { %v2616_v48 = vpop.f32.mrf.mxu1  ;;  %2830 = vmatmul.bf16.vlgmr.msra.gmra.mxu2 %v2619_v51  ;;  %2843 = vmatmul.bf16.vlgmr.msrb.gmra.mxu3 %v2619_v51 }
 0xf35   : > { %2856 = vmatmul.bf16.vlgmr.msra.gmra.mxu0 %v2619_v51  ;;  %2869 = vmatmul.bf16.vlgmr.msrb.gmra.mxu1 %v2619_v51 }
 0xfb2   : > { %v2857_v56 = vpop.f32.mrf.mxu0  ;;  %v2870_v57 = vpop.f32.mrf.mxu1 }
 0xfb3   : > { %v2858_v19 = vadd.f32 %v2857_v56, %v2656_v54  ;;  %v2871_v59 = vadd.f32 %v2870_v57, %v2657_v55 }
 0xfb5   : > { %2876 = vst [vmem:[%s693_s29 + $0x10] sm:$0xff] %v2858_v19 }
 0xfb6   : > { %2877 = vst [vmem:[%s693_s29 + $0x18] sm:$0xff] %v2871_v59 }
 0xfb7   : > { %v2831_v61 = vpop.f32.mrf.mxu2  ;;  %v2844_v62 = vpop.f32.mrf.mxu3 }
 0xfb8   : > { %v2832_v63 = vadd.f32 %v2831_v61, %v2654_v15  ;;  %v2845_v1 = vadd.f32 %v2844_v62, %v2655_v60 }
 0xfba   : > { %2874 = vst [vmem:[%s693_s29] sm:$0xff] %v2832_v63  ;;  %v2859_v2 = vpop.f32.mrf.mxu0  ;;  %v2872_v3 = vpop.f32.mrf.mxu1 }
 0xfbb   : > { %2875 = vst [vmem:[%s693_s29 + $0x8] sm:$0xff] %v2845_v1 }
 0xfbc   : > { %4558 = shalt.err (!%p4555_p9)
}
 0xfbd   : > { %3974 = dma.vmem_to_hbm [thread:$0]  (%p4874_p4), %s2893_s12, 512, %s2895_s4, %s2879_s2  }
 0xfbf   : > { %v2833_v4 = vpop.f32.mrf.mxu2  ;;  %v2846_v5 = vpop.f32.mrf.mxu3 }
 0xfc0 PF: > { %s2906_s3 = sand.u32 1, %s4609_s18   ;;  %p5220_p10 = scmp.ge.s32.totalorder %s4621_s21, 2 }
 0xfc1   : > { %s2907_s29 = scalar_lea.sflag [#allocation6], %s2906_s3 }
 0xfc2   : > { %p4015_p13 = pnand %p5220_p10, %p4878_p6 }
 0xfc4   : > { %p4016_p11 = pneg %p4015_p13 }
 0xfc6   : > { %4604 = dma.done.wait (%p4016_p11), %s2907_s29, 512  }
 0xfc7   : > { %4606 = vsyncadd (%p4016_p11), %s2907_s29, 4294966784  ;;  %p34_p4 = scmp.ge.s32.totalorder %s4848_s16, 4   ;;  %s5221_s18 = smov %s4613_s19 }
 0xfc8   : > { %s5222_s19 = smov %s4617_s20  ;;  %s5223_s20 = smov %s4859_s0 }
 0xfc9   : > { %s5224_s21 = smov %s4848_s16  ;;  %36 = sbr.rel (!%p34_p4) target bundleno = 21 (0x15), region = 181 }
 0xfce   :  { %2913 = vsyncpa [#allocation5], 1 }
 0xfcf   :  { %2915 = vsyncpa [#allocation5 + $0x1], 1 }
 0xfd0   :  { %2916 = vsyncpa [#allocation8], 1 }
 0xfd1   :  { %2917 = vsyncpa [#allocation11], 1 }
 0xfd2   :  { %2918 = vsyncpa [#allocation14], 1 }
 0xfd3   :  { %2919 = vsyncpa [#allocation17], 1 }
 0xfd4   :  { %2920 = vsyncpa [#allocation20], 1 }
 0xfd5   :  { %2921 = vsyncpa [#allocation23], 1 }
 0xfd6   :  { %2922 = vsyncpa [#allocation6], 1 }
 0xfd7   :  { %2924 = vsyncpa [#allocation6 + $0x1], 1 }

</bundles_post_ra>
